<compile_context>
chip_gen: v6e
topology: v6e:2x2x1
jax: 0.10.0
libtpu: 0.0.40
codegen_flags: <defaults>
</compile_context>

<pallas_src>
import functools

import jax
import jax.numpy as jnp
from jax import lax
from jax.experimental import pallas as pl
from jax.experimental.pallas import tpu as pltpu


def _coordconv_kernel(x_ref, w_ref, b_ref, o_ref, *, cin, tile_h):
    """CoordConv 1x1 conv, NCHW layout, rows-on-sublanes / cols-on-lanes.

    x_ref: (1, Cin, TH, W)      input row-tile (native dtype; cast to f32 here)
    w_ref: (Cout*(Cin+2),) SMEM f32  per-channel [w_in..., w_row, w_col]; the
                                 coordinate columns are pre-scaled by 2/(H-1), 2/(W-1)
    b_ref: (Cout,) SMEM f32      bias with the coordinate "-1" offsets folded in
    o_ref: (1, Cout, TH, W)      output row-tile
    """
    cout = o_ref.shape[1]
    th = o_ref.shape[2]
    wpix = o_ref.shape[3]
    ncoef = cin + 2

    # Per-channel input planes, cast to f32 once (accumulation stays f32).
    xs = [x_ref[0, c].astype(jnp.float32) for c in range(cin)]

    # Absolute row / column index vectors for this tile (hoisted out of the channel
    # loop).  Row is (TH,1), col is (1,W): the *2/(dim-1) scaling and the -1 offsets
    # already live in the SMEM coefficients / bias.
    row0 = (pl.program_id(0) * tile_h).astype(jnp.float32)
    row = lax.broadcasted_iota(jnp.int32, (th, 1), 0).astype(jnp.float32) + row0
    col = lax.broadcasted_iota(jnp.int32, (1, wpix), 1).astype(jnp.float32)

    # Per output channel: coefficients come from SMEM scalars; only ~3 full-tile VPU
    # ops per output element remain (mul + two broadcast adds).  No MXU: contraction
    # depth is Cin+2 <= 5.
    for o in range(cout):
        base = o * ncoef
        rowv = w_ref[base + cin] * row                     # (TH, 1)   small
        colb = w_ref[base + cin + 1] * col + b_ref[o]      # (1, W)    small
        acc = w_ref[base] * xs[0]                          # (TH, W)   full tile
        for c in range(1, cin):                            # Cin is tiny; static unroll
            acc = acc + w_ref[base + c] * xs[c]
        acc = (acc + rowv) + colb                          # two broadcast adds
        o_ref[0, o] = acc.astype(o_ref.dtype)


def _choose_row_tile(h, w, cout, out_itemsize, target_bytes):
    """Largest multiple-of-16 (>=8) row tile whose output block is ~<= target_bytes."""
    rows = int(target_bytes) // max(1, cout * w * out_itemsize)
    if rows >= 16:
        rows = (rows // 16) * 16
    else:
        rows = max(8, (rows // 8) * 8)
    return h if rows >= h else rows


def coordconv_net_forward(x_nchw, w_ext, bias, *, out_dtype=jnp.bfloat16,
                          target_tile_bytes=8 << 20,
                          ensure_lane_dense_w=False, tile_h=None):
    """Forward pass of Net's CoordConvNet stage as a Pallas TPU kernel.

    x_nchw: (B, Cin, H, W)   any float dtype (NCHW, used as-is; no wrapper cast)
    w_ext:  (Cin + 2, Cout)  f32 1x1-conv weight, rows = [input chans..., xx(row), yy(col)]
    bias:   (Cout,)          f32
    returns (B, Cout, H, W)  out_dtype (bf16 default; NFNet backbone consumes bf16)
    """
    B, Cin, H, W = x_nchw.shape
    Cout = w_ext.shape[1]
    W_orig = W

    # Optional lane-dense store path: pad W to a multiple of 128 so output vst's are
    # unmasked.  Only a net win if the consumer can take the padded width (the crop
    # below costs one pass over the output); NFNet sizes 384/512 need no padding.
    if ensure_lane_dense_w and W % 128 != 0:
        W = ((W + 127) // 128) * 128
        x_nchw = jnp.pad(x_nchw, ((0, 0), (0, 0), (0, 0), (0, W - W_orig)))

    # Fold the coordinate affine (idx*2/(dim-1) - 1) into weights / bias (uses the
    # ORIGINAL spatial dims).  H==1 / W==1 folds inf, matching torch div-by-zero.
    coord_scale = 2.0 / jnp.array([H - 1, W_orig - 1], jnp.float32)
    scale = jnp.concatenate([jnp.ones((Cin,), jnp.float32), coord_scale])
    w_eff = (jnp.transpose(w_ext).astype(jnp.float32) * scale[None, :]).reshape(-1)
    b_eff = bias.astype(jnp.float32) - w_ext[Cin, :] - w_ext[Cin + 1, :]

    out_itemsize = jnp.dtype(out_dtype).itemsize
    if tile_h is None:
        tile_h = _choose_row_tile(H, W, Cout, out_itemsize, target_tile_bytes)
    else:
        tile_h = min(int(tile_h), H)
        if tile_h != H:
            tile_h = max(8, (tile_h // 8) * 8)
    n_row_tiles = pl.cdiv(H, tile_h)

    kernel = functools.partial(_coordconv_kernel, cin=Cin, tile_h=tile_h)

    out_tile_bytes = Cout * tile_h * W * out_itemsize
    in_tile_bytes = Cin * tile_h * W * x_nchw.dtype.itemsize
    # 2x double-buffered blocks + headroom for Mosaic spill scratch; cap for v7x (64 MiB/TC).
    vmem_limit = int(min(48 << 20, 2 * (out_tile_bytes + in_tile_bytes) + (16 << 20)))

    flops = 2 * B * H * W * Cout * (Cin + 2)
    bytes_accessed = (B * H * W * Cin * x_nchw.dtype.itemsize
                      + B * H * W * Cout * out_itemsize
                      + 4 * Cout * (Cin + 3))

    out = pl.pallas_call(
        kernel,
        out_shape=jax.ShapeDtypeStruct((B, Cout, H, W), out_dtype),
        grid=(n_row_tiles, B),   # row-tile axis leads so megacore splits it even at B==1
        in_specs=[
            pl.BlockSpec((1, Cin, tile_h, W), lambda t, b: (b, 0, t, 0)),
            pl.BlockSpec(memory_space=pltpu.MemorySpace.SMEM),   # flat coeffs
            pl.BlockSpec(memory_space=pltpu.MemorySpace.SMEM),   # folded bias
        ],
        out_specs=pl.BlockSpec((1, Cout, tile_h, W), lambda t, b: (b, 0, t, 0)),
        compiler_params=pltpu.CompilerParams(
            dimension_semantics=("parallel", "parallel"),
            vmem_limit_bytes=vmem_limit),
        cost_estimate=pl.CostEstimate(
            flops=int(flops), transcendentals=0, bytes_accessed=int(bytes_accessed)),
    )(x_nchw, w_eff, b_eff)   # x in its native dtype; f32 cast happens in the kernel

    if W != W_orig:
        out = out[:, :, :, :W_orig]
    return out


def _reference_coordconv(x_nchw, w_ext, bias):
    """Pure-JAX reference (AddCoordinates + 1x1 conv) for correctness checking."""
    B, Cin, H, W = x_nchw.shape
    rows = jnp.arange(H, dtype=jnp.float32)[:, None] / (H - 1) * 2.0 - 1.0
    cols = jnp.arange(W, dtype=jnp.float32)[None, :] / (W - 1) * 2.0 - 1.0
    xx = jnp.broadcast_to(jnp.broadcast_to(rows, (H, W))[None, None], (B, 1, H, W))
    yy = jnp.broadcast_to(jnp.broadcast_to(cols, (H, W))[None, None], (B, 1, H, W))
    feat = jnp.concatenate([x_nchw.astype(jnp.float32), xx, yy], axis=1)  # (B, Cin+2, H, W)
    return jnp.einsum('bchw,co->bohw', feat, w_ext) + bias[None, :, None, None]


if __name__ == "__main__":
    key = jax.random.PRNGKey(0)
    k_x, k_w, k_b = jax.random.split(key, 3)

    # Small shapes consistent with the module: in_channels=1 (CoordConvNet default),
    # out_channels=64, kernel_size=1.
    B, Cin, H, W = 2, 1, 16, 16
    Cout = 64

    x = jax.random.normal(k_x, (B, Cin, H, W), dtype=jnp.float32)

    # Deterministic parameter init (Conv2d-style uniform bound = 1/sqrt(fan_in)).
    fan_in = Cin + 2
    bound = 1.0 / (fan_in ** 0.5)
    w_ext = jax.random.uniform(k_w, (Cin + 2, Cout), jnp.float32, -bound, bound)
    bias = jax.random.uniform(k_b, (Cout,), jnp.float32, -bound, bound)

    ref = _reference_coordconv(x, w_ext, bias)

    # 1) Default path: bf16 output (backbone consumes bf16), f32 accumulation.
    out_bf16 = jax.block_until_ready(coordconv_net_forward(x, w_ext, bias))
    assert out_bf16.shape == (B, Cout, H, W), out_bf16.shape
    assert out_bf16.dtype == jnp.bfloat16, out_bf16.dtype
    err = float(jnp.max(jnp.abs(out_bf16.astype(jnp.float32) - ref)))
    assert err < 3e-2, err

    # 2) f32 output path: tight numerical check against the reference.
    out_f32 = jax.block_until_ready(
        coordconv_net_forward(x, w_ext, bias, out_dtype=jnp.float32))
    assert jnp.allclose(out_f32, ref, atol=1e-4, rtol=1e-4), \
        float(jnp.max(jnp.abs(out_f32 - ref)))

    # 3) Non-divisible H: last row tile is masked on store.
    H2 = 24
    x2 = jax.random.normal(k_x, (B, Cin, H2, W), dtype=jnp.float32)
    ref2 = _reference_coordconv(x2, w_ext, bias)
    out2 = jax.block_until_ready(
        coordconv_net_forward(x2, w_ext, bias, out_dtype=jnp.float32, tile_h=16))
    assert jnp.allclose(out2, ref2, atol=1e-4, rtol=1e-4), \
        float(jnp.max(jnp.abs(out2 - ref2)))

    # 4) Lane-dense-W path: W=48 padded internally to 128 and cropped back.
    W3 = 48
    x3 = jax.random.normal(k_x, (B, Cin, H, W3), dtype=jnp.float32)
    ref3 = _reference_coordconv(x3, w_ext, bias)
    out3 = jax.block_until_ready(
        coordconv_net_forward(x3, w_ext, bias, out_dtype=jnp.float32,
                              ensure_lane_dense_w=True))
    assert out3.shape == (B, Cout, H, W3), out3.shape
    assert jnp.allclose(out3, ref3, atol=1e-4, rtol=1e-4), \
        float(jnp.max(jnp.abs(out3 - ref3)))

    # 5) Native bf16 input (no wrapper-side cast), bf16 output.
    out_bf16_in = jax.block_until_ready(
        coordconv_net_forward(x.astype(jnp.bfloat16), w_ext, bias))
    err5 = float(jnp.max(jnp.abs(out_bf16_in.astype(jnp.float32) - ref)))
    assert err5 < 6e-2, err5

    print("KERNEL_OK")
</pallas_src>

<mosaic_0001>
module attributes {stable_mosaic.version = 11 : i64} {
  func.func @_coordconv_kernel(%arg0: i32, %arg1: i32, %arg2: memref<1x1x16x16xf32, #tpu.memory_space<vmem>>, %arg3: memref<192xf32, #tpu.memory_space<smem>>, %arg4: memref<64xf32, #tpu.memory_space<smem>>, %arg5: memref<1x64x16x16xbf16, #tpu.memory_space<vmem>>) attributes {dimension_semantics = [#tpu.dimension_semantics<parallel>, #tpu.dimension_semantics<parallel>], iteration_bounds = array<i64: 1, 2>, scalar_prefetch = 0 : i64, scratch_operands = 0 : i64, tpu.core_type = #tpu.core_type<tc>, window_params = [{transform_indices = @transform_0, window_bounds = array<i64: 1, 1, 16, 16>}, {transform_indices = @transform_1, window_bounds = array<i64: 192>}, {transform_indices = @transform_2, window_bounds = array<i64: 64>}, {transform_indices = @transform_3, window_bounds = array<i64: 1, 64, 16, 16>}]} {
    %c0 = arith.constant 0 : index
    %c0_0 = arith.constant 0 : index
    %c0_1 = arith.constant 0 : index
    %c0_2 = arith.constant 0 : index
    %0 = vector.load %arg2[%c0, %c0_0, %c0_1, %c0_2] : memref<1x1x16x16xf32, #tpu.memory_space<vmem>>, vector<1x1x16x16xf32>
    %1 = vector.shape_cast %0 : vector<1x1x16x16xf32> to vector<16x16xf32>
    %c16_i32 = arith.constant 16 : i32
    %2 = arith.muli %arg0, %c16_i32 : i32
    %3 = arith.sitofp %2 : i32 to f32
    %4 = tpu.iota {dimensions = array<i32: 0>} : vector<16x1xi32>
    %5 = arith.sitofp %4 : vector<16x1xi32> to vector<16x1xf32>
    %6 = vector.broadcast %3 : f32 to vector<16x1xf32>
    %7 = arith.addf %5, %6 : vector<16x1xf32>
    %8 = tpu.iota {dimensions = array<i32: 1>} : vector<1x16xi32>
    %9 = arith.sitofp %8 : vector<1x16xi32> to vector<1x16xf32>
    %c1 = arith.constant 1 : index
    %10 = memref.load %arg3[%c1] : memref<192xf32, #tpu.memory_space<smem>>
    %11 = vector.broadcast %10 : f32 to vector<16x1xf32>
    %12 = arith.mulf %11, %7 : vector<16x1xf32>
    %c2 = arith.constant 2 : index
    %13 = memref.load %arg3[%c2] : memref<192xf32, #tpu.memory_space<smem>>
    %14 = vector.broadcast %13 : f32 to vector<1x16xf32>
    %15 = arith.mulf %14, %9 : vector<1x16xf32>
    %c0_3 = arith.constant 0 : index
    %16 = memref.load %arg4[%c0_3] : memref<64xf32, #tpu.memory_space<smem>>
    %17 = vector.broadcast %16 : f32 to vector<1x16xf32>
    %18 = arith.addf %15, %17 : vector<1x16xf32>
    %c0_4 = arith.constant 0 : index
    %19 = memref.load %arg3[%c0_4] : memref<192xf32, #tpu.memory_space<smem>>
    %20 = vector.broadcast %19 : f32 to vector<16x16xf32>
    %21 = arith.mulf %20, %1 : vector<16x16xf32>
    %22 = vector.broadcast %12 : vector<16x1xf32> to vector<16x16xf32>
    %23 = arith.addf %21, %22 : vector<16x16xf32>
    %24 = vector.broadcast %18 : vector<1x16xf32> to vector<16x16xf32>
    %25 = arith.addf %23, %24 : vector<16x16xf32>
    %26 = arith.truncf %25 : vector<16x16xf32> to vector<16x16xbf16>
    %c0_5 = arith.constant 0 : index
    %c0_6 = arith.constant 0 : index
    %c0_7 = arith.constant 0 : index
    %c0_8 = arith.constant 0 : index
    %27 = vector.load %arg5[%c0_5, %c0_6, %c0_7, %c0_8] : memref<1x64x16x16xbf16, #tpu.memory_space<vmem>>, vector<1x1x16x16xbf16>
    %28 = vector.shape_cast %27 : vector<1x1x16x16xbf16> to vector<16x16xbf16>
    %29 = vector.shape_cast %26 : vector<16x16xbf16> to vector<1x1x16x16xbf16>
    tpu.vector_store %arg5[%c0_5, %c0_6, %c0_7, %c0_8], %29 {strides = array<i32>} : memref<1x64x16x16xbf16, #tpu.memory_space<vmem>>, vector<1x1x16x16xbf16>,
    %c4 = arith.constant 4 : index
    %30 = memref.load %arg3[%c4] : memref<192xf32, #tpu.memory_space<smem>>
    %31 = vector.broadcast %30 : f32 to vector<16x1xf32>
    %32 = arith.mulf %31, %7 : vector<16x1xf32>
    %c5 = arith.constant 5 : index
    %33 = memref.load %arg3[%c5] : memref<192xf32, #tpu.memory_space<smem>>
    %34 = vector.broadcast %33 : f32 to vector<1x16xf32>
    %35 = arith.mulf %34, %9 : vector<1x16xf32>
    %c1_9 = arith.constant 1 : index
    %36 = memref.load %arg4[%c1_9] : memref<64xf32, #tpu.memory_space<smem>>
    %37 = vector.broadcast %36 : f32 to vector<1x16xf32>
    %38 = arith.addf %35, %37 : vector<1x16xf32>
    %c3 = arith.constant 3 : index
    %39 = memref.load %arg3[%c3] : memref<192xf32, #tpu.memory_space<smem>>
    %40 = vector.broadcast %39 : f32 to vector<16x16xf32>
    %41 = arith.mulf %40, %1 : vector<16x16xf32>
    %42 = vector.broadcast %32 : vector<16x1xf32> to vector<16x16xf32>
    %43 = arith.addf %41, %42 : vector<16x16xf32>
    %44 = vector.broadcast %38 : vector<1x16xf32> to vector<16x16xf32>
    %45 = arith.addf %43, %44 : vector<16x16xf32>
    %46 = arith.truncf %45 : vector<16x16xf32> to vector<16x16xbf16>
    %c0_10 = arith.constant 0 : index
    %c1_11 = arith.constant 1 : index
    %c0_12 = arith.constant 0 : index
    %c0_13 = arith.constant 0 : index
    %47 = vector.load %arg5[%c0_10, %c1_11, %c0_12, %c0_13] : memref<1x64x16x16xbf16, #tpu.memory_space<vmem>>, vector<1x1x16x16xbf16>
    %48 = vector.shape_cast %47 : vector<1x1x16x16xbf16> to vector<16x16xbf16>
    %49 = vector.shape_cast %46 : vector<16x16xbf16> to vector<1x1x16x16xbf16>
    tpu.vector_store %arg5[%c0_10, %c1_11, %c0_12, %c0_13], %49 {strides = array<i32>} : memref<1x64x16x16xbf16, #tpu.memory_space<vmem>>, vector<1x1x16x16xbf16>,
    %c7 = arith.constant 7 : index
    %50 = memref.load %arg3[%c7] : memref<192xf32, #tpu.memory_space<smem>>
    %51 = vector.broadcast %50 : f32 to vector<16x1xf32>
    %52 = arith.mulf %51, %7 : vector<16x1xf32>
    %c8 = arith.constant 8 : index
    %53 = memref.load %arg3[%c8] : memref<192xf32, #tpu.memory_space<smem>>
    %54 = vector.broadcast %53 : f32 to vector<1x16xf32>
    %55 = arith.mulf %54, %9 : vector<1x16xf32>
    %c2_14 = arith.constant 2 : index
    %56 = memref.load %arg4[%c2_14] : memref<64xf32, #tpu.memory_space<smem>>
    %57 = vector.broadcast %56 : f32 to vector<1x16xf32>
    %58 = arith.addf %55, %57 : vector<1x16xf32>
    %c6 = arith.constant 6 : index
    %59 = memref.load %arg3[%c6] : memref<192xf32, #tpu.memory_space<smem>>
    %60 = vector.broadcast %59 : f32 to vector<16x16xf32>
    %61 = arith.mulf %60, %1 : vector<16x16xf32>
    %62 = vector.broadcast %52 : vector<16x1xf32> to vector<16x16xf32>
    %63 = arith.addf %61, %62 : vector<16x16xf32>
    %64 = vector.broadcast %58 : vector<1x16xf32> to vector<16x16xf32>
    %65 = arith.addf %63, %64 : vector<16x16xf32>
    %66 = arith.truncf %65 : vector<16x16xf32> to vector<16x16xbf16>
    %c0_15 = arith.constant 0 : index
    %c2_16 = arith.constant 2 : index
    %c0_17 = arith.constant 0 : index
    %c0_18 = arith.constant 0 : index
    %67 = vector.load %arg5[%c0_15, %c2_16, %c0_17, %c0_18] : memref<1x64x16x16xbf16, #tpu.memory_space<vmem>>, vector<1x1x16x16xbf16>
    %68 = vector.shape_cast %67 : vector<1x1x16x16xbf16> to vector<16x16xbf16>
    %69 = vector.shape_cast %66 : vector<16x16xbf16> to vector<1x1x16x16xbf16>
    tpu.vector_store %arg5[%c0_15, %c2_16, %c0_17, %c0_18], %69 {strides = array<i32>} : memref<1x64x16x16xbf16, #tpu.memory_space<vmem>>, vector<1x1x16x16xbf16>,
    %c10 = arith.constant 10 : index
    %70 = memref.load %arg3[%c10] : memref<192xf32, #tpu.memory_space<smem>>
    %71 = vector.broadcast %70 : f32 to vector<16x1xf32>
    %72 = arith.mulf %71, %7 : vector<16x1xf32>
    %c11 = arith.constant 11 : index
    %73 = memref.load %arg3[%c11] : memref<192xf32, #tpu.memory_space<smem>>
    %74 = vector.broadcast %73 : f32 to vector<1x16xf32>
    %75 = arith.mulf %74, %9 : vector<1x16xf32>
    %c3_19 = arith.constant 3 : index
    %76 = memref.load %arg4[%c3_19] : memref<64xf32, #tpu.memory_space<smem>>
    %77 = vector.broadcast %76 : f32 to vector<1x16xf32>
    %78 = arith.addf %75, %77 : vector<1x16xf32>
    %c9 = arith.constant 9 : index
    %79 = memref.load %arg3[%c9] : memref<192xf32, #tpu.memory_space<smem>>
    %80 = vector.broadcast %79 : f32 to vector<16x16xf32>
    %81 = arith.mulf %80, %1 : vector<16x16xf32>
    %82 = vector.broadcast %72 : vector<16x1xf32> to vector<16x16xf32>
    %83 = arith.addf %81, %82 : vector<16x16xf32>
    %84 = vector.broadcast %78 : vector<1x16xf32> to vector<16x16xf32>
    %85 = arith.addf %83, %84 : vector<16x16xf32>
    %86 = arith.truncf %85 : vector<16x16xf32> to vector<16x16xbf16>
    %c0_20 = arith.constant 0 : index
    %c3_21 = arith.constant 3 : index
    %c0_22 = arith.constant 0 : index
    %c0_23 = arith.constant 0 : index
    %87 = vector.load %arg5[%c0_20, %c3_21, %c0_22, %c0_23] : memref<1x64x16x16xbf16, #tpu.memory_space<vmem>>, vector<1x1x16x16xbf16>
    %88 = vector.shape_cast %87 : vector<1x1x16x16xbf16> to vector<16x16xbf16>
    %89 = vector.shape_cast %86 : vector<16x16xbf16> to vector<1x1x16x16xbf16>
    tpu.vector_store %arg5[%c0_20, %c3_21, %c0_22, %c0_23], %89 {strides = array<i32>} : memref<1x64x16x16xbf16, #tpu.memory_space<vmem>>, vector<1x1x16x16xbf16>,
    %c13 = arith.constant 13 : index
    %90 = memref.load %arg3[%c13] : memref<192xf32, #tpu.memory_space<smem>>
    %91 = vector.broadcast %90 : f32 to vector<16x1xf32>
    %92 = arith.mulf %91, %7 : vector<16x1xf32>
    %c14 = arith.constant 14 : index
    %93 = memref.load %arg3[%c14] : memref<192xf32, #tpu.memory_space<smem>>
    %94 = vector.broadcast %93 : f32 to vector<1x16xf32>
    %95 = arith.mulf %94, %9 : vector<1x16xf32>
    %c4_24 = arith.constant 4 : index
    %96 = memref.load %arg4[%c4_24] : memref<64xf32, #tpu.memory_space<smem>>
    %97 = vector.broadcast %96 : f32 to vector<1x16xf32>
    %98 = arith.addf %95, %97 : vector<1x16xf32>
    %c12 = arith.constant 12 : index
    %99 = memref.load %arg3[%c12] : memref<192xf32, #tpu.memory_space<smem>>
    %100 = vector.broadcast %99 : f32 to vector<16x16xf32>
    %101 = arith.mulf %100, %1 : vector<16x16xf32>
    %102 = vector.broadcast %92 : vector<16x1xf32> to vector<16x16xf32>
    %103 = arith.addf %101, %102 : vector<16x16xf32>
    %104 = vector.broadcast %98 : vector<1x16xf32> to vector<16x16xf32>
    %105 = arith.addf %103, %104 : vector<16x16xf32>
    %106 = arith.truncf %105 : vector<16x16xf32> to vector<16x16xbf16>
    %c0_25 = arith.constant 0 : index
    %c4_26 = arith.constant 4 : index
    %c0_27 = arith.constant 0 : index
    %c0_28 = arith.constant 0 : index
    %107 = vector.load %arg5[%c0_25, %c4_26, %c0_27, %c0_28] : memref<1x64x16x16xbf16, #tpu.memory_space<vmem>>, vector<1x1x16x16xbf16>
    %108 = vector.shape_cast %107 : vector<1x1x16x16xbf16> to vector<16x16xbf16>
    %109 = vector.shape_cast %106 : vector<16x16xbf16> to vector<1x1x16x16xbf16>
    tpu.vector_store %arg5[%c0_25, %c4_26, %c0_27, %c0_28], %109 {strides = array<i32>} : memref<1x64x16x16xbf16, #tpu.memory_space<vmem>>, vector<1x1x16x16xbf16>,
    %c16 = arith.constant 16 : index
    %110 = memref.load %arg3[%c16] : memref<192xf32, #tpu.memory_space<smem>>
    %111 = vector.broadcast %110 : f32 to vector<16x1xf32>
    %112 = arith.mulf %111, %7 : vector<16x1xf32>
    %c17 = arith.constant 17 : index
    %113 = memref.load %arg3[%c17] : memref<192xf32, #tpu.memory_space<smem>>
    %114 = vector.broadcast %113 : f32 to vector<1x16xf32>
    %115 = arith.mulf %114, %9 : vector<1x16xf32>
    %c5_29 = arith.constant 5 : index
    %116 = memref.load %arg4[%c5_29] : memref<64xf32, #tpu.memory_space<smem>>
    %117 = vector.broadcast %116 : f32 to vector<1x16xf32>
    %118 = arith.addf %115, %117 : vector<1x16xf32>
    %c15 = arith.constant 15 : index
    %119 = memref.load %arg3[%c15] : memref<192xf32, #tpu.memory_space<smem>>
    %120 = vector.broadcast %119 : f32 to vector<16x16xf32>
    %121 = arith.mulf %120, %1 : vector<16x16xf32>
    %122 = vector.broadcast %112 : vector<16x1xf32> to vector<16x16xf32>
    %123 = arith.addf %121, %122 : vector<16x16xf32>
    %124 = vector.broadcast %118 : vector<1x16xf32> to vector<16x16xf32>
    %125 = arith.addf %123, %124 : vector<16x16xf32>
    %126 = arith.truncf %125 : vector<16x16xf32> to vector<16x16xbf16>
    %c0_30 = arith.constant 0 : index
    %c5_31 = arith.constant 5 : index
    %c0_32 = arith.constant 0 : index
    %c0_33 = arith.constant 0 : index
    %127 = vector.load %arg5[%c0_30, %c5_31, %c0_32, %c0_33] : memref<1x64x16x16xbf16, #tpu.memory_space<vmem>>, vector<1x1x16x16xbf16>
    %128 = vector.shape_cast %127 : vector<1x1x16x16xbf16> to vector<16x16xbf16>
    %129 = vector.shape_cast %126 : vector<16x16xbf16> to vector<1x1x16x16xbf16>
    tpu.vector_store %arg5[%c0_30, %c5_31, %c0_32, %c0_33], %129 {strides = array<i32>} : memref<1x64x16x16xbf16, #tpu.memory_space<vmem>>, vector<1x1x16x16xbf16>,
    %c19 = arith.constant 19 : index
    %130 = memref.load %arg3[%c19] : memref<192xf32, #tpu.memory_space<smem>>
    %131 = vector.broadcast %130 : f32 to vector<16x1xf32>
    %132 = arith.mulf %131, %7 : vector<16x1xf32>
    %c20 = arith.constant 20 : index
    %133 = memref.load %arg3[%c20] : memref<192xf32, #tpu.memory_space<smem>>
    %134 = vector.broadcast %133 : f32 to vector<1x16xf32>
    %135 = arith.mulf %134, %9 : vector<1x16xf32>
    %c6_34 = arith.constant 6 : index
    %136 = memref.load %arg4[%c6_34] : memref<64xf32, #tpu.memory_space<smem>>
    %137 = vector.broadcast %136 : f32 to vector<1x16xf32>
    %138 = arith.addf %135, %137 : vector<1x16xf32>
    %c18 = arith.constant 18 : index
    %139 = memref.load %arg3[%c18] : memref<192xf32, #tpu.memory_space<smem>>
    %140 = vector.broadcast %139 : f32 to vector<16x16xf32>
    %141 = arith.mulf %140, %1 : vector<16x16xf32>
    %142 = vector.broadcast %132 : vector<16x1xf32> to vector<16x16xf32>
    %143 = arith.addf %141, %142 : vector<16x16xf32>
    %144 = vector.broadcast %138 : vector<1x16xf32> to vector<16x16xf32>
    %145 = arith.addf %143, %144 : vector<16x16xf32>
    %146 = arith.truncf %145 : vector<16x16xf32> to vector<16x16xbf16>
    %c0_35 = arith.constant 0 : index
    %c6_36 = arith.constant 6 : index
    %c0_37 = arith.constant 0 : index
    %c0_38 = arith.constant 0 : index
    %147 = vector.load %arg5[%c0_35, %c6_36, %c0_37, %c0_38] : memref<1x64x16x16xbf16, #tpu.memory_space<vmem>>, vector<1x1x16x16xbf16>
    %148 = vector.shape_cast %147 : vector<1x1x16x16xbf16> to vector<16x16xbf16>
    %149 = vector.shape_cast %146 : vector<16x16xbf16> to vector<1x1x16x16xbf16>
    tpu.vector_store %arg5[%c0_35, %c6_36, %c0_37, %c0_38], %149 {strides = array<i32>} : memref<1x64x16x16xbf16, #tpu.memory_space<vmem>>, vector<1x1x16x16xbf16>,
    %c22 = arith.constant 22 : index
    %150 = memref.load %arg3[%c22] : memref<192xf32, #tpu.memory_space<smem>>
    %151 = vector.broadcast %150 : f32 to vector<16x1xf32>
    %152 = arith.mulf %151, %7 : vector<16x1xf32>
    %c23 = arith.constant 23 : index
    %153 = memref.load %arg3[%c23] : memref<192xf32, #tpu.memory_space<smem>>
    %154 = vector.broadcast %153 : f32 to vector<1x16xf32>
    %155 = arith.mulf %154, %9 : vector<1x16xf32>
    %c7_39 = arith.constant 7 : index
    %156 = memref.load %arg4[%c7_39] : memref<64xf32, #tpu.memory_space<smem>>
    %157 = vector.broadcast %156 : f32 to vector<1x16xf32>
    %158 = arith.addf %155, %157 : vector<1x16xf32>
    %c21 = arith.constant 21 : index
    %159 = memref.load %arg3[%c21] : memref<192xf32, #tpu.memory_space<smem>>
    %160 = vector.broadcast %159 : f32 to vector<16x16xf32>
    %161 = arith.mulf %160, %1 : vector<16x16xf32>
    %162 = vector.broadcast %152 : vector<16x1xf32> to vector<16x16xf32>
    %163 = arith.addf %161, %162 : vector<16x16xf32>
    %164 = vector.broadcast %158 : vector<1x16xf32> to vector<16x16xf32>
    %165 = arith.addf %163, %164 : vector<16x16xf32>
    %166 = arith.truncf %165 : vector<16x16xf32> to vector<16x16xbf16>
    %c0_40 = arith.constant 0 : index
    %c7_41 = arith.constant 7 : index
    %c0_42 = arith.constant 0 : index
    %c0_43 = arith.constant 0 : index
    %167 = vector.load %arg5[%c0_40, %c7_41, %c0_42, %c0_43] : memref<1x64x16x16xbf16, #tpu.memory_space<vmem>>, vector<1x1x16x16xbf16>
    %168 = vector.shape_cast %167 : vector<1x1x16x16xbf16> to vector<16x16xbf16>
    %169 = vector.shape_cast %166 : vector<16x16xbf16> to vector<1x1x16x16xbf16>
    tpu.vector_store %arg5[%c0_40, %c7_41, %c0_42, %c0_43], %169 {strides = array<i32>} : memref<1x64x16x16xbf16, #tpu.memory_space<vmem>>, vector<1x1x16x16xbf16>,
    %c25 = arith.constant 25 : index
    %170 = memref.load %arg3[%c25] : memref<192xf32, #tpu.memory_space<smem>>
    %171 = vector.broadcast %170 : f32 to vector<16x1xf32>
    %172 = arith.mulf %171, %7 : vector<16x1xf32>
    %c26 = arith.constant 26 : index
    %173 = memref.load %arg3[%c26] : memref<192xf32, #tpu.memory_space<smem>>
    %174 = vector.broadcast %173 : f32 to vector<1x16xf32>
    %175 = arith.mulf %174, %9 : vector<1x16xf32>
    %c8_44 = arith.constant 8 : index
    %176 = memref.load %arg4[%c8_44] : memref<64xf32, #tpu.memory_space<smem>>
    %177 = vector.broadcast %176 : f32 to vector<1x16xf32>
    %178 = arith.addf %175, %177 : vector<1x16xf32>
    %c24 = arith.constant 24 : index
    %179 = memref.load %arg3[%c24] : memref<192xf32, #tpu.memory_space<smem>>
    %180 = vector.broadcast %179 : f32 to vector<16x16xf32>
    %181 = arith.mulf %180, %1 : vector<16x16xf32>
    %182 = vector.broadcast %172 : vector<16x1xf32> to vector<16x16xf32>
    %183 = arith.addf %181, %182 : vector<16x16xf32>
    %184 = vector.broadcast %178 : vector<1x16xf32> to vector<16x16xf32>
    %185 = arith.addf %183, %184 : vector<16x16xf32>
    %186 = arith.truncf %185 : vector<16x16xf32> to vector<16x16xbf16>
    %c0_45 = arith.constant 0 : index
    %c8_46 = arith.constant 8 : index
    %c0_47 = arith.constant 0 : index
    %c0_48 = arith.constant 0 : index
    %187 = vector.load %arg5[%c0_45, %c8_46, %c0_47, %c0_48] : memref<1x64x16x16xbf16, #tpu.memory_space<vmem>>, vector<1x1x16x16xbf16>
    %188 = vector.shape_cast %187 : vector<1x1x16x16xbf16> to vector<16x16xbf16>
    %189 = vector.shape_cast %186 : vector<16x16xbf16> to vector<1x1x16x16xbf16>
    tpu.vector_store %arg5[%c0_45, %c8_46, %c0_47, %c0_48], %189 {strides = array<i32>} : memref<1x64x16x16xbf16, #tpu.memory_space<vmem>>, vector<1x1x16x16xbf16>,
    %c28 = arith.constant 28 : index
    %190 = memref.load %arg3[%c28] : memref<192xf32, #tpu.memory_space<smem>>
    %191 = vector.broadcast %190 : f32 to vector<16x1xf32>
    %192 = arith.mulf %191, %7 : vector<16x1xf32>
    %c29 = arith.constant 29 : index
    %193 = memref.load %arg3[%c29] : memref<192xf32, #tpu.memory_space<smem>>
    %194 = vector.broadcast %193 : f32 to vector<1x16xf32>
    %195 = arith.mulf %194, %9 : vector<1x16xf32>
    %c9_49 = arith.constant 9 : index
    %196 = memref.load %arg4[%c9_49] : memref<64xf32, #tpu.memory_space<smem>>
    %197 = vector.broadcast %196 : f32 to vector<1x16xf32>
    %198 = arith.addf %195, %197 : vector<1x16xf32>
    %c27 = arith.constant 27 : index
    %199 = memref.load %arg3[%c27] : memref<192xf32, #tpu.memory_space<smem>>
    %200 = vector.broadcast %199 : f32 to vector<16x16xf32>
    %201 = arith.mulf %200, %1 : vector<16x16xf32>
    %202 = vector.broadcast %192 : vector<16x1xf32> to vector<16x16xf32>
    %203 = arith.addf %201, %202 : vector<16x16xf32>
    %204 = vector.broadcast %198 : vector<1x16xf32> to vector<16x16xf32>
    %205 = arith.addf %203, %204 : vector<16x16xf32>
    %206 = arith.truncf %205 : vector<16x16xf32> to vector<16x16xbf16>
    %c0_50 = arith.constant 0 : index
    %c9_51 = arith.constant 9 : index
    %c0_52 = arith.constant 0 : index
    %c0_53 = arith.constant 0 : index
    %207 = vector.load %arg5[%c0_50, %c9_51, %c0_52, %c0_53] : memref<1x64x16x16xbf16, #tpu.memory_space<vmem>>, vector<1x1x16x16xbf16>
    %208 = vector.shape_cast %207 : vector<1x1x16x16xbf16> to vector<16x16xbf16>
    %209 = vector.shape_cast %206 : vector<16x16xbf16> to vector<1x1x16x16xbf16>
    tpu.vector_store %arg5[%c0_50, %c9_51, %c0_52, %c0_53], %209 {strides = array<i32>} : memref<1x64x16x16xbf16, #tpu.memory_space<vmem>>, vector<1x1x16x16xbf16>,
    %c31 = arith.constant 31 : index
    %210 = memref.load %arg3[%c31] : memref<192xf32, #tpu.memory_space<smem>>
    %211 = vector.broadcast %210 : f32 to vector<16x1xf32>
    %212 = arith.mulf %211, %7 : vector<16x1xf32>
    %c32 = arith.constant 32 : index
    %213 = memref.load %arg3[%c32] : memref<192xf32, #tpu.memory_space<smem>>
    %214 = vector.broadcast %213 : f32 to vector<1x16xf32>
    %215 = arith.mulf %214, %9 : vector<1x16xf32>
    %c10_54 = arith.constant 10 : index
    %216 = memref.load %arg4[%c10_54] : memref<64xf32, #tpu.memory_space<smem>>
    %217 = vector.broadcast %216 : f32 to vector<1x16xf32>
    %218 = arith.addf %215, %217 : vector<1x16xf32>
    %c30 = arith.constant 30 : index
    %219 = memref.load %arg3[%c30] : memref<192xf32, #tpu.memory_space<smem>>
    %220 = vector.broadcast %219 : f32 to vector<16x16xf32>
    %221 = arith.mulf %220, %1 : vector<16x16xf32>
    %222 = vector.broadcast %212 : vector<16x1xf32> to vector<16x16xf32>
    %223 = arith.addf %221, %222 : vector<16x16xf32>
    %224 = vector.broadcast %218 : vector<1x16xf32> to vector<16x16xf32>
    %225 = arith.addf %223, %224 : vector<16x16xf32>
    %226 = arith.truncf %225 : vector<16x16xf32> to vector<16x16xbf16>
    %c0_55 = arith.constant 0 : index
    %c10_56 = arith.constant 10 : index
    %c0_57 = arith.constant 0 : index
    %c0_58 = arith.constant 0 : index
    %227 = vector.load %arg5[%c0_55, %c10_56, %c0_57, %c0_58] : memref<1x64x16x16xbf16, #tpu.memory_space<vmem>>, vector<1x1x16x16xbf16>
    %228 = vector.shape_cast %227 : vector<1x1x16x16xbf16> to vector<16x16xbf16>
    %229 = vector.shape_cast %226 : vector<16x16xbf16> to vector<1x1x16x16xbf16>
    tpu.vector_store %arg5[%c0_55, %c10_56, %c0_57, %c0_58], %229 {strides = array<i32>} : memref<1x64x16x16xbf16, #tpu.memory_space<vmem>>, vector<1x1x16x16xbf16>,
    %c34 = arith.constant 34 : index
    %230 = memref.load %arg3[%c34] : memref<192xf32, #tpu.memory_space<smem>>
    %231 = vector.broadcast %230 : f32 to vector<16x1xf32>
    %232 = arith.mulf %231, %7 : vector<16x1xf32>
    %c35 = arith.constant 35 : index
    %233 = memref.load %arg3[%c35] : memref<192xf32, #tpu.memory_space<smem>>
    %234 = vector.broadcast %233 : f32 to vector<1x16xf32>
    %235 = arith.mulf %234, %9 : vector<1x16xf32>
    %c11_59 = arith.constant 11 : index
    %236 = memref.load %arg4[%c11_59] : memref<64xf32, #tpu.memory_space<smem>>
    %237 = vector.broadcast %236 : f32 to vector<1x16xf32>
    %238 = arith.addf %235, %237 : vector<1x16xf32>
    %c33 = arith.constant 33 : index
    %239 = memref.load %arg3[%c33] : memref<192xf32, #tpu.memory_space<smem>>
    %240 = vector.broadcast %239 : f32 to vector<16x16xf32>
    %241 = arith.mulf %240, %1 : vector<16x16xf32>
    %242 = vector.broadcast %232 : vector<16x1xf32> to vector<16x16xf32>
    %243 = arith.addf %241, %242 : vector<16x16xf32>
    %244 = vector.broadcast %238 : vector<1x16xf32> to vector<16x16xf32>
    %245 = arith.addf %243, %244 : vector<16x16xf32>
    %246 = arith.truncf %245 : vector<16x16xf32> to vector<16x16xbf16>
    %c0_60 = arith.constant 0 : index
    %c11_61 = arith.constant 11 : index
    %c0_62 = arith.constant 0 : index
    %c0_63 = arith.constant 0 : index
    %247 = vector.load %arg5[%c0_60, %c11_61, %c0_62, %c0_63] : memref<1x64x16x16xbf16, #tpu.memory_space<vmem>>, vector<1x1x16x16xbf16>
    %248 = vector.shape_cast %247 : vector<1x1x16x16xbf16> to vector<16x16xbf16>
    %249 = vector.shape_cast %246 : vector<16x16xbf16> to vector<1x1x16x16xbf16>
    tpu.vector_store %arg5[%c0_60, %c11_61, %c0_62, %c0_63], %249 {strides = array<i32>} : memref<1x64x16x16xbf16, #tpu.memory_space<vmem>>, vector<1x1x16x16xbf16>,
    %c37 = arith.constant 37 : index
    %250 = memref.load %arg3[%c37] : memref<192xf32, #tpu.memory_space<smem>>
    %251 = vector.broadcast %250 : f32 to vector<16x1xf32>
    %252 = arith.mulf %251, %7 : vector<16x1xf32>
    %c38 = arith.constant 38 : index
    %253 = memref.load %arg3[%c38] : memref<192xf32, #tpu.memory_space<smem>>
    %254 = vector.broadcast %253 : f32 to vector<1x16xf32>
    %255 = arith.mulf %254, %9 : vector<1x16xf32>
    %c12_64 = arith.constant 12 : index
    %256 = memref.load %arg4[%c12_64] : memref<64xf32, #tpu.memory_space<smem>>
    %257 = vector.broadcast %256 : f32 to vector<1x16xf32>
    %258 = arith.addf %255, %257 : vector<1x16xf32>
    %c36 = arith.constant 36 : index
    %259 = memref.load %arg3[%c36] : memref<192xf32, #tpu.memory_space<smem>>
    %260 = vector.broadcast %259 : f32 to vector<16x16xf32>
    %261 = arith.mulf %260, %1 : vector<16x16xf32>
    %262 = vector.broadcast %252 : vector<16x1xf32> to vector<16x16xf32>
    %263 = arith.addf %261, %262 : vector<16x16xf32>
    %264 = vector.broadcast %258 : vector<1x16xf32> to vector<16x16xf32>
    %265 = arith.addf %263, %264 : vector<16x16xf32>
    %266 = arith.truncf %265 : vector<16x16xf32> to vector<16x16xbf16>
    %c0_65 = arith.constant 0 : index
    %c12_66 = arith.constant 12 : index
    %c0_67 = arith.constant 0 : index
    %c0_68 = arith.constant 0 : index
    %267 = vector.load %arg5[%c0_65, %c12_66, %c0_67, %c0_68] : memref<1x64x16x16xbf16, #tpu.memory_space<vmem>>, vector<1x1x16x16xbf16>
    %268 = vector.shape_cast %267 : vector<1x1x16x16xbf16> to vector<16x16xbf16>
    %269 = vector.shape_cast %266 : vector<16x16xbf16> to vector<1x1x16x16xbf16>
    tpu.vector_store %arg5[%c0_65, %c12_66, %c0_67, %c0_68], %269 {strides = array<i32>} : memref<1x64x16x16xbf16, #tpu.memory_space<vmem>>, vector<1x1x16x16xbf16>,
    %c40 = arith.constant 40 : index
    %270 = memref.load %arg3[%c40] : memref<192xf32, #tpu.memory_space<smem>>
    %271 = vector.broadcast %270 : f32 to vector<16x1xf32>
    %272 = arith.mulf %271, %7 : vector<16x1xf32>
    %c41 = arith.constant 41 : index
    %273 = memref.load %arg3[%c41] : memref<192xf32, #tpu.memory_space<smem>>
    %274 = vector.broadcast %273 : f32 to vector<1x16xf32>
    %275 = arith.mulf %274, %9 : vector<1x16xf32>
    %c13_69 = arith.constant 13 : index
    %276 = memref.load %arg4[%c13_69] : memref<64xf32, #tpu.memory_space<smem>>
    %277 = vector.broadcast %276 : f32 to vector<1x16xf32>
    %278 = arith.addf %275, %277 : vector<1x16xf32>
    %c39 = arith.constant 39 : index
    %279 = memref.load %arg3[%c39] : memref<192xf32, #tpu.memory_space<smem>>
    %280 = vector.broadcast %279 : f32 to vector<16x16xf32>
    %281 = arith.mulf %280, %1 : vector<16x16xf32>
    %282 = vector.broadcast %272 : vector<16x1xf32> to vector<16x16xf32>
    %283 = arith.addf %281, %282 : vector<16x16xf32>
    %284 = vector.broadcast %278 : vector<1x16xf32> to vector<16x16xf32>
    %285 = arith.addf %283, %284 : vector<16x16xf32>
    %286 = arith.truncf %285 : vector<16x16xf32> to vector<16x16xbf16>
    %c0_70 = arith.constant 0 : index
    %c13_71 = arith.constant 13 : index
    %c0_72 = arith.constant 0 : index
    %c0_73 = arith.constant 0 : index
    %287 = vector.load %arg5[%c0_70, %c13_71, %c0_72, %c0_73] : memref<1x64x16x16xbf16, #tpu.memory_space<vmem>>, vector<1x1x16x16xbf16>
    %288 = vector.shape_cast %287 : vector<1x1x16x16xbf16> to vector<16x16xbf16>
    %289 = vector.shape_cast %286 : vector<16x16xbf16> to vector<1x1x16x16xbf16>
    tpu.vector_store %arg5[%c0_70, %c13_71, %c0_72, %c0_73], %289 {strides = array<i32>} : memref<1x64x16x16xbf16, #tpu.memory_space<vmem>>, vector<1x1x16x16xbf16>,
    %c43 = arith.constant 43 : index
    %290 = memref.load %arg3[%c43] : memref<192xf32, #tpu.memory_space<smem>>
    %291 = vector.broadcast %290 : f32 to vector<16x1xf32>
    %292 = arith.mulf %291, %7 : vector<16x1xf32>
    %c44 = arith.constant 44 : index
    %293 = memref.load %arg3[%c44] : memref<192xf32, #tpu.memory_space<smem>>
    %294 = vector.broadcast %293 : f32 to vector<1x16xf32>
    %295 = arith.mulf %294, %9 : vector<1x16xf32>
    %c14_74 = arith.constant 14 : index
    %296 = memref.load %arg4[%c14_74] : memref<64xf32, #tpu.memory_space<smem>>
    %297 = vector.broadcast %296 : f32 to vector<1x16xf32>
    %298 = arith.addf %295, %297 : vector<1x16xf32>
    %c42 = arith.constant 42 : index
    %299 = memref.load %arg3[%c42] : memref<192xf32, #tpu.memory_space<smem>>
    %300 = vector.broadcast %299 : f32 to vector<16x16xf32>
    %301 = arith.mulf %300, %1 : vector<16x16xf32>
    %302 = vector.broadcast %292 : vector<16x1xf32> to vector<16x16xf32>
    %303 = arith.addf %301, %302 : vector<16x16xf32>
    %304 = vector.broadcast %298 : vector<1x16xf32> to vector<16x16xf32>
    %305 = arith.addf %303, %304 : vector<16x16xf32>
    %306 = arith.truncf %305 : vector<16x16xf32> to vector<16x16xbf16>
    %c0_75 = arith.constant 0 : index
    %c14_76 = arith.constant 14 : index
    %c0_77 = arith.constant 0 : index
    %c0_78 = arith.constant 0 : index
    %307 = vector.load %arg5[%c0_75, %c14_76, %c0_77, %c0_78] : memref<1x64x16x16xbf16, #tpu.memory_space<vmem>>, vector<1x1x16x16xbf16>
    %308 = vector.shape_cast %307 : vector<1x1x16x16xbf16> to vector<16x16xbf16>
    %309 = vector.shape_cast %306 : vector<16x16xbf16> to vector<1x1x16x16xbf16>
    tpu.vector_store %arg5[%c0_75, %c14_76, %c0_77, %c0_78], %309 {strides = array<i32>} : memref<1x64x16x16xbf16, #tpu.memory_space<vmem>>, vector<1x1x16x16xbf16>,
    %c46 = arith.constant 46 : index
    %310 = memref.load %arg3[%c46] : memref<192xf32, #tpu.memory_space<smem>>
    %311 = vector.broadcast %310 : f32 to vector<16x1xf32>
    %312 = arith.mulf %311, %7 : vector<16x1xf32>
    %c47 = arith.constant 47 : index
    %313 = memref.load %arg3[%c47] : memref<192xf32, #tpu.memory_space<smem>>
    %314 = vector.broadcast %313 : f32 to vector<1x16xf32>
    %315 = arith.mulf %314, %9 : vector<1x16xf32>
    %c15_79 = arith.constant 15 : index
    %316 = memref.load %arg4[%c15_79] : memref<64xf32, #tpu.memory_space<smem>>
    %317 = vector.broadcast %316 : f32 to vector<1x16xf32>
    %318 = arith.addf %315, %317 : vector<1x16xf32>
    %c45 = arith.constant 45 : index
    %319 = memref.load %arg3[%c45] : memref<192xf32, #tpu.memory_space<smem>>
    %320 = vector.broadcast %319 : f32 to vector<16x16xf32>
    %321 = arith.mulf %320, %1 : vector<16x16xf32>
    %322 = vector.broadcast %312 : vector<16x1xf32> to vector<16x16xf32>
    %323 = arith.addf %321, %322 : vector<16x16xf32>
    %324 = vector.broadcast %318 : vector<1x16xf32> to vector<16x16xf32>
    %325 = arith.addf %323, %324 : vector<16x16xf32>
    %326 = arith.truncf %325 : vector<16x16xf32> to vector<16x16xbf16>
    %c0_80 = arith.constant 0 : index
    %c15_81 = arith.constant 15 : index
    %c0_82 = arith.constant 0 : index
    %c0_83 = arith.constant 0 : index
    %327 = vector.load %arg5[%c0_80, %c15_81, %c0_82, %c0_83] : memref<1x64x16x16xbf16, #tpu.memory_space<vmem>>, vector<1x1x16x16xbf16>
    %328 = vector.shape_cast %327 : vector<1x1x16x16xbf16> to vector<16x16xbf16>
    %329 = vector.shape_cast %326 : vector<16x16xbf16> to vector<1x1x16x16xbf16>
    tpu.vector_store %arg5[%c0_80, %c15_81, %c0_82, %c0_83], %329 {strides = array<i32>} : memref<1x64x16x16xbf16, #tpu.memory_space<vmem>>, vector<1x1x16x16xbf16>,
    %c49 = arith.constant 49 : index
    %330 = memref.load %arg3[%c49] : memref<192xf32, #tpu.memory_space<smem>>
    %331 = vector.broadcast %330 : f32 to vector<16x1xf32>
    %332 = arith.mulf %331, %7 : vector<16x1xf32>
    %c50 = arith.constant 50 : index
    %333 = memref.load %arg3[%c50] : memref<192xf32, #tpu.memory_space<smem>>
    %334 = vector.broadcast %333 : f32 to vector<1x16xf32>
    %335 = arith.mulf %334, %9 : vector<1x16xf32>
    %c16_84 = arith.constant 16 : index
    %336 = memref.load %arg4[%c16_84] : memref<64xf32, #tpu.memory_space<smem>>
    %337 = vector.broadcast %336 : f32 to vector<1x16xf32>
    %338 = arith.addf %335, %337 : vector<1x16xf32>
    %c48 = arith.constant 48 : index
    %339 = memref.load %arg3[%c48] : memref<192xf32, #tpu.memory_space<smem>>
    %340 = vector.broadcast %339 : f32 to vector<16x16xf32>
    %341 = arith.mulf %340, %1 : vector<16x16xf32>
    %342 = vector.broadcast %332 : vector<16x1xf32> to vector<16x16xf32>
    %343 = arith.addf %341, %342 : vector<16x16xf32>
    %344 = vector.broadcast %338 : vector<1x16xf32> to vector<16x16xf32>
    %345 = arith.addf %343, %344 : vector<16x16xf32>
    %346 = arith.truncf %345 : vector<16x16xf32> to vector<16x16xbf16>
    %c0_85 = arith.constant 0 : index
    %c16_86 = arith.constant 16 : index
    %c0_87 = arith.constant 0 : index
    %c0_88 = arith.constant 0 : index
    %347 = vector.load %arg5[%c0_85, %c16_86, %c0_87, %c0_88] : memref<1x64x16x16xbf16, #tpu.memory_space<vmem>>, vector<1x1x16x16xbf16>
    %348 = vector.shape_cast %347 : vector<1x1x16x16xbf16> to vector<16x16xbf16>
    %349 = vector.shape_cast %346 : vector<16x16xbf16> to vector<1x1x16x16xbf16>
    tpu.vector_store %arg5[%c0_85, %c16_86, %c0_87, %c0_88], %349 {strides = array<i32>} : memref<1x64x16x16xbf16, #tpu.memory_space<vmem>>, vector<1x1x16x16xbf16>,
    %c52 = arith.constant 52 : index
    %350 = memref.load %arg3[%c52] : memref<192xf32, #tpu.memory_space<smem>>
    %351 = vector.broadcast %350 : f32 to vector<16x1xf32>
    %352 = arith.mulf %351, %7 : vector<16x1xf32>
    %c53 = arith.constant 53 : index
    %353 = memref.load %arg3[%c53] : memref<192xf32, #tpu.memory_space<smem>>
    %354 = vector.broadcast %353 : f32 to vector<1x16xf32>
    %355 = arith.mulf %354, %9 : vector<1x16xf32>
    %c17_89 = arith.constant 17 : index
    %356 = memref.load %arg4[%c17_89] : memref<64xf32, #tpu.memory_space<smem>>
    %357 = vector.broadcast %356 : f32 to vector<1x16xf32>
    %358 = arith.addf %355, %357 : vector<1x16xf32>
    %c51 = arith.constant 51 : index
    %359 = memref.load %arg3[%c51] : memref<192xf32, #tpu.memory_space<smem>>
    %360 = vector.broadcast %359 : f32 to vector<16x16xf32>
    %361 = arith.mulf %360, %1 : vector<16x16xf32>
    %362 = vector.broadcast %352 : vector<16x1xf32> to vector<16x16xf32>
    %363 = arith.addf %361, %362 : vector<16x16xf32>
    %364 = vector.broadcast %358 : vector<1x16xf32> to vector<16x16xf32>
    %365 = arith.addf %363, %364 : vector<16x16xf32>
    %366 = arith.truncf %365 : vector<16x16xf32> to vector<16x16xbf16>
    %c0_90 = arith.constant 0 : index
    %c17_91 = arith.constant 17 : index
    %c0_92 = arith.constant 0 : index
    %c0_93 = arith.constant 0 : index
    %367 = vector.load %arg5[%c0_90, %c17_91, %c0_92, %c0_93] : memref<1x64x16x16xbf16, #tpu.memory_space<vmem>>, vector<1x1x16x16xbf16>
    %368 = vector.shape_cast %367 : vector<1x1x16x16xbf16> to vector<16x16xbf16>
    %369 = vector.shape_cast %366 : vector<16x16xbf16> to vector<1x1x16x16xbf16>
    tpu.vector_store %arg5[%c0_90, %c17_91, %c0_92, %c0_93], %369 {strides = array<i32>} : memref<1x64x16x16xbf16, #tpu.memory_space<vmem>>, vector<1x1x16x16xbf16>,
    %c55 = arith.constant 55 : index
    %370 = memref.load %arg3[%c55] : memref<192xf32, #tpu.memory_space<smem>>
    %371 = vector.broadcast %370 : f32 to vector<16x1xf32>
    %372 = arith.mulf %371, %7 : vector<16x1xf32>
    %c56 = arith.constant 56 : index
    %373 = memref.load %arg3[%c56] : memref<192xf32, #tpu.memory_space<smem>>
    %374 = vector.broadcast %373 : f32 to vector<1x16xf32>
    %375 = arith.mulf %374, %9 : vector<1x16xf32>
    %c18_94 = arith.constant 18 : index
    %376 = memref.load %arg4[%c18_94] : memref<64xf32, #tpu.memory_space<smem>>
    %377 = vector.broadcast %376 : f32 to vector<1x16xf32>
    %378 = arith.addf %375, %377 : vector<1x16xf32>
    %c54 = arith.constant 54 : index
    %379 = memref.load %arg3[%c54] : memref<192xf32, #tpu.memory_space<smem>>
    %380 = vector.broadcast %379 : f32 to vector<16x16xf32>
    %381 = arith.mulf %380, %1 : vector<16x16xf32>
    %382 = vector.broadcast %372 : vector<16x1xf32> to vector<16x16xf32>
    %383 = arith.addf %381, %382 : vector<16x16xf32>
    %384 = vector.broadcast %378 : vector<1x16xf32> to vector<16x16xf32>
    %385 = arith.addf %383, %384 : vector<16x16xf32>
    %386 = arith.truncf %385 : vector<16x16xf32> to vector<16x16xbf16>
    %c0_95 = arith.constant 0 : index
    %c18_96 = arith.constant 18 : index
    %c0_97 = arith.constant 0 : index
    %c0_98 = arith.constant 0 : index
    %387 = vector.load %arg5[%c0_95, %c18_96, %c0_97, %c0_98] : memref<1x64x16x16xbf16, #tpu.memory_space<vmem>>, vector<1x1x16x16xbf16>
    %388 = vector.shape_cast %387 : vector<1x1x16x16xbf16> to vector<16x16xbf16>
    %389 = vector.shape_cast %386 : vector<16x16xbf16> to vector<1x1x16x16xbf16>
    tpu.vector_store %arg5[%c0_95, %c18_96, %c0_97, %c0_98], %389 {strides = array<i32>} : memref<1x64x16x16xbf16, #tpu.memory_space<vmem>>, vector<1x1x16x16xbf16>,
    %c58 = arith.constant 58 : index
    %390 = memref.load %arg3[%c58] : memref<192xf32, #tpu.memory_space<smem>>
    %391 = vector.broadcast %390 : f32 to vector<16x1xf32>
    %392 = arith.mulf %391, %7 : vector<16x1xf32>
    %c59 = arith.constant 59 : index
    %393 = memref.load %arg3[%c59] : memref<192xf32, #tpu.memory_space<smem>>
    %394 = vector.broadcast %393 : f32 to vector<1x16xf32>
    %395 = arith.mulf %394, %9 : vector<1x16xf32>
    %c19_99 = arith.constant 19 : index
    %396 = memref.load %arg4[%c19_99] : memref<64xf32, #tpu.memory_space<smem>>
    %397 = vector.broadcast %396 : f32 to vector<1x16xf32>
    %398 = arith.addf %395, %397 : vector<1x16xf32>
    %c57 = arith.constant 57 : index
    %399 = memref.load %arg3[%c57] : memref<192xf32, #tpu.memory_space<smem>>
    %400 = vector.broadcast %399 : f32 to vector<16x16xf32>
    %401 = arith.mulf %400, %1 : vector<16x16xf32>
    %402 = vector.broadcast %392 : vector<16x1xf32> to vector<16x16xf32>
    %403 = arith.addf %401, %402 : vector<16x16xf32>
    %404 = vector.broadcast %398 : vector<1x16xf32> to vector<16x16xf32>
    %405 = arith.addf %403, %404 : vector<16x16xf32>
    %406 = arith.truncf %405 : vector<16x16xf32> to vector<16x16xbf16>
    %c0_100 = arith.constant 0 : index
    %c19_101 = arith.constant 19 : index
    %c0_102 = arith.constant 0 : index
    %c0_103 = arith.constant 0 : index
    %407 = vector.load %arg5[%c0_100, %c19_101, %c0_102, %c0_103] : memref<1x64x16x16xbf16, #tpu.memory_space<vmem>>, vector<1x1x16x16xbf16>
    %408 = vector.shape_cast %407 : vector<1x1x16x16xbf16> to vector<16x16xbf16>
    %409 = vector.shape_cast %406 : vector<16x16xbf16> to vector<1x1x16x16xbf16>
    tpu.vector_store %arg5[%c0_100, %c19_101, %c0_102, %c0_103], %409 {strides = array<i32>} : memref<1x64x16x16xbf16, #tpu.memory_space<vmem>>, vector<1x1x16x16xbf16>,
    %c61 = arith.constant 61 : index
    %410 = memref.load %arg3[%c61] : memref<192xf32, #tpu.memory_space<smem>>
    %411 = vector.broadcast %410 : f32 to vector<16x1xf32>
    %412 = arith.mulf %411, %7 : vector<16x1xf32>
    %c62 = arith.constant 62 : index
    %413 = memref.load %arg3[%c62] : memref<192xf32, #tpu.memory_space<smem>>
    %414 = vector.broadcast %413 : f32 to vector<1x16xf32>
    %415 = arith.mulf %414, %9 : vector<1x16xf32>
    %c20_104 = arith.constant 20 : index
    %416 = memref.load %arg4[%c20_104] : memref<64xf32, #tpu.memory_space<smem>>
    %417 = vector.broadcast %416 : f32 to vector<1x16xf32>
    %418 = arith.addf %415, %417 : vector<1x16xf32>
    %c60 = arith.constant 60 : index
    %419 = memref.load %arg3[%c60] : memref<192xf32, #tpu.memory_space<smem>>
    %420 = vector.broadcast %419 : f32 to vector<16x16xf32>
    %421 = arith.mulf %420, %1 : vector<16x16xf32>
    %422 = vector.broadcast %412 : vector<16x1xf32> to vector<16x16xf32>
    %423 = arith.addf %421, %422 : vector<16x16xf32>
    %424 = vector.broadcast %418 : vector<1x16xf32> to vector<16x16xf32>
    %425 = arith.addf %423, %424 : vector<16x16xf32>
    %426 = arith.truncf %425 : vector<16x16xf32> to vector<16x16xbf16>
    %c0_105 = arith.constant 0 : index
    %c20_106 = arith.constant 20 : index
    %c0_107 = arith.constant 0 : index
    %c0_108 = arith.constant 0 : index
    %427 = vector.load %arg5[%c0_105, %c20_106, %c0_107, %c0_108] : memref<1x64x16x16xbf16, #tpu.memory_space<vmem>>, vector<1x1x16x16xbf16>
    %428 = vector.shape_cast %427 : vector<1x1x16x16xbf16> to vector<16x16xbf16>
    %429 = vector.shape_cast %426 : vector<16x16xbf16> to vector<1x1x16x16xbf16>
    tpu.vector_store %arg5[%c0_105, %c20_106, %c0_107, %c0_108], %429 {strides = array<i32>} : memref<1x64x16x16xbf16, #tpu.memory_space<vmem>>, vector<1x1x16x16xbf16>,
    %c64 = arith.constant 64 : index
    %430 = memref.load %arg3[%c64] : memref<192xf32, #tpu.memory_space<smem>>
    %431 = vector.broadcast %430 : f32 to vector<16x1xf32>
    %432 = arith.mulf %431, %7 : vector<16x1xf32>
    %c65 = arith.constant 65 : index
    %433 = memref.load %arg3[%c65] : memref<192xf32, #tpu.memory_space<smem>>
    %434 = vector.broadcast %433 : f32 to vector<1x16xf32>
    %435 = arith.mulf %434, %9 : vector<1x16xf32>
    %c21_109 = arith.constant 21 : index
    %436 = memref.load %arg4[%c21_109] : memref<64xf32, #tpu.memory_space<smem>>
    %437 = vector.broadcast %436 : f32 to vector<1x16xf32>
    %438 = arith.addf %435, %437 : vector<1x16xf32>
    %c63 = arith.constant 63 : index
    %439 = memref.load %arg3[%c63] : memref<192xf32, #tpu.memory_space<smem>>
    %440 = vector.broadcast %439 : f32 to vector<16x16xf32>
    %441 = arith.mulf %440, %1 : vector<16x16xf32>
    %442 = vector.broadcast %432 : vector<16x1xf32> to vector<16x16xf32>
    %443 = arith.addf %441, %442 : vector<16x16xf32>
    %444 = vector.broadcast %438 : vector<1x16xf32> to vector<16x16xf32>
    %445 = arith.addf %443, %444 : vector<16x16xf32>
    %446 = arith.truncf %445 : vector<16x16xf32> to vector<16x16xbf16>
    %c0_110 = arith.constant 0 : index
    %c21_111 = arith.constant 21 : index
    %c0_112 = arith.constant 0 : index
    %c0_113 = arith.constant 0 : index
    %447 = vector.load %arg5[%c0_110, %c21_111, %c0_112, %c0_113] : memref<1x64x16x16xbf16, #tpu.memory_space<vmem>>, vector<1x1x16x16xbf16>
    %448 = vector.shape_cast %447 : vector<1x1x16x16xbf16> to vector<16x16xbf16>
    %449 = vector.shape_cast %446 : vector<16x16xbf16> to vector<1x1x16x16xbf16>
    tpu.vector_store %arg5[%c0_110, %c21_111, %c0_112, %c0_113], %449 {strides = array<i32>} : memref<1x64x16x16xbf16, #tpu.memory_space<vmem>>, vector<1x1x16x16xbf16>,
    %c67 = arith.constant 67 : index
    %450 = memref.load %arg3[%c67] : memref<192xf32, #tpu.memory_space<smem>>
    %451 = vector.broadcast %450 : f32 to vector<16x1xf32>
    %452 = arith.mulf %451, %7 : vector<16x1xf32>
    %c68 = arith.constant 68 : index
    %453 = memref.load %arg3[%c68] : memref<192xf32, #tpu.memory_space<smem>>
    %454 = vector.broadcast %453 : f32 to vector<1x16xf32>
    %455 = arith.mulf %454, %9 : vector<1x16xf32>
    %c22_114 = arith.constant 22 : index
    %456 = memref.load %arg4[%c22_114] : memref<64xf32, #tpu.memory_space<smem>>
    %457 = vector.broadcast %456 : f32 to vector<1x16xf32>
    %458 = arith.addf %455, %457 : vector<1x16xf32>
    %c66 = arith.constant 66 : index
    %459 = memref.load %arg3[%c66] : memref<192xf32, #tpu.memory_space<smem>>
    %460 = vector.broadcast %459 : f32 to vector<16x16xf32>
    %461 = arith.mulf %460, %1 : vector<16x16xf32>
    %462 = vector.broadcast %452 : vector<16x1xf32> to vector<16x16xf32>
    %463 = arith.addf %461, %462 : vector<16x16xf32>
    %464 = vector.broadcast %458 : vector<1x16xf32> to vector<16x16xf32>
    %465 = arith.addf %463, %464 : vector<16x16xf32>
    %466 = arith.truncf %465 : vector<16x16xf32> to vector<16x16xbf16>
    %c0_115 = arith.constant 0 : index
    %c22_116 = arith.constant 22 : index
    %c0_117 = arith.constant 0 : index
    %c0_118 = arith.constant 0 : index
    %467 = vector.load %arg5[%c0_115, %c22_116, %c0_117, %c0_118] : memref<1x64x16x16xbf16, #tpu.memory_space<vmem>>, vector<1x1x16x16xbf16>
    %468 = vector.shape_cast %467 : vector<1x1x16x16xbf16> to vector<16x16xbf16>
    %469 = vector.shape_cast %466 : vector<16x16xbf16> to vector<1x1x16x16xbf16>
    tpu.vector_store %arg5[%c0_115, %c22_116, %c0_117, %c0_118], %469 {strides = array<i32>} : memref<1x64x16x16xbf16, #tpu.memory_space<vmem>>, vector<1x1x16x16xbf16>,
    %c70 = arith.constant 70 : index
    %470 = memref.load %arg3[%c70] : memref<192xf32, #tpu.memory_space<smem>>
    %471 = vector.broadcast %470 : f32 to vector<16x1xf32>
    %472 = arith.mulf %471, %7 : vector<16x1xf32>
    %c71 = arith.constant 71 : index
    %473 = memref.load %arg3[%c71] : memref<192xf32, #tpu.memory_space<smem>>
    %474 = vector.broadcast %473 : f32 to vector<1x16xf32>
    %475 = arith.mulf %474, %9 : vector<1x16xf32>
    %c23_119 = arith.constant 23 : index
    %476 = memref.load %arg4[%c23_119] : memref<64xf32, #tpu.memory_space<smem>>
    %477 = vector.broadcast %476 : f32 to vector<1x16xf32>
    %478 = arith.addf %475, %477 : vector<1x16xf32>
    %c69 = arith.constant 69 : index
    %479 = memref.load %arg3[%c69] : memref<192xf32, #tpu.memory_space<smem>>
    %480 = vector.broadcast %479 : f32 to vector<16x16xf32>
    %481 = arith.mulf %480, %1 : vector<16x16xf32>
    %482 = vector.broadcast %472 : vector<16x1xf32> to vector<16x16xf32>
    %483 = arith.addf %481, %482 : vector<16x16xf32>
    %484 = vector.broadcast %478 : vector<1x16xf32> to vector<16x16xf32>
    %485 = arith.addf %483, %484 : vector<16x16xf32>
    %486 = arith.truncf %485 : vector<16x16xf32> to vector<16x16xbf16>
    %c0_120 = arith.constant 0 : index
    %c23_121 = arith.constant 23 : index
    %c0_122 = arith.constant 0 : index
    %c0_123 = arith.constant 0 : index
    %487 = vector.load %arg5[%c0_120, %c23_121, %c0_122, %c0_123] : memref<1x64x16x16xbf16, #tpu.memory_space<vmem>>, vector<1x1x16x16xbf16>
    %488 = vector.shape_cast %487 : vector<1x1x16x16xbf16> to vector<16x16xbf16>
    %489 = vector.shape_cast %486 : vector<16x16xbf16> to vector<1x1x16x16xbf16>
    tpu.vector_store %arg5[%c0_120, %c23_121, %c0_122, %c0_123], %489 {strides = array<i32>} : memref<1x64x16x16xbf16, #tpu.memory_space<vmem>>, vector<1x1x16x16xbf16>,
    %c73 = arith.constant 73 : index
    %490 = memref.load %arg3[%c73] : memref<192xf32, #tpu.memory_space<smem>>
    %491 = vector.broadcast %490 : f32 to vector<16x1xf32>
    %492 = arith.mulf %491, %7 : vector<16x1xf32>
    %c74 = arith.constant 74 : index
    %493 = memref.load %arg3[%c74] : memref<192xf32, #tpu.memory_space<smem>>
    %494 = vector.broadcast %493 : f32 to vector<1x16xf32>
    %495 = arith.mulf %494, %9 : vector<1x16xf32>
    %c24_124 = arith.constant 24 : index
    %496 = memref.load %arg4[%c24_124] : memref<64xf32, #tpu.memory_space<smem>>
    %497 = vector.broadcast %496 : f32 to vector<1x16xf32>
    %498 = arith.addf %495, %497 : vector<1x16xf32>
    %c72 = arith.constant 72 : index
    %499 = memref.load %arg3[%c72] : memref<192xf32, #tpu.memory_space<smem>>
    %500 = vector.broadcast %499 : f32 to vector<16x16xf32>
    %501 = arith.mulf %500, %1 : vector<16x16xf32>
    %502 = vector.broadcast %492 : vector<16x1xf32> to vector<16x16xf32>
    %503 = arith.addf %501, %502 : vector<16x16xf32>
    %504 = vector.broadcast %498 : vector<1x16xf32> to vector<16x16xf32>
    %505 = arith.addf %503, %504 : vector<16x16xf32>
    %506 = arith.truncf %505 : vector<16x16xf32> to vector<16x16xbf16>
    %c0_125 = arith.constant 0 : index
    %c24_126 = arith.constant 24 : index
    %c0_127 = arith.constant 0 : index
    %c0_128 = arith.constant 0 : index
    %507 = vector.load %arg5[%c0_125, %c24_126, %c0_127, %c0_128] : memref<1x64x16x16xbf16, #tpu.memory_space<vmem>>, vector<1x1x16x16xbf16>
    %508 = vector.shape_cast %507 : vector<1x1x16x16xbf16> to vector<16x16xbf16>
    %509 = vector.shape_cast %506 : vector<16x16xbf16> to vector<1x1x16x16xbf16>
    tpu.vector_store %arg5[%c0_125, %c24_126, %c0_127, %c0_128], %509 {strides = array<i32>} : memref<1x64x16x16xbf16, #tpu.memory_space<vmem>>, vector<1x1x16x16xbf16>,
    %c76 = arith.constant 76 : index
    %510 = memref.load %arg3[%c76] : memref<192xf32, #tpu.memory_space<smem>>
    %511 = vector.broadcast %510 : f32 to vector<16x1xf32>
    %512 = arith.mulf %511, %7 : vector<16x1xf32>
    %c77 = arith.constant 77 : index
    %513 = memref.load %arg3[%c77] : memref<192xf32, #tpu.memory_space<smem>>
    %514 = vector.broadcast %513 : f32 to vector<1x16xf32>
    %515 = arith.mulf %514, %9 : vector<1x16xf32>
    %c25_129 = arith.constant 25 : index
    %516 = memref.load %arg4[%c25_129] : memref<64xf32, #tpu.memory_space<smem>>
    %517 = vector.broadcast %516 : f32 to vector<1x16xf32>
    %518 = arith.addf %515, %517 : vector<1x16xf32>
    %c75 = arith.constant 75 : index
    %519 = memref.load %arg3[%c75] : memref<192xf32, #tpu.memory_space<smem>>
    %520 = vector.broadcast %519 : f32 to vector<16x16xf32>
    %521 = arith.mulf %520, %1 : vector<16x16xf32>
    %522 = vector.broadcast %512 : vector<16x1xf32> to vector<16x16xf32>
    %523 = arith.addf %521, %522 : vector<16x16xf32>
    %524 = vector.broadcast %518 : vector<1x16xf32> to vector<16x16xf32>
    %525 = arith.addf %523, %524 : vector<16x16xf32>
    %526 = arith.truncf %525 : vector<16x16xf32> to vector<16x16xbf16>
    %c0_130 = arith.constant 0 : index
    %c25_131 = arith.constant 25 : index
    %c0_132 = arith.constant 0 : index
    %c0_133 = arith.constant 0 : index
    %527 = vector.load %arg5[%c0_130, %c25_131, %c0_132, %c0_133] : memref<1x64x16x16xbf16, #tpu.memory_space<vmem>>, vector<1x1x16x16xbf16>
    %528 = vector.shape_cast %527 : vector<1x1x16x16xbf16> to vector<16x16xbf16>
    %529 = vector.shape_cast %526 : vector<16x16xbf16> to vector<1x1x16x16xbf16>
    tpu.vector_store %arg5[%c0_130, %c25_131, %c0_132, %c0_133], %529 {strides = array<i32>} : memref<1x64x16x16xbf16, #tpu.memory_space<vmem>>, vector<1x1x16x16xbf16>,
    %c79 = arith.constant 79 : index
    %530 = memref.load %arg3[%c79] : memref<192xf32, #tpu.memory_space<smem>>
    %531 = vector.broadcast %530 : f32 to vector<16x1xf32>
    %532 = arith.mulf %531, %7 : vector<16x1xf32>
    %c80 = arith.constant 80 : index
    %533 = memref.load %arg3[%c80] : memref<192xf32, #tpu.memory_space<smem>>
    %534 = vector.broadcast %533 : f32 to vector<1x16xf32>
    %535 = arith.mulf %534, %9 : vector<1x16xf32>
    %c26_134 = arith.constant 26 : index
    %536 = memref.load %arg4[%c26_134] : memref<64xf32, #tpu.memory_space<smem>>
    %537 = vector.broadcast %536 : f32 to vector<1x16xf32>
    %538 = arith.addf %535, %537 : vector<1x16xf32>
    %c78 = arith.constant 78 : index
    %539 = memref.load %arg3[%c78] : memref<192xf32, #tpu.memory_space<smem>>
    %540 = vector.broadcast %539 : f32 to vector<16x16xf32>
    %541 = arith.mulf %540, %1 : vector<16x16xf32>
    %542 = vector.broadcast %532 : vector<16x1xf32> to vector<16x16xf32>
    %543 = arith.addf %541, %542 : vector<16x16xf32>
    %544 = vector.broadcast %538 : vector<1x16xf32> to vector<16x16xf32>
    %545 = arith.addf %543, %544 : vector<16x16xf32>
    %546 = arith.truncf %545 : vector<16x16xf32> to vector<16x16xbf16>
    %c0_135 = arith.constant 0 : index
    %c26_136 = arith.constant 26 : index
    %c0_137 = arith.constant 0 : index
    %c0_138 = arith.constant 0 : index
    %547 = vector.load %arg5[%c0_135, %c26_136, %c0_137, %c0_138] : memref<1x64x16x16xbf16, #tpu.memory_space<vmem>>, vector<1x1x16x16xbf16>
    %548 = vector.shape_cast %547 : vector<1x1x16x16xbf16> to vector<16x16xbf16>
    %549 = vector.shape_cast %546 : vector<16x16xbf16> to vector<1x1x16x16xbf16>
    tpu.vector_store %arg5[%c0_135, %c26_136, %c0_137, %c0_138], %549 {strides = array<i32>} : memref<1x64x16x16xbf16, #tpu.memory_space<vmem>>, vector<1x1x16x16xbf16>,
    %c82 = arith.constant 82 : index
    %550 = memref.load %arg3[%c82] : memref<192xf32, #tpu.memory_space<smem>>
    %551 = vector.broadcast %550 : f32 to vector<16x1xf32>
    %552 = arith.mulf %551, %7 : vector<16x1xf32>
    %c83 = arith.constant 83 : index
    %553 = memref.load %arg3[%c83] : memref<192xf32, #tpu.memory_space<smem>>
    %554 = vector.broadcast %553 : f32 to vector<1x16xf32>
    %555 = arith.mulf %554, %9 : vector<1x16xf32>
    %c27_139 = arith.constant 27 : index
    %556 = memref.load %arg4[%c27_139] : memref<64xf32, #tpu.memory_space<smem>>
    %557 = vector.broadcast %556 : f32 to vector<1x16xf32>
    %558 = arith.addf %555, %557 : vector<1x16xf32>
    %c81 = arith.constant 81 : index
    %559 = memref.load %arg3[%c81] : memref<192xf32, #tpu.memory_space<smem>>
    %560 = vector.broadcast %559 : f32 to vector<16x16xf32>
    %561 = arith.mulf %560, %1 : vector<16x16xf32>
    %562 = vector.broadcast %552 : vector<16x1xf32> to vector<16x16xf32>
    %563 = arith.addf %561, %562 : vector<16x16xf32>
    %564 = vector.broadcast %558 : vector<1x16xf32> to vector<16x16xf32>
    %565 = arith.addf %563, %564 : vector<16x16xf32>
    %566 = arith.truncf %565 : vector<16x16xf32> to vector<16x16xbf16>
    %c0_140 = arith.constant 0 : index
    %c27_141 = arith.constant 27 : index
    %c0_142 = arith.constant 0 : index
    %c0_143 = arith.constant 0 : index
    %567 = vector.load %arg5[%c0_140, %c27_141, %c0_142, %c0_143] : memref<1x64x16x16xbf16, #tpu.memory_space<vmem>>, vector<1x1x16x16xbf16>
    %568 = vector.shape_cast %567 : vector<1x1x16x16xbf16> to vector<16x16xbf16>
    %569 = vector.shape_cast %566 : vector<16x16xbf16> to vector<1x1x16x16xbf16>
    tpu.vector_store %arg5[%c0_140, %c27_141, %c0_142, %c0_143], %569 {strides = array<i32>} : memref<1x64x16x16xbf16, #tpu.memory_space<vmem>>, vector<1x1x16x16xbf16>,
    %c85 = arith.constant 85 : index
    %570 = memref.load %arg3[%c85] : memref<192xf32, #tpu.memory_space<smem>>
    %571 = vector.broadcast %570 : f32 to vector<16x1xf32>
    %572 = arith.mulf %571, %7 : vector<16x1xf32>
    %c86 = arith.constant 86 : index
    %573 = memref.load %arg3[%c86] : memref<192xf32, #tpu.memory_space<smem>>
    %574 = vector.broadcast %573 : f32 to vector<1x16xf32>
    %575 = arith.mulf %574, %9 : vector<1x16xf32>
    %c28_144 = arith.constant 28 : index
    %576 = memref.load %arg4[%c28_144] : memref<64xf32, #tpu.memory_space<smem>>
    %577 = vector.broadcast %576 : f32 to vector<1x16xf32>
    %578 = arith.addf %575, %577 : vector<1x16xf32>
    %c84 = arith.constant 84 : index
    %579 = memref.load %arg3[%c84] : memref<192xf32, #tpu.memory_space<smem>>
    %580 = vector.broadcast %579 : f32 to vector<16x16xf32>
    %581 = arith.mulf %580, %1 : vector<16x16xf32>
    %582 = vector.broadcast %572 : vector<16x1xf32> to vector<16x16xf32>
    %583 = arith.addf %581, %582 : vector<16x16xf32>
    %584 = vector.broadcast %578 : vector<1x16xf32> to vector<16x16xf32>
    %585 = arith.addf %583, %584 : vector<16x16xf32>
    %586 = arith.truncf %585 : vector<16x16xf32> to vector<16x16xbf16>
    %c0_145 = arith.constant 0 : index
    %c28_146 = arith.constant 28 : index
    %c0_147 = arith.constant 0 : index
    %c0_148 = arith.constant 0 : index
    %587 = vector.load %arg5[%c0_145, %c28_146, %c0_147, %c0_148] : memref<1x64x16x16xbf16, #tpu.memory_space<vmem>>, vector<1x1x16x16xbf16>
    %588 = vector.shape_cast %587 : vector<1x1x16x16xbf16> to vector<16x16xbf16>
    %589 = vector.shape_cast %586 : vector<16x16xbf16> to vector<1x1x16x16xbf16>
    tpu.vector_store %arg5[%c0_145, %c28_146, %c0_147, %c0_148], %589 {strides = array<i32>} : memref<1x64x16x16xbf16, #tpu.memory_space<vmem>>, vector<1x1x16x16xbf16>,
    %c88 = arith.constant 88 : index
    %590 = memref.load %arg3[%c88] : memref<192xf32, #tpu.memory_space<smem>>
    %591 = vector.broadcast %590 : f32 to vector<16x1xf32>
    %592 = arith.mulf %591, %7 : vector<16x1xf32>
    %c89 = arith.constant 89 : index
    %593 = memref.load %arg3[%c89] : memref<192xf32, #tpu.memory_space<smem>>
    %594 = vector.broadcast %593 : f32 to vector<1x16xf32>
    %595 = arith.mulf %594, %9 : vector<1x16xf32>
    %c29_149 = arith.constant 29 : index
    %596 = memref.load %arg4[%c29_149] : memref<64xf32, #tpu.memory_space<smem>>
    %597 = vector.broadcast %596 : f32 to vector<1x16xf32>
    %598 = arith.addf %595, %597 : vector<1x16xf32>
    %c87 = arith.constant 87 : index
    %599 = memref.load %arg3[%c87] : memref<192xf32, #tpu.memory_space<smem>>
    %600 = vector.broadcast %599 : f32 to vector<16x16xf32>
    %601 = arith.mulf %600, %1 : vector<16x16xf32>
    %602 = vector.broadcast %592 : vector<16x1xf32> to vector<16x16xf32>
    %603 = arith.addf %601, %602 : vector<16x16xf32>
    %604 = vector.broadcast %598 : vector<1x16xf32> to vector<16x16xf32>
    %605 = arith.addf %603, %604 : vector<16x16xf32>
    %606 = arith.truncf %605 : vector<16x16xf32> to vector<16x16xbf16>
    %c0_150 = arith.constant 0 : index
    %c29_151 = arith.constant 29 : index
    %c0_152 = arith.constant 0 : index
    %c0_153 = arith.constant 0 : index
    %607 = vector.load %arg5[%c0_150, %c29_151, %c0_152, %c0_153] : memref<1x64x16x16xbf16, #tpu.memory_space<vmem>>, vector<1x1x16x16xbf16>
    %608 = vector.shape_cast %607 : vector<1x1x16x16xbf16> to vector<16x16xbf16>
    %609 = vector.shape_cast %606 : vector<16x16xbf16> to vector<1x1x16x16xbf16>
    tpu.vector_store %arg5[%c0_150, %c29_151, %c0_152, %c0_153], %609 {strides = array<i32>} : memref<1x64x16x16xbf16, #tpu.memory_space<vmem>>, vector<1x1x16x16xbf16>,
    %c91 = arith.constant 91 : index
    %610 = memref.load %arg3[%c91] : memref<192xf32, #tpu.memory_space<smem>>
    %611 = vector.broadcast %610 : f32 to vector<16x1xf32>
    %612 = arith.mulf %611, %7 : vector<16x1xf32>
    %c92 = arith.constant 92 : index
    %613 = memref.load %arg3[%c92] : memref<192xf32, #tpu.memory_space<smem>>
    %614 = vector.broadcast %613 : f32 to vector<1x16xf32>
    %615 = arith.mulf %614, %9 : vector<1x16xf32>
    %c30_154 = arith.constant 30 : index
    %616 = memref.load %arg4[%c30_154] : memref<64xf32, #tpu.memory_space<smem>>
    %617 = vector.broadcast %616 : f32 to vector<1x16xf32>
    %618 = arith.addf %615, %617 : vector<1x16xf32>
    %c90 = arith.constant 90 : index
    %619 = memref.load %arg3[%c90] : memref<192xf32, #tpu.memory_space<smem>>
    %620 = vector.broadcast %619 : f32 to vector<16x16xf32>
    %621 = arith.mulf %620, %1 : vector<16x16xf32>
    %622 = vector.broadcast %612 : vector<16x1xf32> to vector<16x16xf32>
    %623 = arith.addf %621, %622 : vector<16x16xf32>
    %624 = vector.broadcast %618 : vector<1x16xf32> to vector<16x16xf32>
    %625 = arith.addf %623, %624 : vector<16x16xf32>
    %626 = arith.truncf %625 : vector<16x16xf32> to vector<16x16xbf16>
    %c0_155 = arith.constant 0 : index
    %c30_156 = arith.constant 30 : index
    %c0_157 = arith.constant 0 : index
    %c0_158 = arith.constant 0 : index
    %627 = vector.load %arg5[%c0_155, %c30_156, %c0_157, %c0_158] : memref<1x64x16x16xbf16, #tpu.memory_space<vmem>>, vector<1x1x16x16xbf16>
    %628 = vector.shape_cast %627 : vector<1x1x16x16xbf16> to vector<16x16xbf16>
    %629 = vector.shape_cast %626 : vector<16x16xbf16> to vector<1x1x16x16xbf16>
    tpu.vector_store %arg5[%c0_155, %c30_156, %c0_157, %c0_158], %629 {strides = array<i32>} : memref<1x64x16x16xbf16, #tpu.memory_space<vmem>>, vector<1x1x16x16xbf16>,
    %c94 = arith.constant 94 : index
    %630 = memref.load %arg3[%c94] : memref<192xf32, #tpu.memory_space<smem>>
    %631 = vector.broadcast %630 : f32 to vector<16x1xf32>
    %632 = arith.mulf %631, %7 : vector<16x1xf32>
    %c95 = arith.constant 95 : index
    %633 = memref.load %arg3[%c95] : memref<192xf32, #tpu.memory_space<smem>>
    %634 = vector.broadcast %633 : f32 to vector<1x16xf32>
    %635 = arith.mulf %634, %9 : vector<1x16xf32>
    %c31_159 = arith.constant 31 : index
    %636 = memref.load %arg4[%c31_159] : memref<64xf32, #tpu.memory_space<smem>>
    %637 = vector.broadcast %636 : f32 to vector<1x16xf32>
    %638 = arith.addf %635, %637 : vector<1x16xf32>
    %c93 = arith.constant 93 : index
    %639 = memref.load %arg3[%c93] : memref<192xf32, #tpu.memory_space<smem>>
    %640 = vector.broadcast %639 : f32 to vector<16x16xf32>
    %641 = arith.mulf %640, %1 : vector<16x16xf32>
    %642 = vector.broadcast %632 : vector<16x1xf32> to vector<16x16xf32>
    %643 = arith.addf %641, %642 : vector<16x16xf32>
    %644 = vector.broadcast %638 : vector<1x16xf32> to vector<16x16xf32>
    %645 = arith.addf %643, %644 : vector<16x16xf32>
    %646 = arith.truncf %645 : vector<16x16xf32> to vector<16x16xbf16>
    %c0_160 = arith.constant 0 : index
    %c31_161 = arith.constant 31 : index
    %c0_162 = arith.constant 0 : index
    %c0_163 = arith.constant 0 : index
    %647 = vector.load %arg5[%c0_160, %c31_161, %c0_162, %c0_163] : memref<1x64x16x16xbf16, #tpu.memory_space<vmem>>, vector<1x1x16x16xbf16>
    %648 = vector.shape_cast %647 : vector<1x1x16x16xbf16> to vector<16x16xbf16>
    %649 = vector.shape_cast %646 : vector<16x16xbf16> to vector<1x1x16x16xbf16>
    tpu.vector_store %arg5[%c0_160, %c31_161, %c0_162, %c0_163], %649 {strides = array<i32>} : memref<1x64x16x16xbf16, #tpu.memory_space<vmem>>, vector<1x1x16x16xbf16>,
    %c97 = arith.constant 97 : index
    %650 = memref.load %arg3[%c97] : memref<192xf32, #tpu.memory_space<smem>>
    %651 = vector.broadcast %650 : f32 to vector<16x1xf32>
    %652 = arith.mulf %651, %7 : vector<16x1xf32>
    %c98 = arith.constant 98 : index
    %653 = memref.load %arg3[%c98] : memref<192xf32, #tpu.memory_space<smem>>
    %654 = vector.broadcast %653 : f32 to vector<1x16xf32>
    %655 = arith.mulf %654, %9 : vector<1x16xf32>
    %c32_164 = arith.constant 32 : index
    %656 = memref.load %arg4[%c32_164] : memref<64xf32, #tpu.memory_space<smem>>
    %657 = vector.broadcast %656 : f32 to vector<1x16xf32>
    %658 = arith.addf %655, %657 : vector<1x16xf32>
    %c96 = arith.constant 96 : index
    %659 = memref.load %arg3[%c96] : memref<192xf32, #tpu.memory_space<smem>>
    %660 = vector.broadcast %659 : f32 to vector<16x16xf32>
    %661 = arith.mulf %660, %1 : vector<16x16xf32>
    %662 = vector.broadcast %652 : vector<16x1xf32> to vector<16x16xf32>
    %663 = arith.addf %661, %662 : vector<16x16xf32>
    %664 = vector.broadcast %658 : vector<1x16xf32> to vector<16x16xf32>
    %665 = arith.addf %663, %664 : vector<16x16xf32>
    %666 = arith.truncf %665 : vector<16x16xf32> to vector<16x16xbf16>
    %c0_165 = arith.constant 0 : index
    %c32_166 = arith.constant 32 : index
    %c0_167 = arith.constant 0 : index
    %c0_168 = arith.constant 0 : index
    %667 = vector.load %arg5[%c0_165, %c32_166, %c0_167, %c0_168] : memref<1x64x16x16xbf16, #tpu.memory_space<vmem>>, vector<1x1x16x16xbf16>
    %668 = vector.shape_cast %667 : vector<1x1x16x16xbf16> to vector<16x16xbf16>
    %669 = vector.shape_cast %666 : vector<16x16xbf16> to vector<1x1x16x16xbf16>
    tpu.vector_store %arg5[%c0_165, %c32_166, %c0_167, %c0_168], %669 {strides = array<i32>} : memref<1x64x16x16xbf16, #tpu.memory_space<vmem>>, vector<1x1x16x16xbf16>,
    %c100 = arith.constant 100 : index
    %670 = memref.load %arg3[%c100] : memref<192xf32, #tpu.memory_space<smem>>
    %671 = vector.broadcast %670 : f32 to vector<16x1xf32>
    %672 = arith.mulf %671, %7 : vector<16x1xf32>
    %c101 = arith.constant 101 : index
    %673 = memref.load %arg3[%c101] : memref<192xf32, #tpu.memory_space<smem>>
    %674 = vector.broadcast %673 : f32 to vector<1x16xf32>
    %675 = arith.mulf %674, %9 : vector<1x16xf32>
    %c33_169 = arith.constant 33 : index
    %676 = memref.load %arg4[%c33_169] : memref<64xf32, #tpu.memory_space<smem>>
    %677 = vector.broadcast %676 : f32 to vector<1x16xf32>
    %678 = arith.addf %675, %677 : vector<1x16xf32>
    %c99 = arith.constant 99 : index
    %679 = memref.load %arg3[%c99] : memref<192xf32, #tpu.memory_space<smem>>
    %680 = vector.broadcast %679 : f32 to vector<16x16xf32>
    %681 = arith.mulf %680, %1 : vector<16x16xf32>
    %682 = vector.broadcast %672 : vector<16x1xf32> to vector<16x16xf32>
    %683 = arith.addf %681, %682 : vector<16x16xf32>
    %684 = vector.broadcast %678 : vector<1x16xf32> to vector<16x16xf32>
    %685 = arith.addf %683, %684 : vector<16x16xf32>
    %686 = arith.truncf %685 : vector<16x16xf32> to vector<16x16xbf16>
    %c0_170 = arith.constant 0 : index
    %c33_171 = arith.constant 33 : index
    %c0_172 = arith.constant 0 : index
    %c0_173 = arith.constant 0 : index
    %687 = vector.load %arg5[%c0_170, %c33_171, %c0_172, %c0_173] : memref<1x64x16x16xbf16, #tpu.memory_space<vmem>>, vector<1x1x16x16xbf16>
    %688 = vector.shape_cast %687 : vector<1x1x16x16xbf16> to vector<16x16xbf16>
    %689 = vector.shape_cast %686 : vector<16x16xbf16> to vector<1x1x16x16xbf16>
    tpu.vector_store %arg5[%c0_170, %c33_171, %c0_172, %c0_173], %689 {strides = array<i32>} : memref<1x64x16x16xbf16, #tpu.memory_space<vmem>>, vector<1x1x16x16xbf16>,
    %c103 = arith.constant 103 : index
    %690 = memref.load %arg3[%c103] : memref<192xf32, #tpu.memory_space<smem>>
    %691 = vector.broadcast %690 : f32 to vector<16x1xf32>
    %692 = arith.mulf %691, %7 : vector<16x1xf32>
    %c104 = arith.constant 104 : index
    %693 = memref.load %arg3[%c104] : memref<192xf32, #tpu.memory_space<smem>>
    %694 = vector.broadcast %693 : f32 to vector<1x16xf32>
    %695 = arith.mulf %694, %9 : vector<1x16xf32>
    %c34_174 = arith.constant 34 : index
    %696 = memref.load %arg4[%c34_174] : memref<64xf32, #tpu.memory_space<smem>>
    %697 = vector.broadcast %696 : f32 to vector<1x16xf32>
    %698 = arith.addf %695, %697 : vector<1x16xf32>
    %c102 = arith.constant 102 : index
    %699 = memref.load %arg3[%c102] : memref<192xf32, #tpu.memory_space<smem>>
    %700 = vector.broadcast %699 : f32 to vector<16x16xf32>
    %701 = arith.mulf %700, %1 : vector<16x16xf32>
    %702 = vector.broadcast %692 : vector<16x1xf32> to vector<16x16xf32>
    %703 = arith.addf %701, %702 : vector<16x16xf32>
    %704 = vector.broadcast %698 : vector<1x16xf32> to vector<16x16xf32>
    %705 = arith.addf %703, %704 : vector<16x16xf32>
    %706 = arith.truncf %705 : vector<16x16xf32> to vector<16x16xbf16>
    %c0_175 = arith.constant 0 : index
    %c34_176 = arith.constant 34 : index
    %c0_177 = arith.constant 0 : index
    %c0_178 = arith.constant 0 : index
    %707 = vector.load %arg5[%c0_175, %c34_176, %c0_177, %c0_178] : memref<1x64x16x16xbf16, #tpu.memory_space<vmem>>, vector<1x1x16x16xbf16>
    %708 = vector.shape_cast %707 : vector<1x1x16x16xbf16> to vector<16x16xbf16>
    %709 = vector.shape_cast %706 : vector<16x16xbf16> to vector<1x1x16x16xbf16>
    tpu.vector_store %arg5[%c0_175, %c34_176, %c0_177, %c0_178], %709 {strides = array<i32>} : memref<1x64x16x16xbf16, #tpu.memory_space<vmem>>, vector<1x1x16x16xbf16>,
    %c106 = arith.constant 106 : index
    %710 = memref.load %arg3[%c106] : memref<192xf32, #tpu.memory_space<smem>>
    %711 = vector.broadcast %710 : f32 to vector<16x1xf32>
    %712 = arith.mulf %711, %7 : vector<16x1xf32>
    %c107 = arith.constant 107 : index
    %713 = memref.load %arg3[%c107] : memref<192xf32, #tpu.memory_space<smem>>
    %714 = vector.broadcast %713 : f32 to vector<1x16xf32>
    %715 = arith.mulf %714, %9 : vector<1x16xf32>
    %c35_179 = arith.constant 35 : index
    %716 = memref.load %arg4[%c35_179] : memref<64xf32, #tpu.memory_space<smem>>
    %717 = vector.broadcast %716 : f32 to vector<1x16xf32>
    %718 = arith.addf %715, %717 : vector<1x16xf32>
    %c105 = arith.constant 105 : index
    %719 = memref.load %arg3[%c105] : memref<192xf32, #tpu.memory_space<smem>>
    %720 = vector.broadcast %719 : f32 to vector<16x16xf32>
    %721 = arith.mulf %720, %1 : vector<16x16xf32>
    %722 = vector.broadcast %712 : vector<16x1xf32> to vector<16x16xf32>
    %723 = arith.addf %721, %722 : vector<16x16xf32>
    %724 = vector.broadcast %718 : vector<1x16xf32> to vector<16x16xf32>
    %725 = arith.addf %723, %724 : vector<16x16xf32>
    %726 = arith.truncf %725 : vector<16x16xf32> to vector<16x16xbf16>
    %c0_180 = arith.constant 0 : index
    %c35_181 = arith.constant 35 : index
    %c0_182 = arith.constant 0 : index
    %c0_183 = arith.constant 0 : index
    %727 = vector.load %arg5[%c0_180, %c35_181, %c0_182, %c0_183] : memref<1x64x16x16xbf16, #tpu.memory_space<vmem>>, vector<1x1x16x16xbf16>
    %728 = vector.shape_cast %727 : vector<1x1x16x16xbf16> to vector<16x16xbf16>
    %729 = vector.shape_cast %726 : vector<16x16xbf16> to vector<1x1x16x16xbf16>
    tpu.vector_store %arg5[%c0_180, %c35_181, %c0_182, %c0_183], %729 {strides = array<i32>} : memref<1x64x16x16xbf16, #tpu.memory_space<vmem>>, vector<1x1x16x16xbf16>,
    %c109 = arith.constant 109 : index
    %730 = memref.load %arg3[%c109] : memref<192xf32, #tpu.memory_space<smem>>
    %731 = vector.broadcast %730 : f32 to vector<16x1xf32>
    %732 = arith.mulf %731, %7 : vector<16x1xf32>
    %c110 = arith.constant 110 : index
    %733 = memref.load %arg3[%c110] : memref<192xf32, #tpu.memory_space<smem>>
    %734 = vector.broadcast %733 : f32 to vector<1x16xf32>
    %735 = arith.mulf %734, %9 : vector<1x16xf32>
    %c36_184 = arith.constant 36 : index
    %736 = memref.load %arg4[%c36_184] : memref<64xf32, #tpu.memory_space<smem>>
    %737 = vector.broadcast %736 : f32 to vector<1x16xf32>
    %738 = arith.addf %735, %737 : vector<1x16xf32>
    %c108 = arith.constant 108 : index
    %739 = memref.load %arg3[%c108] : memref<192xf32, #tpu.memory_space<smem>>
    %740 = vector.broadcast %739 : f32 to vector<16x16xf32>
    %741 = arith.mulf %740, %1 : vector<16x16xf32>
    %742 = vector.broadcast %732 : vector<16x1xf32> to vector<16x16xf32>
    %743 = arith.addf %741, %742 : vector<16x16xf32>
    %744 = vector.broadcast %738 : vector<1x16xf32> to vector<16x16xf32>
    %745 = arith.addf %743, %744 : vector<16x16xf32>
    %746 = arith.truncf %745 : vector<16x16xf32> to vector<16x16xbf16>
    %c0_185 = arith.constant 0 : index
    %c36_186 = arith.constant 36 : index
    %c0_187 = arith.constant 0 : index
    %c0_188 = arith.constant 0 : index
    %747 = vector.load %arg5[%c0_185, %c36_186, %c0_187, %c0_188] : memref<1x64x16x16xbf16, #tpu.memory_space<vmem>>, vector<1x1x16x16xbf16>
    %748 = vector.shape_cast %747 : vector<1x1x16x16xbf16> to vector<16x16xbf16>
    %749 = vector.shape_cast %746 : vector<16x16xbf16> to vector<1x1x16x16xbf16>
    tpu.vector_store %arg5[%c0_185, %c36_186, %c0_187, %c0_188], %749 {strides = array<i32>} : memref<1x64x16x16xbf16, #tpu.memory_space<vmem>>, vector<1x1x16x16xbf16>,
    %c112 = arith.constant 112 : index
    %750 = memref.load %arg3[%c112] : memref<192xf32, #tpu.memory_space<smem>>
    %751 = vector.broadcast %750 : f32 to vector<16x1xf32>
    %752 = arith.mulf %751, %7 : vector<16x1xf32>
    %c113 = arith.constant 113 : index
    %753 = memref.load %arg3[%c113] : memref<192xf32, #tpu.memory_space<smem>>
    %754 = vector.broadcast %753 : f32 to vector<1x16xf32>
    %755 = arith.mulf %754, %9 : vector<1x16xf32>
    %c37_189 = arith.constant 37 : index
    %756 = memref.load %arg4[%c37_189] : memref<64xf32, #tpu.memory_space<smem>>
    %757 = vector.broadcast %756 : f32 to vector<1x16xf32>
    %758 = arith.addf %755, %757 : vector<1x16xf32>
    %c111 = arith.constant 111 : index
    %759 = memref.load %arg3[%c111] : memref<192xf32, #tpu.memory_space<smem>>
    %760 = vector.broadcast %759 : f32 to vector<16x16xf32>
    %761 = arith.mulf %760, %1 : vector<16x16xf32>
    %762 = vector.broadcast %752 : vector<16x1xf32> to vector<16x16xf32>
    %763 = arith.addf %761, %762 : vector<16x16xf32>
    %764 = vector.broadcast %758 : vector<1x16xf32> to vector<16x16xf32>
    %765 = arith.addf %763, %764 : vector<16x16xf32>
    %766 = arith.truncf %765 : vector<16x16xf32> to vector<16x16xbf16>
    %c0_190 = arith.constant 0 : index
    %c37_191 = arith.constant 37 : index
    %c0_192 = arith.constant 0 : index
    %c0_193 = arith.constant 0 : index
    %767 = vector.load %arg5[%c0_190, %c37_191, %c0_192, %c0_193] : memref<1x64x16x16xbf16, #tpu.memory_space<vmem>>, vector<1x1x16x16xbf16>
    %768 = vector.shape_cast %767 : vector<1x1x16x16xbf16> to vector<16x16xbf16>
    %769 = vector.shape_cast %766 : vector<16x16xbf16> to vector<1x1x16x16xbf16>
    tpu.vector_store %arg5[%c0_190, %c37_191, %c0_192, %c0_193], %769 {strides = array<i32>} : memref<1x64x16x16xbf16, #tpu.memory_space<vmem>>, vector<1x1x16x16xbf16>,
    %c115 = arith.constant 115 : index
    %770 = memref.load %arg3[%c115] : memref<192xf32, #tpu.memory_space<smem>>
    %771 = vector.broadcast %770 : f32 to vector<16x1xf32>
    %772 = arith.mulf %771, %7 : vector<16x1xf32>
    %c116 = arith.constant 116 : index
    %773 = memref.load %arg3[%c116] : memref<192xf32, #tpu.memory_space<smem>>
    %774 = vector.broadcast %773 : f32 to vector<1x16xf32>
    %775 = arith.mulf %774, %9 : vector<1x16xf32>
    %c38_194 = arith.constant 38 : index
    %776 = memref.load %arg4[%c38_194] : memref<64xf32, #tpu.memory_space<smem>>
    %777 = vector.broadcast %776 : f32 to vector<1x16xf32>
    %778 = arith.addf %775, %777 : vector<1x16xf32>
    %c114 = arith.constant 114 : index
    %779 = memref.load %arg3[%c114] : memref<192xf32, #tpu.memory_space<smem>>
    %780 = vector.broadcast %779 : f32 to vector<16x16xf32>
    %781 = arith.mulf %780, %1 : vector<16x16xf32>
    %782 = vector.broadcast %772 : vector<16x1xf32> to vector<16x16xf32>
    %783 = arith.addf %781, %782 : vector<16x16xf32>
    %784 = vector.broadcast %778 : vector<1x16xf32> to vector<16x16xf32>
    %785 = arith.addf %783, %784 : vector<16x16xf32>
    %786 = arith.truncf %785 : vector<16x16xf32> to vector<16x16xbf16>
    %c0_195 = arith.constant 0 : index
    %c38_196 = arith.constant 38 : index
    %c0_197 = arith.constant 0 : index
    %c0_198 = arith.constant 0 : index
    %787 = vector.load %arg5[%c0_195, %c38_196, %c0_197, %c0_198] : memref<1x64x16x16xbf16, #tpu.memory_space<vmem>>, vector<1x1x16x16xbf16>
    %788 = vector.shape_cast %787 : vector<1x1x16x16xbf16> to vector<16x16xbf16>
    %789 = vector.shape_cast %786 : vector<16x16xbf16> to vector<1x1x16x16xbf16>
    tpu.vector_store %arg5[%c0_195, %c38_196, %c0_197, %c0_198], %789 {strides = array<i32>} : memref<1x64x16x16xbf16, #tpu.memory_space<vmem>>, vector<1x1x16x16xbf16>,
    %c118 = arith.constant 118 : index
    %790 = memref.load %arg3[%c118] : memref<192xf32, #tpu.memory_space<smem>>
    %791 = vector.broadcast %790 : f32 to vector<16x1xf32>
    %792 = arith.mulf %791, %7 : vector<16x1xf32>
    %c119 = arith.constant 119 : index
    %793 = memref.load %arg3[%c119] : memref<192xf32, #tpu.memory_space<smem>>
    %794 = vector.broadcast %793 : f32 to vector<1x16xf32>
    %795 = arith.mulf %794, %9 : vector<1x16xf32>
    %c39_199 = arith.constant 39 : index
    %796 = memref.load %arg4[%c39_199] : memref<64xf32, #tpu.memory_space<smem>>
    %797 = vector.broadcast %796 : f32 to vector<1x16xf32>
    %798 = arith.addf %795, %797 : vector<1x16xf32>
    %c117 = arith.constant 117 : index
    %799 = memref.load %arg3[%c117] : memref<192xf32, #tpu.memory_space<smem>>
    %800 = vector.broadcast %799 : f32 to vector<16x16xf32>
    %801 = arith.mulf %800, %1 : vector<16x16xf32>
    %802 = vector.broadcast %792 : vector<16x1xf32> to vector<16x16xf32>
    %803 = arith.addf %801, %802 : vector<16x16xf32>
    %804 = vector.broadcast %798 : vector<1x16xf32> to vector<16x16xf32>
    %805 = arith.addf %803, %804 : vector<16x16xf32>
    %806 = arith.truncf %805 : vector<16x16xf32> to vector<16x16xbf16>
    %c0_200 = arith.constant 0 : index
    %c39_201 = arith.constant 39 : index
    %c0_202 = arith.constant 0 : index
    %c0_203 = arith.constant 0 : index
    %807 = vector.load %arg5[%c0_200, %c39_201, %c0_202, %c0_203] : memref<1x64x16x16xbf16, #tpu.memory_space<vmem>>, vector<1x1x16x16xbf16>
    %808 = vector.shape_cast %807 : vector<1x1x16x16xbf16> to vector<16x16xbf16>
    %809 = vector.shape_cast %806 : vector<16x16xbf16> to vector<1x1x16x16xbf16>
    tpu.vector_store %arg5[%c0_200, %c39_201, %c0_202, %c0_203], %809 {strides = array<i32>} : memref<1x64x16x16xbf16, #tpu.memory_space<vmem>>, vector<1x1x16x16xbf16>,
    %c121 = arith.constant 121 : index
    %810 = memref.load %arg3[%c121] : memref<192xf32, #tpu.memory_space<smem>>
    %811 = vector.broadcast %810 : f32 to vector<16x1xf32>
    %812 = arith.mulf %811, %7 : vector<16x1xf32>
    %c122 = arith.constant 122 : index
    %813 = memref.load %arg3[%c122] : memref<192xf32, #tpu.memory_space<smem>>
    %814 = vector.broadcast %813 : f32 to vector<1x16xf32>
    %815 = arith.mulf %814, %9 : vector<1x16xf32>
    %c40_204 = arith.constant 40 : index
    %816 = memref.load %arg4[%c40_204] : memref<64xf32, #tpu.memory_space<smem>>
    %817 = vector.broadcast %816 : f32 to vector<1x16xf32>
    %818 = arith.addf %815, %817 : vector<1x16xf32>
    %c120 = arith.constant 120 : index
    %819 = memref.load %arg3[%c120] : memref<192xf32, #tpu.memory_space<smem>>
    %820 = vector.broadcast %819 : f32 to vector<16x16xf32>
    %821 = arith.mulf %820, %1 : vector<16x16xf32>
    %822 = vector.broadcast %812 : vector<16x1xf32> to vector<16x16xf32>
    %823 = arith.addf %821, %822 : vector<16x16xf32>
    %824 = vector.broadcast %818 : vector<1x16xf32> to vector<16x16xf32>
    %825 = arith.addf %823, %824 : vector<16x16xf32>
    %826 = arith.truncf %825 : vector<16x16xf32> to vector<16x16xbf16>
    %c0_205 = arith.constant 0 : index
    %c40_206 = arith.constant 40 : index
    %c0_207 = arith.constant 0 : index
    %c0_208 = arith.constant 0 : index
    %827 = vector.load %arg5[%c0_205, %c40_206, %c0_207, %c0_208] : memref<1x64x16x16xbf16, #tpu.memory_space<vmem>>, vector<1x1x16x16xbf16>
    %828 = vector.shape_cast %827 : vector<1x1x16x16xbf16> to vector<16x16xbf16>
    %829 = vector.shape_cast %826 : vector<16x16xbf16> to vector<1x1x16x16xbf16>
    tpu.vector_store %arg5[%c0_205, %c40_206, %c0_207, %c0_208], %829 {strides = array<i32>} : memref<1x64x16x16xbf16, #tpu.memory_space<vmem>>, vector<1x1x16x16xbf16>,
    %c124 = arith.constant 124 : index
    %830 = memref.load %arg3[%c124] : memref<192xf32, #tpu.memory_space<smem>>
    %831 = vector.broadcast %830 : f32 to vector<16x1xf32>
    %832 = arith.mulf %831, %7 : vector<16x1xf32>
    %c125 = arith.constant 125 : index
    %833 = memref.load %arg3[%c125] : memref<192xf32, #tpu.memory_space<smem>>
    %834 = vector.broadcast %833 : f32 to vector<1x16xf32>
    %835 = arith.mulf %834, %9 : vector<1x16xf32>
    %c41_209 = arith.constant 41 : index
    %836 = memref.load %arg4[%c41_209] : memref<64xf32, #tpu.memory_space<smem>>
    %837 = vector.broadcast %836 : f32 to vector<1x16xf32>
    %838 = arith.addf %835, %837 : vector<1x16xf32>
    %c123 = arith.constant 123 : index
    %839 = memref.load %arg3[%c123] : memref<192xf32, #tpu.memory_space<smem>>
    %840 = vector.broadcast %839 : f32 to vector<16x16xf32>
    %841 = arith.mulf %840, %1 : vector<16x16xf32>
    %842 = vector.broadcast %832 : vector<16x1xf32> to vector<16x16xf32>
    %843 = arith.addf %841, %842 : vector<16x16xf32>
    %844 = vector.broadcast %838 : vector<1x16xf32> to vector<16x16xf32>
    %845 = arith.addf %843, %844 : vector<16x16xf32>
    %846 = arith.truncf %845 : vector<16x16xf32> to vector<16x16xbf16>
    %c0_210 = arith.constant 0 : index
    %c41_211 = arith.constant 41 : index
    %c0_212 = arith.constant 0 : index
    %c0_213 = arith.constant 0 : index
    %847 = vector.load %arg5[%c0_210, %c41_211, %c0_212, %c0_213] : memref<1x64x16x16xbf16, #tpu.memory_space<vmem>>, vector<1x1x16x16xbf16>
    %848 = vector.shape_cast %847 : vector<1x1x16x16xbf16> to vector<16x16xbf16>
    %849 = vector.shape_cast %846 : vector<16x16xbf16> to vector<1x1x16x16xbf16>
    tpu.vector_store %arg5[%c0_210, %c41_211, %c0_212, %c0_213], %849 {strides = array<i32>} : memref<1x64x16x16xbf16, #tpu.memory_space<vmem>>, vector<1x1x16x16xbf16>,
    %c127 = arith.constant 127 : index
    %850 = memref.load %arg3[%c127] : memref<192xf32, #tpu.memory_space<smem>>
    %851 = vector.broadcast %850 : f32 to vector<16x1xf32>
    %852 = arith.mulf %851, %7 : vector<16x1xf32>
    %c128 = arith.constant 128 : index
    %853 = memref.load %arg3[%c128] : memref<192xf32, #tpu.memory_space<smem>>
    %854 = vector.broadcast %853 : f32 to vector<1x16xf32>
    %855 = arith.mulf %854, %9 : vector<1x16xf32>
    %c42_214 = arith.constant 42 : index
    %856 = memref.load %arg4[%c42_214] : memref<64xf32, #tpu.memory_space<smem>>
    %857 = vector.broadcast %856 : f32 to vector<1x16xf32>
    %858 = arith.addf %855, %857 : vector<1x16xf32>
    %c126 = arith.constant 126 : index
    %859 = memref.load %arg3[%c126] : memref<192xf32, #tpu.memory_space<smem>>
    %860 = vector.broadcast %859 : f32 to vector<16x16xf32>
    %861 = arith.mulf %860, %1 : vector<16x16xf32>
    %862 = vector.broadcast %852 : vector<16x1xf32> to vector<16x16xf32>
    %863 = arith.addf %861, %862 : vector<16x16xf32>
    %864 = vector.broadcast %858 : vector<1x16xf32> to vector<16x16xf32>
    %865 = arith.addf %863, %864 : vector<16x16xf32>
    %866 = arith.truncf %865 : vector<16x16xf32> to vector<16x16xbf16>
    %c0_215 = arith.constant 0 : index
    %c42_216 = arith.constant 42 : index
    %c0_217 = arith.constant 0 : index
    %c0_218 = arith.constant 0 : index
    %867 = vector.load %arg5[%c0_215, %c42_216, %c0_217, %c0_218] : memref<1x64x16x16xbf16, #tpu.memory_space<vmem>>, vector<1x1x16x16xbf16>
    %868 = vector.shape_cast %867 : vector<1x1x16x16xbf16> to vector<16x16xbf16>
    %869 = vector.shape_cast %866 : vector<16x16xbf16> to vector<1x1x16x16xbf16>
    tpu.vector_store %arg5[%c0_215, %c42_216, %c0_217, %c0_218], %869 {strides = array<i32>} : memref<1x64x16x16xbf16, #tpu.memory_space<vmem>>, vector<1x1x16x16xbf16>,
    %c130 = arith.constant 130 : index
    %870 = memref.load %arg3[%c130] : memref<192xf32, #tpu.memory_space<smem>>
    %871 = vector.broadcast %870 : f32 to vector<16x1xf32>
    %872 = arith.mulf %871, %7 : vector<16x1xf32>
    %c131 = arith.constant 131 : index
    %873 = memref.load %arg3[%c131] : memref<192xf32, #tpu.memory_space<smem>>
    %874 = vector.broadcast %873 : f32 to vector<1x16xf32>
    %875 = arith.mulf %874, %9 : vector<1x16xf32>
    %c43_219 = arith.constant 43 : index
    %876 = memref.load %arg4[%c43_219] : memref<64xf32, #tpu.memory_space<smem>>
    %877 = vector.broadcast %876 : f32 to vector<1x16xf32>
    %878 = arith.addf %875, %877 : vector<1x16xf32>
    %c129 = arith.constant 129 : index
    %879 = memref.load %arg3[%c129] : memref<192xf32, #tpu.memory_space<smem>>
    %880 = vector.broadcast %879 : f32 to vector<16x16xf32>
    %881 = arith.mulf %880, %1 : vector<16x16xf32>
    %882 = vector.broadcast %872 : vector<16x1xf32> to vector<16x16xf32>
    %883 = arith.addf %881, %882 : vector<16x16xf32>
    %884 = vector.broadcast %878 : vector<1x16xf32> to vector<16x16xf32>
    %885 = arith.addf %883, %884 : vector<16x16xf32>
    %886 = arith.truncf %885 : vector<16x16xf32> to vector<16x16xbf16>
    %c0_220 = arith.constant 0 : index
    %c43_221 = arith.constant 43 : index
    %c0_222 = arith.constant 0 : index
    %c0_223 = arith.constant 0 : index
    %887 = vector.load %arg5[%c0_220, %c43_221, %c0_222, %c0_223] : memref<1x64x16x16xbf16, #tpu.memory_space<vmem>>, vector<1x1x16x16xbf16>
    %888 = vector.shape_cast %887 : vector<1x1x16x16xbf16> to vector<16x16xbf16>
    %889 = vector.shape_cast %886 : vector<16x16xbf16> to vector<1x1x16x16xbf16>
    tpu.vector_store %arg5[%c0_220, %c43_221, %c0_222, %c0_223], %889 {strides = array<i32>} : memref<1x64x16x16xbf16, #tpu.memory_space<vmem>>, vector<1x1x16x16xbf16>,
    %c133 = arith.constant 133 : index
    %890 = memref.load %arg3[%c133] : memref<192xf32, #tpu.memory_space<smem>>
    %891 = vector.broadcast %890 : f32 to vector<16x1xf32>
    %892 = arith.mulf %891, %7 : vector<16x1xf32>
    %c134 = arith.constant 134 : index
    %893 = memref.load %arg3[%c134] : memref<192xf32, #tpu.memory_space<smem>>
    %894 = vector.broadcast %893 : f32 to vector<1x16xf32>
    %895 = arith.mulf %894, %9 : vector<1x16xf32>
    %c44_224 = arith.constant 44 : index
    %896 = memref.load %arg4[%c44_224] : memref<64xf32, #tpu.memory_space<smem>>
    %897 = vector.broadcast %896 : f32 to vector<1x16xf32>
    %898 = arith.addf %895, %897 : vector<1x16xf32>
    %c132 = arith.constant 132 : index
    %899 = memref.load %arg3[%c132] : memref<192xf32, #tpu.memory_space<smem>>
    %900 = vector.broadcast %899 : f32 to vector<16x16xf32>
    %901 = arith.mulf %900, %1 : vector<16x16xf32>
    %902 = vector.broadcast %892 : vector<16x1xf32> to vector<16x16xf32>
    %903 = arith.addf %901, %902 : vector<16x16xf32>
    %904 = vector.broadcast %898 : vector<1x16xf32> to vector<16x16xf32>
    %905 = arith.addf %903, %904 : vector<16x16xf32>
    %906 = arith.truncf %905 : vector<16x16xf32> to vector<16x16xbf16>
    %c0_225 = arith.constant 0 : index
    %c44_226 = arith.constant 44 : index
    %c0_227 = arith.constant 0 : index
    %c0_228 = arith.constant 0 : index
    %907 = vector.load %arg5[%c0_225, %c44_226, %c0_227, %c0_228] : memref<1x64x16x16xbf16, #tpu.memory_space<vmem>>, vector<1x1x16x16xbf16>
    %908 = vector.shape_cast %907 : vector<1x1x16x16xbf16> to vector<16x16xbf16>
    %909 = vector.shape_cast %906 : vector<16x16xbf16> to vector<1x1x16x16xbf16>
    tpu.vector_store %arg5[%c0_225, %c44_226, %c0_227, %c0_228], %909 {strides = array<i32>} : memref<1x64x16x16xbf16, #tpu.memory_space<vmem>>, vector<1x1x16x16xbf16>,
    %c136 = arith.constant 136 : index
    %910 = memref.load %arg3[%c136] : memref<192xf32, #tpu.memory_space<smem>>
    %911 = vector.broadcast %910 : f32 to vector<16x1xf32>
    %912 = arith.mulf %911, %7 : vector<16x1xf32>
    %c137 = arith.constant 137 : index
    %913 = memref.load %arg3[%c137] : memref<192xf32, #tpu.memory_space<smem>>
    %914 = vector.broadcast %913 : f32 to vector<1x16xf32>
    %915 = arith.mulf %914, %9 : vector<1x16xf32>
    %c45_229 = arith.constant 45 : index
    %916 = memref.load %arg4[%c45_229] : memref<64xf32, #tpu.memory_space<smem>>
    %917 = vector.broadcast %916 : f32 to vector<1x16xf32>
    %918 = arith.addf %915, %917 : vector<1x16xf32>
    %c135 = arith.constant 135 : index
    %919 = memref.load %arg3[%c135] : memref<192xf32, #tpu.memory_space<smem>>
    %920 = vector.broadcast %919 : f32 to vector<16x16xf32>
    %921 = arith.mulf %920, %1 : vector<16x16xf32>
    %922 = vector.broadcast %912 : vector<16x1xf32> to vector<16x16xf32>
    %923 = arith.addf %921, %922 : vector<16x16xf32>
    %924 = vector.broadcast %918 : vector<1x16xf32> to vector<16x16xf32>
    %925 = arith.addf %923, %924 : vector<16x16xf32>
    %926 = arith.truncf %925 : vector<16x16xf32> to vector<16x16xbf16>
    %c0_230 = arith.constant 0 : index
    %c45_231 = arith.constant 45 : index
    %c0_232 = arith.constant 0 : index
    %c0_233 = arith.constant 0 : index
    %927 = vector.load %arg5[%c0_230, %c45_231, %c0_232, %c0_233] : memref<1x64x16x16xbf16, #tpu.memory_space<vmem>>, vector<1x1x16x16xbf16>
    %928 = vector.shape_cast %927 : vector<1x1x16x16xbf16> to vector<16x16xbf16>
    %929 = vector.shape_cast %926 : vector<16x16xbf16> to vector<1x1x16x16xbf16>
    tpu.vector_store %arg5[%c0_230, %c45_231, %c0_232, %c0_233], %929 {strides = array<i32>} : memref<1x64x16x16xbf16, #tpu.memory_space<vmem>>, vector<1x1x16x16xbf16>,
    %c139 = arith.constant 139 : index
    %930 = memref.load %arg3[%c139] : memref<192xf32, #tpu.memory_space<smem>>
    %931 = vector.broadcast %930 : f32 to vector<16x1xf32>
    %932 = arith.mulf %931, %7 : vector<16x1xf32>
    %c140 = arith.constant 140 : index
    %933 = memref.load %arg3[%c140] : memref<192xf32, #tpu.memory_space<smem>>
    %934 = vector.broadcast %933 : f32 to vector<1x16xf32>
    %935 = arith.mulf %934, %9 : vector<1x16xf32>
    %c46_234 = arith.constant 46 : index
    %936 = memref.load %arg4[%c46_234] : memref<64xf32, #tpu.memory_space<smem>>
    %937 = vector.broadcast %936 : f32 to vector<1x16xf32>
    %938 = arith.addf %935, %937 : vector<1x16xf32>
    %c138 = arith.constant 138 : index
    %939 = memref.load %arg3[%c138] : memref<192xf32, #tpu.memory_space<smem>>
    %940 = vector.broadcast %939 : f32 to vector<16x16xf32>
    %941 = arith.mulf %940, %1 : vector<16x16xf32>
    %942 = vector.broadcast %932 : vector<16x1xf32> to vector<16x16xf32>
    %943 = arith.addf %941, %942 : vector<16x16xf32>
    %944 = vector.broadcast %938 : vector<1x16xf32> to vector<16x16xf32>
    %945 = arith.addf %943, %944 : vector<16x16xf32>
    %946 = arith.truncf %945 : vector<16x16xf32> to vector<16x16xbf16>
    %c0_235 = arith.constant 0 : index
    %c46_236 = arith.constant 46 : index
    %c0_237 = arith.constant 0 : index
    %c0_238 = arith.constant 0 : index
    %947 = vector.load %arg5[%c0_235, %c46_236, %c0_237, %c0_238] : memref<1x64x16x16xbf16, #tpu.memory_space<vmem>>, vector<1x1x16x16xbf16>
    %948 = vector.shape_cast %947 : vector<1x1x16x16xbf16> to vector<16x16xbf16>
    %949 = vector.shape_cast %946 : vector<16x16xbf16> to vector<1x1x16x16xbf16>
    tpu.vector_store %arg5[%c0_235, %c46_236, %c0_237, %c0_238], %949 {strides = array<i32>} : memref<1x64x16x16xbf16, #tpu.memory_space<vmem>>, vector<1x1x16x16xbf16>,
    %c142 = arith.constant 142 : index
    %950 = memref.load %arg3[%c142] : memref<192xf32, #tpu.memory_space<smem>>
    %951 = vector.broadcast %950 : f32 to vector<16x1xf32>
    %952 = arith.mulf %951, %7 : vector<16x1xf32>
    %c143 = arith.constant 143 : index
    %953 = memref.load %arg3[%c143] : memref<192xf32, #tpu.memory_space<smem>>
    %954 = vector.broadcast %953 : f32 to vector<1x16xf32>
    %955 = arith.mulf %954, %9 : vector<1x16xf32>
    %c47_239 = arith.constant 47 : index
    %956 = memref.load %arg4[%c47_239] : memref<64xf32, #tpu.memory_space<smem>>
    %957 = vector.broadcast %956 : f32 to vector<1x16xf32>
    %958 = arith.addf %955, %957 : vector<1x16xf32>
    %c141 = arith.constant 141 : index
    %959 = memref.load %arg3[%c141] : memref<192xf32, #tpu.memory_space<smem>>
    %960 = vector.broadcast %959 : f32 to vector<16x16xf32>
    %961 = arith.mulf %960, %1 : vector<16x16xf32>
    %962 = vector.broadcast %952 : vector<16x1xf32> to vector<16x16xf32>
    %963 = arith.addf %961, %962 : vector<16x16xf32>
    %964 = vector.broadcast %958 : vector<1x16xf32> to vector<16x16xf32>
    %965 = arith.addf %963, %964 : vector<16x16xf32>
    %966 = arith.truncf %965 : vector<16x16xf32> to vector<16x16xbf16>
    %c0_240 = arith.constant 0 : index
    %c47_241 = arith.constant 47 : index
    %c0_242 = arith.constant 0 : index
    %c0_243 = arith.constant 0 : index
    %967 = vector.load %arg5[%c0_240, %c47_241, %c0_242, %c0_243] : memref<1x64x16x16xbf16, #tpu.memory_space<vmem>>, vector<1x1x16x16xbf16>
    %968 = vector.shape_cast %967 : vector<1x1x16x16xbf16> to vector<16x16xbf16>
    %969 = vector.shape_cast %966 : vector<16x16xbf16> to vector<1x1x16x16xbf16>
    tpu.vector_store %arg5[%c0_240, %c47_241, %c0_242, %c0_243], %969 {strides = array<i32>} : memref<1x64x16x16xbf16, #tpu.memory_space<vmem>>, vector<1x1x16x16xbf16>,
    %c145 = arith.constant 145 : index
    %970 = memref.load %arg3[%c145] : memref<192xf32, #tpu.memory_space<smem>>
    %971 = vector.broadcast %970 : f32 to vector<16x1xf32>
    %972 = arith.mulf %971, %7 : vector<16x1xf32>
    %c146 = arith.constant 146 : index
    %973 = memref.load %arg3[%c146] : memref<192xf32, #tpu.memory_space<smem>>
    %974 = vector.broadcast %973 : f32 to vector<1x16xf32>
    %975 = arith.mulf %974, %9 : vector<1x16xf32>
    %c48_244 = arith.constant 48 : index
    %976 = memref.load %arg4[%c48_244] : memref<64xf32, #tpu.memory_space<smem>>
    %977 = vector.broadcast %976 : f32 to vector<1x16xf32>
    %978 = arith.addf %975, %977 : vector<1x16xf32>
    %c144 = arith.constant 144 : index
    %979 = memref.load %arg3[%c144] : memref<192xf32, #tpu.memory_space<smem>>
    %980 = vector.broadcast %979 : f32 to vector<16x16xf32>
    %981 = arith.mulf %980, %1 : vector<16x16xf32>
    %982 = vector.broadcast %972 : vector<16x1xf32> to vector<16x16xf32>
    %983 = arith.addf %981, %982 : vector<16x16xf32>
    %984 = vector.broadcast %978 : vector<1x16xf32> to vector<16x16xf32>
    %985 = arith.addf %983, %984 : vector<16x16xf32>
    %986 = arith.truncf %985 : vector<16x16xf32> to vector<16x16xbf16>
    %c0_245 = arith.constant 0 : index
    %c48_246 = arith.constant 48 : index
    %c0_247 = arith.constant 0 : index
    %c0_248 = arith.constant 0 : index
    %987 = vector.load %arg5[%c0_245, %c48_246, %c0_247, %c0_248] : memref<1x64x16x16xbf16, #tpu.memory_space<vmem>>, vector<1x1x16x16xbf16>
    %988 = vector.shape_cast %987 : vector<1x1x16x16xbf16> to vector<16x16xbf16>
    %989 = vector.shape_cast %986 : vector<16x16xbf16> to vector<1x1x16x16xbf16>
    tpu.vector_store %arg5[%c0_245, %c48_246, %c0_247, %c0_248], %989 {strides = array<i32>} : memref<1x64x16x16xbf16, #tpu.memory_space<vmem>>, vector<1x1x16x16xbf16>,
    %c148 = arith.constant 148 : index
    %990 = memref.load %arg3[%c148] : memref<192xf32, #tpu.memory_space<smem>>
    %991 = vector.broadcast %990 : f32 to vector<16x1xf32>
    %992 = arith.mulf %991, %7 : vector<16x1xf32>
    %c149 = arith.constant 149 : index
    %993 = memref.load %arg3[%c149] : memref<192xf32, #tpu.memory_space<smem>>
    %994 = vector.broadcast %993 : f32 to vector<1x16xf32>
    %995 = arith.mulf %994, %9 : vector<1x16xf32>
    %c49_249 = arith.constant 49 : index
    %996 = memref.load %arg4[%c49_249] : memref<64xf32, #tpu.memory_space<smem>>
    %997 = vector.broadcast %996 : f32 to vector<1x16xf32>
    %998 = arith.addf %995, %997 : vector<1x16xf32>
    %c147 = arith.constant 147 : index
    %999 = memref.load %arg3[%c147] : memref<192xf32, #tpu.memory_space<smem>>
    %1000 = vector.broadcast %999 : f32 to vector<16x16xf32>
    %1001 = arith.mulf %1000, %1 : vector<16x16xf32>
    %1002 = vector.broadcast %992 : vector<16x1xf32> to vector<16x16xf32>
    %1003 = arith.addf %1001, %1002 : vector<16x16xf32>
    %1004 = vector.broadcast %998 : vector<1x16xf32> to vector<16x16xf32>
    %1005 = arith.addf %1003, %1004 : vector<16x16xf32>
    %1006 = arith.truncf %1005 : vector<16x16xf32> to vector<16x16xbf16>
    %c0_250 = arith.constant 0 : index
    %c49_251 = arith.constant 49 : index
    %c0_252 = arith.constant 0 : index
    %c0_253 = arith.constant 0 : index
    %1007 = vector.load %arg5[%c0_250, %c49_251, %c0_252, %c0_253] : memref<1x64x16x16xbf16, #tpu.memory_space<vmem>>, vector<1x1x16x16xbf16>
    %1008 = vector.shape_cast %1007 : vector<1x1x16x16xbf16> to vector<16x16xbf16>
    %1009 = vector.shape_cast %1006 : vector<16x16xbf16> to vector<1x1x16x16xbf16>
    tpu.vector_store %arg5[%c0_250, %c49_251, %c0_252, %c0_253], %1009 {strides = array<i32>} : memref<1x64x16x16xbf16, #tpu.memory_space<vmem>>, vector<1x1x16x16xbf16>,
    %c151 = arith.constant 151 : index
    %1010 = memref.load %arg3[%c151] : memref<192xf32, #tpu.memory_space<smem>>
    %1011 = vector.broadcast %1010 : f32 to vector<16x1xf32>
    %1012 = arith.mulf %1011, %7 : vector<16x1xf32>
    %c152 = arith.constant 152 : index
    %1013 = memref.load %arg3[%c152] : memref<192xf32, #tpu.memory_space<smem>>
    %1014 = vector.broadcast %1013 : f32 to vector<1x16xf32>
    %1015 = arith.mulf %1014, %9 : vector<1x16xf32>
    %c50_254 = arith.constant 50 : index
    %1016 = memref.load %arg4[%c50_254] : memref<64xf32, #tpu.memory_space<smem>>
    %1017 = vector.broadcast %1016 : f32 to vector<1x16xf32>
    %1018 = arith.addf %1015, %1017 : vector<1x16xf32>
    %c150 = arith.constant 150 : index
    %1019 = memref.load %arg3[%c150] : memref<192xf32, #tpu.memory_space<smem>>
    %1020 = vector.broadcast %1019 : f32 to vector<16x16xf32>
    %1021 = arith.mulf %1020, %1 : vector<16x16xf32>
    %1022 = vector.broadcast %1012 : vector<16x1xf32> to vector<16x16xf32>
    %1023 = arith.addf %1021, %1022 : vector<16x16xf32>
    %1024 = vector.broadcast %1018 : vector<1x16xf32> to vector<16x16xf32>
    %1025 = arith.addf %1023, %1024 : vector<16x16xf32>
    %1026 = arith.truncf %1025 : vector<16x16xf32> to vector<16x16xbf16>
    %c0_255 = arith.constant 0 : index
    %c50_256 = arith.constant 50 : index
    %c0_257 = arith.constant 0 : index
    %c0_258 = arith.constant 0 : index
    %1027 = vector.load %arg5[%c0_255, %c50_256, %c0_257, %c0_258] : memref<1x64x16x16xbf16, #tpu.memory_space<vmem>>, vector<1x1x16x16xbf16>
    %1028 = vector.shape_cast %1027 : vector<1x1x16x16xbf16> to vector<16x16xbf16>
    %1029 = vector.shape_cast %1026 : vector<16x16xbf16> to vector<1x1x16x16xbf16>
    tpu.vector_store %arg5[%c0_255, %c50_256, %c0_257, %c0_258], %1029 {strides = array<i32>} : memref<1x64x16x16xbf16, #tpu.memory_space<vmem>>, vector<1x1x16x16xbf16>,
    %c154 = arith.constant 154 : index
    %1030 = memref.load %arg3[%c154] : memref<192xf32, #tpu.memory_space<smem>>
    %1031 = vector.broadcast %1030 : f32 to vector<16x1xf32>
    %1032 = arith.mulf %1031, %7 : vector<16x1xf32>
    %c155 = arith.constant 155 : index
    %1033 = memref.load %arg3[%c155] : memref<192xf32, #tpu.memory_space<smem>>
    %1034 = vector.broadcast %1033 : f32 to vector<1x16xf32>
    %1035 = arith.mulf %1034, %9 : vector<1x16xf32>
    %c51_259 = arith.constant 51 : index
    %1036 = memref.load %arg4[%c51_259] : memref<64xf32, #tpu.memory_space<smem>>
    %1037 = vector.broadcast %1036 : f32 to vector<1x16xf32>
    %1038 = arith.addf %1035, %1037 : vector<1x16xf32>
    %c153 = arith.constant 153 : index
    %1039 = memref.load %arg3[%c153] : memref<192xf32, #tpu.memory_space<smem>>
    %1040 = vector.broadcast %1039 : f32 to vector<16x16xf32>
    %1041 = arith.mulf %1040, %1 : vector<16x16xf32>
    %1042 = vector.broadcast %1032 : vector<16x1xf32> to vector<16x16xf32>
    %1043 = arith.addf %1041, %1042 : vector<16x16xf32>
    %1044 = vector.broadcast %1038 : vector<1x16xf32> to vector<16x16xf32>
    %1045 = arith.addf %1043, %1044 : vector<16x16xf32>
    %1046 = arith.truncf %1045 : vector<16x16xf32> to vector<16x16xbf16>
    %c0_260 = arith.constant 0 : index
    %c51_261 = arith.constant 51 : index
    %c0_262 = arith.constant 0 : index
    %c0_263 = arith.constant 0 : index
    %1047 = vector.load %arg5[%c0_260, %c51_261, %c0_262, %c0_263] : memref<1x64x16x16xbf16, #tpu.memory_space<vmem>>, vector<1x1x16x16xbf16>
    %1048 = vector.shape_cast %1047 : vector<1x1x16x16xbf16> to vector<16x16xbf16>
    %1049 = vector.shape_cast %1046 : vector<16x16xbf16> to vector<1x1x16x16xbf16>
    tpu.vector_store %arg5[%c0_260, %c51_261, %c0_262, %c0_263], %1049 {strides = array<i32>} : memref<1x64x16x16xbf16, #tpu.memory_space<vmem>>, vector<1x1x16x16xbf16>,
    %c157 = arith.constant 157 : index
    %1050 = memref.load %arg3[%c157] : memref<192xf32, #tpu.memory_space<smem>>
    %1051 = vector.broadcast %1050 : f32 to vector<16x1xf32>
    %1052 = arith.mulf %1051, %7 : vector<16x1xf32>
    %c158 = arith.constant 158 : index
    %1053 = memref.load %arg3[%c158] : memref<192xf32, #tpu.memory_space<smem>>
    %1054 = vector.broadcast %1053 : f32 to vector<1x16xf32>
    %1055 = arith.mulf %1054, %9 : vector<1x16xf32>
    %c52_264 = arith.constant 52 : index
    %1056 = memref.load %arg4[%c52_264] : memref<64xf32, #tpu.memory_space<smem>>
    %1057 = vector.broadcast %1056 : f32 to vector<1x16xf32>
    %1058 = arith.addf %1055, %1057 : vector<1x16xf32>
    %c156 = arith.constant 156 : index
    %1059 = memref.load %arg3[%c156] : memref<192xf32, #tpu.memory_space<smem>>
    %1060 = vector.broadcast %1059 : f32 to vector<16x16xf32>
    %1061 = arith.mulf %1060, %1 : vector<16x16xf32>
    %1062 = vector.broadcast %1052 : vector<16x1xf32> to vector<16x16xf32>
    %1063 = arith.addf %1061, %1062 : vector<16x16xf32>
    %1064 = vector.broadcast %1058 : vector<1x16xf32> to vector<16x16xf32>
    %1065 = arith.addf %1063, %1064 : vector<16x16xf32>
    %1066 = arith.truncf %1065 : vector<16x16xf32> to vector<16x16xbf16>
    %c0_265 = arith.constant 0 : index
    %c52_266 = arith.constant 52 : index
    %c0_267 = arith.constant 0 : index
    %c0_268 = arith.constant 0 : index
    %1067 = vector.load %arg5[%c0_265, %c52_266, %c0_267, %c0_268] : memref<1x64x16x16xbf16, #tpu.memory_space<vmem>>, vector<1x1x16x16xbf16>
    %1068 = vector.shape_cast %1067 : vector<1x1x16x16xbf16> to vector<16x16xbf16>
    %1069 = vector.shape_cast %1066 : vector<16x16xbf16> to vector<1x1x16x16xbf16>
    tpu.vector_store %arg5[%c0_265, %c52_266, %c0_267, %c0_268], %1069 {strides = array<i32>} : memref<1x64x16x16xbf16, #tpu.memory_space<vmem>>, vector<1x1x16x16xbf16>,
    %c160 = arith.constant 160 : index
    %1070 = memref.load %arg3[%c160] : memref<192xf32, #tpu.memory_space<smem>>
    %1071 = vector.broadcast %1070 : f32 to vector<16x1xf32>
    %1072 = arith.mulf %1071, %7 : vector<16x1xf32>
    %c161 = arith.constant 161 : index
    %1073 = memref.load %arg3[%c161] : memref<192xf32, #tpu.memory_space<smem>>
    %1074 = vector.broadcast %1073 : f32 to vector<1x16xf32>
    %1075 = arith.mulf %1074, %9 : vector<1x16xf32>
    %c53_269 = arith.constant 53 : index
    %1076 = memref.load %arg4[%c53_269] : memref<64xf32, #tpu.memory_space<smem>>
    %1077 = vector.broadcast %1076 : f32 to vector<1x16xf32>
    %1078 = arith.addf %1075, %1077 : vector<1x16xf32>
    %c159 = arith.constant 159 : index
    %1079 = memref.load %arg3[%c159] : memref<192xf32, #tpu.memory_space<smem>>
    %1080 = vector.broadcast %1079 : f32 to vector<16x16xf32>
    %1081 = arith.mulf %1080, %1 : vector<16x16xf32>
    %1082 = vector.broadcast %1072 : vector<16x1xf32> to vector<16x16xf32>
    %1083 = arith.addf %1081, %1082 : vector<16x16xf32>
    %1084 = vector.broadcast %1078 : vector<1x16xf32> to vector<16x16xf32>
    %1085 = arith.addf %1083, %1084 : vector<16x16xf32>
    %1086 = arith.truncf %1085 : vector<16x16xf32> to vector<16x16xbf16>
    %c0_270 = arith.constant 0 : index
    %c53_271 = arith.constant 53 : index
    %c0_272 = arith.constant 0 : index
    %c0_273 = arith.constant 0 : index
    %1087 = vector.load %arg5[%c0_270, %c53_271, %c0_272, %c0_273] : memref<1x64x16x16xbf16, #tpu.memory_space<vmem>>, vector<1x1x16x16xbf16>
    %1088 = vector.shape_cast %1087 : vector<1x1x16x16xbf16> to vector<16x16xbf16>
    %1089 = vector.shape_cast %1086 : vector<16x16xbf16> to vector<1x1x16x16xbf16>
    tpu.vector_store %arg5[%c0_270, %c53_271, %c0_272, %c0_273], %1089 {strides = array<i32>} : memref<1x64x16x16xbf16, #tpu.memory_space<vmem>>, vector<1x1x16x16xbf16>,
    %c163 = arith.constant 163 : index
    %1090 = memref.load %arg3[%c163] : memref<192xf32, #tpu.memory_space<smem>>
    %1091 = vector.broadcast %1090 : f32 to vector<16x1xf32>
    %1092 = arith.mulf %1091, %7 : vector<16x1xf32>
    %c164 = arith.constant 164 : index
    %1093 = memref.load %arg3[%c164] : memref<192xf32, #tpu.memory_space<smem>>
    %1094 = vector.broadcast %1093 : f32 to vector<1x16xf32>
    %1095 = arith.mulf %1094, %9 : vector<1x16xf32>
    %c54_274 = arith.constant 54 : index
    %1096 = memref.load %arg4[%c54_274] : memref<64xf32, #tpu.memory_space<smem>>
    %1097 = vector.broadcast %1096 : f32 to vector<1x16xf32>
    %1098 = arith.addf %1095, %1097 : vector<1x16xf32>
    %c162 = arith.constant 162 : index
    %1099 = memref.load %arg3[%c162] : memref<192xf32, #tpu.memory_space<smem>>
    %1100 = vector.broadcast %1099 : f32 to vector<16x16xf32>
    %1101 = arith.mulf %1100, %1 : vector<16x16xf32>
    %1102 = vector.broadcast %1092 : vector<16x1xf32> to vector<16x16xf32>
    %1103 = arith.addf %1101, %1102 : vector<16x16xf32>
    %1104 = vector.broadcast %1098 : vector<1x16xf32> to vector<16x16xf32>
    %1105 = arith.addf %1103, %1104 : vector<16x16xf32>
    %1106 = arith.truncf %1105 : vector<16x16xf32> to vector<16x16xbf16>
    %c0_275 = arith.constant 0 : index
    %c54_276 = arith.constant 54 : index
    %c0_277 = arith.constant 0 : index
    %c0_278 = arith.constant 0 : index
    %1107 = vector.load %arg5[%c0_275, %c54_276, %c0_277, %c0_278] : memref<1x64x16x16xbf16, #tpu.memory_space<vmem>>, vector<1x1x16x16xbf16>
    %1108 = vector.shape_cast %1107 : vector<1x1x16x16xbf16> to vector<16x16xbf16>
    %1109 = vector.shape_cast %1106 : vector<16x16xbf16> to vector<1x1x16x16xbf16>
    tpu.vector_store %arg5[%c0_275, %c54_276, %c0_277, %c0_278], %1109 {strides = array<i32>} : memref<1x64x16x16xbf16, #tpu.memory_space<vmem>>, vector<1x1x16x16xbf16>,
    %c166 = arith.constant 166 : index
    %1110 = memref.load %arg3[%c166] : memref<192xf32, #tpu.memory_space<smem>>
    %1111 = vector.broadcast %1110 : f32 to vector<16x1xf32>
    %1112 = arith.mulf %1111, %7 : vector<16x1xf32>
    %c167 = arith.constant 167 : index
    %1113 = memref.load %arg3[%c167] : memref<192xf32, #tpu.memory_space<smem>>
    %1114 = vector.broadcast %1113 : f32 to vector<1x16xf32>
    %1115 = arith.mulf %1114, %9 : vector<1x16xf32>
    %c55_279 = arith.constant 55 : index
    %1116 = memref.load %arg4[%c55_279] : memref<64xf32, #tpu.memory_space<smem>>
    %1117 = vector.broadcast %1116 : f32 to vector<1x16xf32>
    %1118 = arith.addf %1115, %1117 : vector<1x16xf32>
    %c165 = arith.constant 165 : index
    %1119 = memref.load %arg3[%c165] : memref<192xf32, #tpu.memory_space<smem>>
    %1120 = vector.broadcast %1119 : f32 to vector<16x16xf32>
    %1121 = arith.mulf %1120, %1 : vector<16x16xf32>
    %1122 = vector.broadcast %1112 : vector<16x1xf32> to vector<16x16xf32>
    %1123 = arith.addf %1121, %1122 : vector<16x16xf32>
    %1124 = vector.broadcast %1118 : vector<1x16xf32> to vector<16x16xf32>
    %1125 = arith.addf %1123, %1124 : vector<16x16xf32>
    %1126 = arith.truncf %1125 : vector<16x16xf32> to vector<16x16xbf16>
    %c0_280 = arith.constant 0 : index
    %c55_281 = arith.constant 55 : index
    %c0_282 = arith.constant 0 : index
    %c0_283 = arith.constant 0 : index
    %1127 = vector.load %arg5[%c0_280, %c55_281, %c0_282, %c0_283] : memref<1x64x16x16xbf16, #tpu.memory_space<vmem>>, vector<1x1x16x16xbf16>
    %1128 = vector.shape_cast %1127 : vector<1x1x16x16xbf16> to vector<16x16xbf16>
    %1129 = vector.shape_cast %1126 : vector<16x16xbf16> to vector<1x1x16x16xbf16>
    tpu.vector_store %arg5[%c0_280, %c55_281, %c0_282, %c0_283], %1129 {strides = array<i32>} : memref<1x64x16x16xbf16, #tpu.memory_space<vmem>>, vector<1x1x16x16xbf16>,
    %c169 = arith.constant 169 : index
    %1130 = memref.load %arg3[%c169] : memref<192xf32, #tpu.memory_space<smem>>
    %1131 = vector.broadcast %1130 : f32 to vector<16x1xf32>
    %1132 = arith.mulf %1131, %7 : vector<16x1xf32>
    %c170 = arith.constant 170 : index
    %1133 = memref.load %arg3[%c170] : memref<192xf32, #tpu.memory_space<smem>>
    %1134 = vector.broadcast %1133 : f32 to vector<1x16xf32>
    %1135 = arith.mulf %1134, %9 : vector<1x16xf32>
    %c56_284 = arith.constant 56 : index
    %1136 = memref.load %arg4[%c56_284] : memref<64xf32, #tpu.memory_space<smem>>
    %1137 = vector.broadcast %1136 : f32 to vector<1x16xf32>
    %1138 = arith.addf %1135, %1137 : vector<1x16xf32>
    %c168 = arith.constant 168 : index
    %1139 = memref.load %arg3[%c168] : memref<192xf32, #tpu.memory_space<smem>>
    %1140 = vector.broadcast %1139 : f32 to vector<16x16xf32>
    %1141 = arith.mulf %1140, %1 : vector<16x16xf32>
    %1142 = vector.broadcast %1132 : vector<16x1xf32> to vector<16x16xf32>
    %1143 = arith.addf %1141, %1142 : vector<16x16xf32>
    %1144 = vector.broadcast %1138 : vector<1x16xf32> to vector<16x16xf32>
    %1145 = arith.addf %1143, %1144 : vector<16x16xf32>
    %1146 = arith.truncf %1145 : vector<16x16xf32> to vector<16x16xbf16>
    %c0_285 = arith.constant 0 : index
    %c56_286 = arith.constant 56 : index
    %c0_287 = arith.constant 0 : index
    %c0_288 = arith.constant 0 : index
    %1147 = vector.load %arg5[%c0_285, %c56_286, %c0_287, %c0_288] : memref<1x64x16x16xbf16, #tpu.memory_space<vmem>>, vector<1x1x16x16xbf16>
    %1148 = vector.shape_cast %1147 : vector<1x1x16x16xbf16> to vector<16x16xbf16>
    %1149 = vector.shape_cast %1146 : vector<16x16xbf16> to vector<1x1x16x16xbf16>
    tpu.vector_store %arg5[%c0_285, %c56_286, %c0_287, %c0_288], %1149 {strides = array<i32>} : memref<1x64x16x16xbf16, #tpu.memory_space<vmem>>, vector<1x1x16x16xbf16>,
    %c172 = arith.constant 172 : index
    %1150 = memref.load %arg3[%c172] : memref<192xf32, #tpu.memory_space<smem>>
    %1151 = vector.broadcast %1150 : f32 to vector<16x1xf32>
    %1152 = arith.mulf %1151, %7 : vector<16x1xf32>
    %c173 = arith.constant 173 : index
    %1153 = memref.load %arg3[%c173] : memref<192xf32, #tpu.memory_space<smem>>
    %1154 = vector.broadcast %1153 : f32 to vector<1x16xf32>
    %1155 = arith.mulf %1154, %9 : vector<1x16xf32>
    %c57_289 = arith.constant 57 : index
    %1156 = memref.load %arg4[%c57_289] : memref<64xf32, #tpu.memory_space<smem>>
    %1157 = vector.broadcast %1156 : f32 to vector<1x16xf32>
    %1158 = arith.addf %1155, %1157 : vector<1x16xf32>
    %c171 = arith.constant 171 : index
    %1159 = memref.load %arg3[%c171] : memref<192xf32, #tpu.memory_space<smem>>
    %1160 = vector.broadcast %1159 : f32 to vector<16x16xf32>
    %1161 = arith.mulf %1160, %1 : vector<16x16xf32>
    %1162 = vector.broadcast %1152 : vector<16x1xf32> to vector<16x16xf32>
    %1163 = arith.addf %1161, %1162 : vector<16x16xf32>
    %1164 = vector.broadcast %1158 : vector<1x16xf32> to vector<16x16xf32>
    %1165 = arith.addf %1163, %1164 : vector<16x16xf32>
    %1166 = arith.truncf %1165 : vector<16x16xf32> to vector<16x16xbf16>
    %c0_290 = arith.constant 0 : index
    %c57_291 = arith.constant 57 : index
    %c0_292 = arith.constant 0 : index
    %c0_293 = arith.constant 0 : index
    %1167 = vector.load %arg5[%c0_290, %c57_291, %c0_292, %c0_293] : memref<1x64x16x16xbf16, #tpu.memory_space<vmem>>, vector<1x1x16x16xbf16>
    %1168 = vector.shape_cast %1167 : vector<1x1x16x16xbf16> to vector<16x16xbf16>
    %1169 = vector.shape_cast %1166 : vector<16x16xbf16> to vector<1x1x16x16xbf16>
    tpu.vector_store %arg5[%c0_290, %c57_291, %c0_292, %c0_293], %1169 {strides = array<i32>} : memref<1x64x16x16xbf16, #tpu.memory_space<vmem>>, vector<1x1x16x16xbf16>,
    %c175 = arith.constant 175 : index
    %1170 = memref.load %arg3[%c175] : memref<192xf32, #tpu.memory_space<smem>>
    %1171 = vector.broadcast %1170 : f32 to vector<16x1xf32>
    %1172 = arith.mulf %1171, %7 : vector<16x1xf32>
    %c176 = arith.constant 176 : index
    %1173 = memref.load %arg3[%c176] : memref<192xf32, #tpu.memory_space<smem>>
    %1174 = vector.broadcast %1173 : f32 to vector<1x16xf32>
    %1175 = arith.mulf %1174, %9 : vector<1x16xf32>
    %c58_294 = arith.constant 58 : index
    %1176 = memref.load %arg4[%c58_294] : memref<64xf32, #tpu.memory_space<smem>>
    %1177 = vector.broadcast %1176 : f32 to vector<1x16xf32>
    %1178 = arith.addf %1175, %1177 : vector<1x16xf32>
    %c174 = arith.constant 174 : index
    %1179 = memref.load %arg3[%c174] : memref<192xf32, #tpu.memory_space<smem>>
    %1180 = vector.broadcast %1179 : f32 to vector<16x16xf32>
    %1181 = arith.mulf %1180, %1 : vector<16x16xf32>
    %1182 = vector.broadcast %1172 : vector<16x1xf32> to vector<16x16xf32>
    %1183 = arith.addf %1181, %1182 : vector<16x16xf32>
    %1184 = vector.broadcast %1178 : vector<1x16xf32> to vector<16x16xf32>
    %1185 = arith.addf %1183, %1184 : vector<16x16xf32>
    %1186 = arith.truncf %1185 : vector<16x16xf32> to vector<16x16xbf16>
    %c0_295 = arith.constant 0 : index
    %c58_296 = arith.constant 58 : index
    %c0_297 = arith.constant 0 : index
    %c0_298 = arith.constant 0 : index
    %1187 = vector.load %arg5[%c0_295, %c58_296, %c0_297, %c0_298] : memref<1x64x16x16xbf16, #tpu.memory_space<vmem>>, vector<1x1x16x16xbf16>
    %1188 = vector.shape_cast %1187 : vector<1x1x16x16xbf16> to vector<16x16xbf16>
    %1189 = vector.shape_cast %1186 : vector<16x16xbf16> to vector<1x1x16x16xbf16>
    tpu.vector_store %arg5[%c0_295, %c58_296, %c0_297, %c0_298], %1189 {strides = array<i32>} : memref<1x64x16x16xbf16, #tpu.memory_space<vmem>>, vector<1x1x16x16xbf16>,
    %c178 = arith.constant 178 : index
    %1190 = memref.load %arg3[%c178] : memref<192xf32, #tpu.memory_space<smem>>
    %1191 = vector.broadcast %1190 : f32 to vector<16x1xf32>
    %1192 = arith.mulf %1191, %7 : vector<16x1xf32>
    %c179 = arith.constant 179 : index
    %1193 = memref.load %arg3[%c179] : memref<192xf32, #tpu.memory_space<smem>>
    %1194 = vector.broadcast %1193 : f32 to vector<1x16xf32>
    %1195 = arith.mulf %1194, %9 : vector<1x16xf32>
    %c59_299 = arith.constant 59 : index
    %1196 = memref.load %arg4[%c59_299] : memref<64xf32, #tpu.memory_space<smem>>
    %1197 = vector.broadcast %1196 : f32 to vector<1x16xf32>
    %1198 = arith.addf %1195, %1197 : vector<1x16xf32>
    %c177 = arith.constant 177 : index
    %1199 = memref.load %arg3[%c177] : memref<192xf32, #tpu.memory_space<smem>>
    %1200 = vector.broadcast %1199 : f32 to vector<16x16xf32>
    %1201 = arith.mulf %1200, %1 : vector<16x16xf32>
    %1202 = vector.broadcast %1192 : vector<16x1xf32> to vector<16x16xf32>
    %1203 = arith.addf %1201, %1202 : vector<16x16xf32>
    %1204 = vector.broadcast %1198 : vector<1x16xf32> to vector<16x16xf32>
    %1205 = arith.addf %1203, %1204 : vector<16x16xf32>
    %1206 = arith.truncf %1205 : vector<16x16xf32> to vector<16x16xbf16>
    %c0_300 = arith.constant 0 : index
    %c59_301 = arith.constant 59 : index
    %c0_302 = arith.constant 0 : index
    %c0_303 = arith.constant 0 : index
    %1207 = vector.load %arg5[%c0_300, %c59_301, %c0_302, %c0_303] : memref<1x64x16x16xbf16, #tpu.memory_space<vmem>>, vector<1x1x16x16xbf16>
    %1208 = vector.shape_cast %1207 : vector<1x1x16x16xbf16> to vector<16x16xbf16>
    %1209 = vector.shape_cast %1206 : vector<16x16xbf16> to vector<1x1x16x16xbf16>
    tpu.vector_store %arg5[%c0_300, %c59_301, %c0_302, %c0_303], %1209 {strides = array<i32>} : memref<1x64x16x16xbf16, #tpu.memory_space<vmem>>, vector<1x1x16x16xbf16>,
    %c181 = arith.constant 181 : index
    %1210 = memref.load %arg3[%c181] : memref<192xf32, #tpu.memory_space<smem>>
    %1211 = vector.broadcast %1210 : f32 to vector<16x1xf32>
    %1212 = arith.mulf %1211, %7 : vector<16x1xf32>
    %c182 = arith.constant 182 : index
    %1213 = memref.load %arg3[%c182] : memref<192xf32, #tpu.memory_space<smem>>
    %1214 = vector.broadcast %1213 : f32 to vector<1x16xf32>
    %1215 = arith.mulf %1214, %9 : vector<1x16xf32>
    %c60_304 = arith.constant 60 : index
    %1216 = memref.load %arg4[%c60_304] : memref<64xf32, #tpu.memory_space<smem>>
    %1217 = vector.broadcast %1216 : f32 to vector<1x16xf32>
    %1218 = arith.addf %1215, %1217 : vector<1x16xf32>
    %c180 = arith.constant 180 : index
    %1219 = memref.load %arg3[%c180] : memref<192xf32, #tpu.memory_space<smem>>
    %1220 = vector.broadcast %1219 : f32 to vector<16x16xf32>
    %1221 = arith.mulf %1220, %1 : vector<16x16xf32>
    %1222 = vector.broadcast %1212 : vector<16x1xf32> to vector<16x16xf32>
    %1223 = arith.addf %1221, %1222 : vector<16x16xf32>
    %1224 = vector.broadcast %1218 : vector<1x16xf32> to vector<16x16xf32>
    %1225 = arith.addf %1223, %1224 : vector<16x16xf32>
    %1226 = arith.truncf %1225 : vector<16x16xf32> to vector<16x16xbf16>
    %c0_305 = arith.constant 0 : index
    %c60_306 = arith.constant 60 : index
    %c0_307 = arith.constant 0 : index
    %c0_308 = arith.constant 0 : index
    %1227 = vector.load %arg5[%c0_305, %c60_306, %c0_307, %c0_308] : memref<1x64x16x16xbf16, #tpu.memory_space<vmem>>, vector<1x1x16x16xbf16>
    %1228 = vector.shape_cast %1227 : vector<1x1x16x16xbf16> to vector<16x16xbf16>
    %1229 = vector.shape_cast %1226 : vector<16x16xbf16> to vector<1x1x16x16xbf16>
    tpu.vector_store %arg5[%c0_305, %c60_306, %c0_307, %c0_308], %1229 {strides = array<i32>} : memref<1x64x16x16xbf16, #tpu.memory_space<vmem>>, vector<1x1x16x16xbf16>,
    %c184 = arith.constant 184 : index
    %1230 = memref.load %arg3[%c184] : memref<192xf32, #tpu.memory_space<smem>>
    %1231 = vector.broadcast %1230 : f32 to vector<16x1xf32>
    %1232 = arith.mulf %1231, %7 : vector<16x1xf32>
    %c185 = arith.constant 185 : index
    %1233 = memref.load %arg3[%c185] : memref<192xf32, #tpu.memory_space<smem>>
    %1234 = vector.broadcast %1233 : f32 to vector<1x16xf32>
    %1235 = arith.mulf %1234, %9 : vector<1x16xf32>
    %c61_309 = arith.constant 61 : index
    %1236 = memref.load %arg4[%c61_309] : memref<64xf32, #tpu.memory_space<smem>>
    %1237 = vector.broadcast %1236 : f32 to vector<1x16xf32>
    %1238 = arith.addf %1235, %1237 : vector<1x16xf32>
    %c183 = arith.constant 183 : index
    %1239 = memref.load %arg3[%c183] : memref<192xf32, #tpu.memory_space<smem>>
    %1240 = vector.broadcast %1239 : f32 to vector<16x16xf32>
    %1241 = arith.mulf %1240, %1 : vector<16x16xf32>
    %1242 = vector.broadcast %1232 : vector<16x1xf32> to vector<16x16xf32>
    %1243 = arith.addf %1241, %1242 : vector<16x16xf32>
    %1244 = vector.broadcast %1238 : vector<1x16xf32> to vector<16x16xf32>
    %1245 = arith.addf %1243, %1244 : vector<16x16xf32>
    %1246 = arith.truncf %1245 : vector<16x16xf32> to vector<16x16xbf16>
    %c0_310 = arith.constant 0 : index
    %c61_311 = arith.constant 61 : index
    %c0_312 = arith.constant 0 : index
    %c0_313 = arith.constant 0 : index
    %1247 = vector.load %arg5[%c0_310, %c61_311, %c0_312, %c0_313] : memref<1x64x16x16xbf16, #tpu.memory_space<vmem>>, vector<1x1x16x16xbf16>
    %1248 = vector.shape_cast %1247 : vector<1x1x16x16xbf16> to vector<16x16xbf16>
    %1249 = vector.shape_cast %1246 : vector<16x16xbf16> to vector<1x1x16x16xbf16>
    tpu.vector_store %arg5[%c0_310, %c61_311, %c0_312, %c0_313], %1249 {strides = array<i32>} : memref<1x64x16x16xbf16, #tpu.memory_space<vmem>>, vector<1x1x16x16xbf16>,
    %c187 = arith.constant 187 : index
    %1250 = memref.load %arg3[%c187] : memref<192xf32, #tpu.memory_space<smem>>
    %1251 = vector.broadcast %1250 : f32 to vector<16x1xf32>
    %1252 = arith.mulf %1251, %7 : vector<16x1xf32>
    %c188 = arith.constant 188 : index
    %1253 = memref.load %arg3[%c188] : memref<192xf32, #tpu.memory_space<smem>>
    %1254 = vector.broadcast %1253 : f32 to vector<1x16xf32>
    %1255 = arith.mulf %1254, %9 : vector<1x16xf32>
    %c62_314 = arith.constant 62 : index
    %1256 = memref.load %arg4[%c62_314] : memref<64xf32, #tpu.memory_space<smem>>
    %1257 = vector.broadcast %1256 : f32 to vector<1x16xf32>
    %1258 = arith.addf %1255, %1257 : vector<1x16xf32>
    %c186 = arith.constant 186 : index
    %1259 = memref.load %arg3[%c186] : memref<192xf32, #tpu.memory_space<smem>>
    %1260 = vector.broadcast %1259 : f32 to vector<16x16xf32>
    %1261 = arith.mulf %1260, %1 : vector<16x16xf32>
    %1262 = vector.broadcast %1252 : vector<16x1xf32> to vector<16x16xf32>
    %1263 = arith.addf %1261, %1262 : vector<16x16xf32>
    %1264 = vector.broadcast %1258 : vector<1x16xf32> to vector<16x16xf32>
    %1265 = arith.addf %1263, %1264 : vector<16x16xf32>
    %1266 = arith.truncf %1265 : vector<16x16xf32> to vector<16x16xbf16>
    %c0_315 = arith.constant 0 : index
    %c62_316 = arith.constant 62 : index
    %c0_317 = arith.constant 0 : index
    %c0_318 = arith.constant 0 : index
    %1267 = vector.load %arg5[%c0_315, %c62_316, %c0_317, %c0_318] : memref<1x64x16x16xbf16, #tpu.memory_space<vmem>>, vector<1x1x16x16xbf16>
    %1268 = vector.shape_cast %1267 : vector<1x1x16x16xbf16> to vector<16x16xbf16>
    %1269 = vector.shape_cast %1266 : vector<16x16xbf16> to vector<1x1x16x16xbf16>
    tpu.vector_store %arg5[%c0_315, %c62_316, %c0_317, %c0_318], %1269 {strides = array<i32>} : memref<1x64x16x16xbf16, #tpu.memory_space<vmem>>, vector<1x1x16x16xbf16>,
    %c190 = arith.constant 190 : index
    %1270 = memref.load %arg3[%c190] : memref<192xf32, #tpu.memory_space<smem>>
    %1271 = vector.broadcast %1270 : f32 to vector<16x1xf32>
    %1272 = arith.mulf %1271, %7 : vector<16x1xf32>
    %c191 = arith.constant 191 : index
    %1273 = memref.load %arg3[%c191] : memref<192xf32, #tpu.memory_space<smem>>
    %1274 = vector.broadcast %1273 : f32 to vector<1x16xf32>
    %1275 = arith.mulf %1274, %9 : vector<1x16xf32>
    %c63_319 = arith.constant 63 : index
    %1276 = memref.load %arg4[%c63_319] : memref<64xf32, #tpu.memory_space<smem>>
    %1277 = vector.broadcast %1276 : f32 to vector<1x16xf32>
    %1278 = arith.addf %1275, %1277 : vector<1x16xf32>
    %c189 = arith.constant 189 : index
    %1279 = memref.load %arg3[%c189] : memref<192xf32, #tpu.memory_space<smem>>
    %1280 = vector.broadcast %1279 : f32 to vector<16x16xf32>
    %1281 = arith.mulf %1280, %1 : vector<16x16xf32>
    %1282 = vector.broadcast %1272 : vector<16x1xf32> to vector<16x16xf32>
    %1283 = arith.addf %1281, %1282 : vector<16x16xf32>
    %1284 = vector.broadcast %1278 : vector<1x16xf32> to vector<16x16xf32>
    %1285 = arith.addf %1283, %1284 : vector<16x16xf32>
    %1286 = arith.truncf %1285 : vector<16x16xf32> to vector<16x16xbf16>
    %c0_320 = arith.constant 0 : index
    %c63_321 = arith.constant 63 : index
    %c0_322 = arith.constant 0 : index
    %c0_323 = arith.constant 0 : index
    %1287 = vector.load %arg5[%c0_320, %c63_321, %c0_322, %c0_323] : memref<1x64x16x16xbf16, #tpu.memory_space<vmem>>, vector<1x1x16x16xbf16>
    %1288 = vector.shape_cast %1287 : vector<1x1x16x16xbf16> to vector<16x16xbf16>
    %1289 = vector.shape_cast %1286 : vector<16x16xbf16> to vector<1x1x16x16xbf16>
    tpu.vector_store %arg5[%c0_320, %c63_321, %c0_322, %c0_323], %1289 {strides = array<i32>} : memref<1x64x16x16xbf16, #tpu.memory_space<vmem>>, vector<1x1x16x16xbf16>,
    return
  }
  func.func @transform_0(%arg0: i32, %arg1: i32) -> (i32, i32, i32, i32) {
    %c0_i32 = arith.constant 0 : i32
    %c0_i32_0 = arith.constant 0 : i32
    %c0_i32_1 = arith.constant 0 : i32
    return %arg1, %c0_i32, %arg0, %c0_i32_0 : i32, i32, i32, i32
  }
  func.func @transform_1(%arg0: i32, %arg1: i32) -> i32 {
    %c0_i32 = arith.constant 0 : i32
    %c0_i32_0 = arith.constant 0 : i32
    return %c0_i32 : i32
  }
  func.func @transform_2(%arg0: i32, %arg1: i32) -> i32 {
    %c0_i32 = arith.constant 0 : i32
    %c0_i32_0 = arith.constant 0 : i32
    return %c0_i32 : i32
  }
  func.func @transform_3(%arg0: i32, %arg1: i32) -> (i32, i32, i32, i32) {
    %c0_i32 = arith.constant 0 : i32
    %c0_i32_0 = arith.constant 0 : i32
    %c0_i32_1 = arith.constant 0 : i32
    return %arg1, %c0_i32, %arg0, %c0_i32_0 : i32, i32, i32, i32
  }
}

</mosaic_0001>

<bundles_post_ra>
// kernel: tpu_custom_call.1
= control target key start
LH: loop header
LB: loop body
LE: loop exit
PB: predicated region body
PF: predicated region fallthrough
CT: control target
= control target key end

     0   :  { %8 = vsyncpa [#allocation3], 0  ;;  %s4599_s0 = inlined_call_operand.hbm [shape: f32[2,1,16,16], index: 0, kind: input, shape index: {}]   ;;  %s4600_s1 = inlined_call_operand.hbm [shape: f32[192], index: 1, kind: input, shape index: {}]   ;;  %s4601_s2 = inlined_call_operand.vmem [shape: f32[64], index: 2, kind: input, shape index: {}]   ;;  %s4602_s3 = inlined_call_operand.vmem [shape: bf16[2,64,16,16], index: 3, kind: output, shape index: {}]  }
   0x1   :  { %10 = vsyncpa [#allocation3 + $0x1], 0 }
   0x2   :  { %11 = vsyncpa [#allocation4], 0 }
   0x3   :  { %12 = vsyncpa [#allocation5], 0  ;;  %s3110_s12 = smov 0   ;;  %s3112_s13 = smov 0  }
   0x4   :  { %s3114_s14 = smov 0   ;;  %s3116_s15 = smov 0  }
   0x5   :  { %s3118_s16 = smov 0   ;;  %s3120_s17 = smov 0  }
   0x6 LB: > { %s2234_s18 = sadd.s32 4294967295, %s3083_s17   ;;  %s39_s19 = sadd.s32 1, %s3071_s14  ;;  %s3083_s17 = sphi %s3120_s17, %s18_s17   ;;  %s3079_s16 = sphi %s3118_s16, %s4612_s16   ;;  %s3075_s15 = sphi %s3116_s15, %s4611_s15   ;;  %s3071_s14 = sphi %s3114_s14, %s4610_s14   ;;  %s3067_s13 = sphi %s3112_s13, %s4609_s13   ;;  %s3063_s12 = sphi %s3110_s12, %s4608_s12  }
   0x7   : > { %p46_p0 = scmp.ne.s32.totalorder %s3071_s14, %s3067_s13  ;;  %p47_p1 = scmp.eq.s32.totalorder %s3083_s17, 0 }
   0x8   : > { %p52_p2 = scmp.ne.s32.totalorder %s3067_s13, %s3063_s12  ;;  %p3144_p3 = scmp.eq.s32.totalorder %s2234_s18, 0 }
   0x9   : > { %p48_p4 = por %p47_p1, %p46_p0  ;;  %p2236_p5 = scmp.ge.s32.totalorder %s3083_s17, 1 }
   0xa   : > { %p3151_p6 = por %p3144_p3, %p52_p2  ;;  %p133_p7 = scmp.lt.s32.totalorder %s3083_s17, 3 }
   0xb   : > { %p2912_p9 = scmp.lt.s32.totalorder %s3083_s17, 2  ;;  %s155_s25 = sshll.u32 %s4601_s2, 4  ;;  %s156_s25 = int_to_ptr.vmem [resolvable:$true] %s155_s25 }
   0xc   : > { %p3156_p8 = pnand %p2236_p5, %p133_p7  ;;  %s27_s28 = sadd.s32 1, %s3079_s16 }
   0xd   : > { %p3166_p11 = pnand %p2912_p9, %p48_p4  ;;  %s3085_s29 = smov [#allocation6]  }
   0xe   : > { %p2899_p10 = pneg %p3156_p8  ;;  %s2982_s5 = scalar_lea.vmem %s156_s25, 16 }
   0xf   : > { %p2983_p13 = scmp.ne.s32.totalorder %s156_s25, %s2982_s5  ;;  %p2990_p4 = scmp.lt.s32.totalorder %s156_s25, %s156_s25 }
  0x10   : > { %p3172_p12 = pnand %p2899_p10, %p3144_p3  ;;  %p2991_p5 = scmp.lt.s32.totalorder %s2982_s5, %s2982_s5 }
  0x12   : > { %2902 = dma.hbm_to_smem (!%p3172_p12), %s4600_s1, 32, %s3085_s29, [#allocation4]  }
  0x13   : > { %p2984_p0 = pneg %p3172_p12  ;;  %p2992_p7 = por %p2991_p5, %p2990_p4 }
  0x15   : > { %p2985_p1 = pnand %p2984_p0, %p2983_p13 }
  0x17   : > { %p2986_p2 = pneg %p2985_p1 }
  0x19   : > { %p2993_p9 = pnand %p2992_p7, %p2986_p2 }
  0x1b   : > { %2996 = shalt.err (!%p2993_p9)
}
  0x1c   : > { %s3086_s6 = smov [#allocation7]   ;;  %p28_p10 = scmp.ge.s32.totalorder %s27_s28, 2 }
  0x1d   : > { %2905 = dma.vmem_to_smem (!%p3172_p12), %s156_s25, 16, %s3086_s6, [#allocation5]  }
  0x1e   : > { %s166_s7 = sand.u32 1, %s3071_s14   ;;  %s4614_s28 = smov (%p28_p10, %s27_s28), 0 }
  0x1f   : > { %s2240_s8 = sshll.u32 %s166_s7, 4  ;;  %s2759_s9 = sshll.u32 %s3079_s16, 8 }
  0x20   : > { %s34_s10 = ssub.s32 %s3079_s16, %s4614_s28  ;;  %s178_s18 = scalar_lea.hbm %s4599_s0, %s2759_s9 }
  0x21   : > { %p37_p13 = scmp.eq.s32.totalorder %s34_s10, 0  ;;  %s170_s23 = scalar_lea.vmem [#allocation2], %s2240_s8 }
  0x22   : > { %s179_s24 = sshll.u32 %s170_s23, 4  ;;  %s167_s25 = scalar_lea.sflag [#allocation3], %s166_s7  ;;  %s180_s24 = int_to_ptr.vmem [resolvable:$true] %s179_s24 }
  0x23   : > { %s3198_s27 = scalar_select %p37_p13, %s3071_s14, %s39_s19  }
  0x24   : > { %p2999_p12 = pneg %p3166_p11  ;;  %s3010_s29 = scalar_lea.vmem %s180_s24, 256 }
  0x25   : > { %p3011_p0 = scmp.ne.s32.totalorder %s180_s24, %s3010_s29  ;;  %s3087_s30 = smov [#allocation2]  }
  0x26   : > { %s3015_s4 = sshll.u32 %s3087_s30, 4  ;;  %s3016_s4 = int_to_ptr.vmem [resolvable:$false] %s3015_s4 }
  0x27   : > { %p3013_p1 = pnand %p3011_p0, %p2999_p12  ;;  %s3017_s5 = scalar_lea.vmem %s3016_s4, 512 }
  0x28   : > { %p3018_p4 = scmp.lt.s32.totalorder %s180_s24, %s3016_s4  ;;  %p3019_p5 = scmp.lt.s32.totalorder %s3017_s5, %s3010_s29 }
  0x29   : > { %p3014_p2 = pneg %p3013_p1 }
  0x2a   : > { %p3020_p7 = por %p3019_p5, %p3018_p4 }
  0x2c   : > { %p3021_p9 = pnand %p3020_p7, %p3014_p2 }
  0x2e   : > { %3024 = shalt.err (!%p3021_p9)
}
  0x2f   : > { %s3088_s6 = smov 128   ;;  %s3089_s19 = smov 8  }
  0x30   : > { %2909 = dma.hbm_to_vmem [thread:$0]  (!%p3166_p11), %s178_s18, 256, %s180_s24, %s167_s25, %s3088_s6, %s3088_s6, %s3089_s19  }
  0x31   : > { %191 = sbr.rel (%p3156_p8) target bundleno = 333 (0x14d), region = 32  ;;  %s193_s7 = sand.u32 (!%p3156_p8), 1, %s3067_s13  }
  0x32   : > { %s2244_s8 = sshll.u32 (!%p3156_p8), %s193_s7, 4  ;;  %s194_s9 = scalar_lea.sflag (!%p3156_p8), [#allocation3], %s193_s7 }
  0x33   : > { %s3207_s10 = scalar_lea.vmem (!%p3156_p8), [#allocation2], %s2244_s8 }
  0x36   : > { %3050 = dma.done.wait (%p3151_p6), %s194_s9, 256  }
  0x37   : > { %3052 = vsyncadd (%p3151_p6), %s194_s9, 4294967040 }
  0x38   : > { %3054 = dma.done.wait (%p3144_p3), [#allocation4], 32  }
  0x39   : > { %3056 = vsyncadd (%p3144_p3), [#allocation4], 4294967264 }
  0x3a   : > { %3058 = dma.done.wait (%p3144_p3), [#allocation5], 16  }
  0x3b   : > { %3060 = vsyncadd (%p3144_p3), [#allocation5], 4294967280 }
  0x3c   : > { %210 = sfence }
  0x3d   : > { %p235_p8 = scmp.lt.s32.totalorder %s3075_s15, 1  ;;  %v248_v0 = vlaneseq  ;;  %s2249_s22 = sld [smem:[#allocation6 + $0x1]]  ;;  %v3234_v9 = vld [vmem:[%s3207_s10] sm:$0xff]  ;;  %v3238_v11 = vld [vmem:[%s3207_s10 + $0x8] sm:$0xff]  ;;  %vm285_vm0 = vcmask 125952  }
  0x3e   : > { %s2250_s21 = sld [smem:[#allocation6 + $0x2]] }
  0x3f   : > { %s4616_s15 = smov (!%p235_p8, %s3075_s15), 1  ;;  %v249_v1 = vshrl.u32 %v248_v0, 7  ;;  %v257_v2 = vand.u32 127, %v248_v0  ;;  %s266_s26 = sld [smem:[#allocation7]] }
  0x40   : > { %s269_s11 = sld [smem:[#allocation6]]  ;;  %s2760_s4 = sshll.u32 %s4616_s15, 9 }
  0x41   : > { %v3225_v3 = vcvt.s32.f32 %v257_v2  ;;  %v250_v4 = vadd.s32 8, %v249_v1  ;;  %v3227_v5 = vcvt.s32.f32 %v249_v1  ;;  %s3229_s20 = sld [smem:[#allocation6 + $0x4]]  ;;  %s3270_s8 = scalar_lea.vmem %s4602_s3, %s2760_s4 }
  0x42   : > { %s2254_s12 = sld [smem:[#allocation6 + $0x5]] }
  0x43   : > { %v260_v6 = vstv %s2249_s22  ;;  %v3231_v7 = vcvt.s32.f32 %v250_v4  ;;  %s2255_s18 = sld [smem:[#allocation7 + $0x1]] }
  0x44   : > { %v264_v8 = vstv %s2250_s21  ;;  %s3240_s23 = sld [smem:[#allocation6 + $0x3]]  ;;  %v261_v12 = vmul.f32 %v260_v6, %v3227_v5 }
  0x45   : > { %v265_v10 = vmul.f32 %v264_v8, %v3225_v3  ;;  %v267_v13 = vstv %s266_s26  ;;  %v262_v14 = vmul.f32 %v260_v6, %v3231_v7  ;;  %s3244_s24 = sld [smem:[#allocation6 + $0x7]] }
  0x46   : > { %v270_v15 = vstv %s269_s11  ;;  %s3246_s25 = sld [smem:[#allocation6 + $0x8]] }
  0x47   : > { %v268_v16 = vadd.f32 %v267_v13, %v265_v10  ;;  %v271_v17 = vmul.f32 %v270_v15, %v3234_v9  ;;  %v272_v18 = vmul.f32 %v270_v15, %v3238_v11  ;;  %v289_v19 = vstv %s3229_s20  ;;  %s3251_s29 = sld [smem:[#allocation7 + $0x2]] }
  0x48   : > { %v290_v20 = vmul.f32 %v289_v19, %v3227_v5  ;;  %v293_v21 = vstv %s2254_s12  ;;  %s3254_s30 = sld [smem:[#allocation6 + $0x6]]  ;;  %v291_v27 = vmul.f32 %v289_v19, %v3231_v7 }
  0x49   : > { %v273_v22 = vadd.f32 %v271_v17, %v261_v12  ;;  %v274_v23 = vadd.f32 %v272_v18, %v262_v14  ;;  %v294_v24 = vmul.f32 %v293_v21, %v3225_v3  ;;  %v296_v25 = vstv %s2255_s18  ;;  %s3258_s5 = sld [smem:[#allocation6 + $0xa]] }
  0x4a   : > { %v299_v26 = vstv %s3240_s23  ;;  %s3262_s6 = sld [smem:[#allocation6 + $0xb]] }
  0x4b   : > { %v275_v28 = vadd.f32 %v273_v22, %v268_v16  ;;  %v276_v29 = vadd.f32 %v274_v23, %v268_v16  ;;  %v297_v30 = vadd.f32 %v296_v25, %v294_v24  ;;  %v300_v31 = vmul.f32 %v299_v26, %v3234_v9  ;;  %s3265_s15 = sld [smem:[#allocation7 + $0x3]] }
  0x4c   : > { %v301_v32 = vmul.f32 %v299_v26, %v3238_v11  ;;  %v318_v33 = vstv %s3244_s24  ;;  %v322_v34 = vstv %s3246_s25  ;;  %s3275_s9 = sld [smem:[#allocation6 + $0x9]] }
  0x4d   : > { %v2761_v35 = vpack.c.bf16 %v275_v28, %v275_v28  ;;  %v2762_v36 = vpack.c.bf16 %v276_v29, %v276_v29  ;;  %v302_v37 = vadd.f32 %v300_v31, %v290_v20  ;;  %v319_v38 = vmul.f32 %v318_v33, %v3227_v5  ;;  %s3278_s22 = sld [smem:[#allocation6 + $0xd]] }
  0x4e   : > { %v303_v39 = vadd.f32 %v301_v32, %v291_v27  ;;  %v323_v40 = vmul.f32 %v322_v34, %v3225_v3  ;;  %v325_v41 = vstv %s3251_s29  ;;  %v328_v42 = vstv %s3254_s30  ;;  %s3283_s21 = sld [smem:[#allocation6 + $0xe]] }
  0x4f   : > { %286 = vst.msk [vmem:[%s3270_s8] sm:$0xf] %vm285_vm0, %v2761_v35  ;;  %287 = vst.msk [vmem:[%s3270_s8 + $0x4] sm:$0xf] %vm285_vm0, %v2762_v36  ;;  %v304_v43 = vadd.f32 %v302_v37, %v297_v30  ;;  %v329_v44 = vmul.f32 %v328_v42, %v3234_v9  ;;  %v320_v45 = vmul.f32 %v318_v33, %v3231_v7  ;;  %s3292_s26 = sld [smem:[#allocation7 + $0x4]]  ;;  %v347_v49 = vstv %s3258_s5 }
  0x50   : > { %v330_v46 = vmul.f32 %v328_v42, %v3238_v11  ;;  %v305_v47 = vadd.f32 %v303_v39, %v297_v30  ;;  %v326_v48 = vadd.f32 %v325_v41, %v323_v40  ;;  %v351_v50 = vstv %s3262_s6  ;;  %s3296_s11 = sld [smem:[#allocation6 + $0xc]] }
  0x51   : > { %v2763_v51 = vpack.c.bf16 %v304_v43, %v304_v43  ;;  %v331_v52 = vadd.f32 %v329_v44, %v319_v38  ;;  %v348_v54 = vmul.f32 %v347_v49, %v3227_v5  ;;  %s3299_s20 = sld [smem:[#allocation6 + $0x10]]  ;;  %v352_v56 = vmul.f32 %v351_v50, %v3225_v3 }
  0x52   : > { %v332_v53 = vadd.f32 %v330_v46, %v320_v45  ;;  %v2764_v55 = vpack.c.bf16 %v305_v47, %v305_v47  ;;  %v354_v57 = vstv %s3265_s15  ;;  %v357_v58 = vstv %s3275_s9  ;;  %s3304_s12 = sld [smem:[#allocation6 + $0x11]] }
  0x53   : > { %2259 = vst.msk [vmem:[%s3270_s8 + $0x8] sm:$0xf] %vm285_vm0, %v2763_v51  ;;  %v333_v59 = vadd.f32 %v331_v52, %v326_v48  ;;  %v358_v61 = vmul.f32 %v357_v58, %v3234_v9  ;;  %v349_v62 = vmul.f32 %v347_v49, %v3231_v7  ;;  %s3310_s18 = sld [smem:[#allocation7 + $0x5]]  ;;  %v355_v63 = vadd.f32 %v354_v57, %v352_v56 }
  0x54   : > { %v334_v60 = vadd.f32 %v332_v53, %v326_v48  ;;  %2260 = vst.msk [vmem:[%s3270_s8 + $0xc] sm:$0xf] %vm285_vm0, %v2764_v55  ;;  %v359_v0 = vmul.f32 %v357_v58, %v3238_v11  ;;  %v376_v1 = vstv %s3278_s22  ;;  %v380_v2 = vstv %s3283_s21  ;;  %s3317_s23 = sld [smem:[#allocation6 + $0xf]] }
  0x55   : > { %v2765_v4 = vpack.c.bf16 %v333_v59, %v333_v59  ;;  %v360_v8 = vadd.f32 %v358_v61, %v348_v54  ;;  %v377_v10 = vmul.f32 %v376_v1, %v3227_v5  ;;  %s3320_s24 = sld [smem:[#allocation6 + $0x13]]  ;;  %v381_v13 = vmul.f32 %v380_v2, %v3225_v3 }
  0x56   : > { %v2766_v6 = vpack.c.bf16 %v334_v60, %v334_v60  ;;  %v361_v12 = vadd.f32 %v359_v0, %v349_v62  ;;  %v383_v14 = vstv %s3292_s26  ;;  %v386_v15 = vstv %s3296_s11  ;;  %s3325_s25 = sld [smem:[#allocation6 + $0x14]] }
  0x57   : > { %2267 = vst.msk [vmem:[%s3270_s8 + $0x10] sm:$0xf] %vm285_vm0, %v2765_v4  ;;  %v362_v16 = vadd.f32 %v360_v8, %v355_v63  ;;  %v387_v17 = vmul.f32 %v386_v15, %v3234_v9  ;;  %v378_v18 = vmul.f32 %v376_v1, %v3231_v7  ;;  %v388_v19 = vmul.f32 %v386_v15, %v3238_v11  ;;  %s3334_s29 = sld [smem:[#allocation7 + $0x6]] }
  0x58   : > { %2268 = vst.msk [vmem:[%s3270_s8 + $0x14] sm:$0xf] %vm285_vm0, %v2766_v6  ;;  %v363_v20 = vadd.f32 %v361_v12, %v355_v63  ;;  %v384_v21 = vadd.f32 %v383_v14, %v381_v13  ;;  %v405_v22 = vstv %s3299_s20  ;;  %v409_v23 = vstv %s3304_s12  ;;  %s3338_s30 = sld [smem:[#allocation6 + $0x12]] }
  0x59   : > { %v2767_v24 = vpack.c.bf16 %v362_v16, %v362_v16  ;;  %v389_v25 = vadd.f32 %v387_v17, %v377_v10  ;;  %v390_v26 = vadd.f32 %v388_v19, %v378_v18  ;;  %v406_v27 = vmul.f32 %v405_v22, %v3227_v5  ;;  %s3341_s4 = sld [smem:[#allocation6 + $0x16]] }
  0x5a   : > { %v2768_v28 = vpack.c.bf16 %v363_v20, %v363_v20  ;;  %v410_v29 = vmul.f32 %v409_v23, %v3225_v3  ;;  %v412_v30 = vstv %s3310_s18  ;;  %v415_v31 = vstv %s3317_s23  ;;  %s3346_s5 = sld [smem:[#allocation6 + $0x17]] }
  0x5b   : > { %2275 = vst.msk [vmem:[%s3270_s8 + $0x18] sm:$0xf] %vm285_vm0, %v2767_v24  ;;  %v391_v32 = vadd.f32 %v389_v25, %v384_v21  ;;  %v392_v33 = vadd.f32 %v390_v26, %v384_v21  ;;  %v416_v34 = vmul.f32 %v415_v31, %v3234_v9  ;;  %v407_v35 = vmul.f32 %v405_v22, %v3231_v7  ;;  %s3352_s6 = sld [smem:[#allocation7 + $0x7]] }
  0x5c   : > { %2276 = vst.msk [vmem:[%s3270_s8 + $0x1c] sm:$0xf] %vm285_vm0, %v2768_v28  ;;  %v413_v36 = vadd.f32 %v412_v30, %v410_v29  ;;  %v417_v37 = vmul.f32 %v415_v31, %v3238_v11  ;;  %v434_v38 = vstv %s3320_s24  ;;  %v438_v39 = vstv %s3325_s25  ;;  %s3359_s15 = sld [smem:[#allocation6 + $0x15]] }
  0x5d   : > { %v2769_v40 = vpack.c.bf16 %v391_v32, %v391_v32  ;;  %v2770_v41 = vpack.c.bf16 %v392_v33, %v392_v33  ;;  %v418_v42 = vadd.f32 %v416_v34, %v406_v27  ;;  %v435_v43 = vmul.f32 %v434_v38, %v3227_v5  ;;  %s3362_s19 = sld [smem:[#allocation6 + $0x19]] }
  0x5e   : > { %v419_v44 = vadd.f32 %v417_v37, %v407_v35  ;;  %v439_v45 = vmul.f32 %v438_v39, %v3225_v3  ;;  %v441_v46 = vstv %s3334_s29  ;;  %v444_v47 = vstv %s3338_s30  ;;  %s3367_s7 = sld [smem:[#allocation6 + $0x1a]] }
  0x5f   : > { %2283 = vst.msk [vmem:[%s3270_s8 + $0x20] sm:$0xf] %vm285_vm0, %v2769_v40  ;;  %2284 = vst.msk [vmem:[%s3270_s8 + $0x24] sm:$0xf] %vm285_vm0, %v2770_v41  ;;  %v420_v48 = vadd.f32 %v418_v42, %v413_v36  ;;  %v445_v49 = vmul.f32 %v444_v47, %v3234_v9  ;;  %v436_v50 = vmul.f32 %v434_v38, %v3231_v7  ;;  %s3376_s9 = sld [smem:[#allocation7 + $0x8]]  ;;  %v463_v54 = vstv %s3341_s4 }
  0x60   : > { %v446_v51 = vmul.f32 %v444_v47, %v3238_v11  ;;  %v421_v52 = vadd.f32 %v419_v44, %v413_v36  ;;  %v442_v53 = vadd.f32 %v441_v46, %v439_v45  ;;  %v467_v55 = vstv %s3346_s5  ;;  %s3380_s22 = sld [smem:[#allocation6 + $0x18]] }
  0x61   : > { %v2771_v56 = vpack.c.bf16 %v420_v48, %v420_v48  ;;  %v447_v57 = vadd.f32 %v445_v49, %v435_v43  ;;  %v464_v59 = vmul.f32 %v463_v54, %v3227_v5  ;;  %s3383_s21 = sld [smem:[#allocation6 + $0x1c]]  ;;  %v468_v61 = vmul.f32 %v467_v55, %v3225_v3 }
  0x62   : > { %v448_v58 = vadd.f32 %v446_v51, %v436_v50  ;;  %v2772_v60 = vpack.c.bf16 %v421_v52, %v421_v52  ;;  %v470_v62 = vstv %s3352_s6  ;;  %v473_v63 = vstv %s3359_s15  ;;  %s3388_s26 = sld [smem:[#allocation6 + $0x1d]] }
  0x63   : > { %2291 = vst.msk [vmem:[%s3270_s8 + $0x28] sm:$0xf] %vm285_vm0, %v2771_v56  ;;  %v449_v0 = vadd.f32 %v447_v57, %v442_v53  ;;  %v474_v2 = vmul.f32 %v473_v63, %v3234_v9  ;;  %v465_v4 = vmul.f32 %v463_v54, %v3231_v7  ;;  %s3394_s11 = sld [smem:[#allocation7 + $0x9]]  ;;  %v471_v6 = vadd.f32 %v470_v62, %v468_v61 }
  0x64   : > { %v450_v1 = vadd.f32 %v448_v58, %v442_v53  ;;  %2292 = vst.msk [vmem:[%s3270_s8 + $0x2c] sm:$0xf] %vm285_vm0, %v2772_v60  ;;  %v475_v8 = vmul.f32 %v473_v63, %v3238_v11  ;;  %v492_v10 = vstv %s3362_s19  ;;  %v496_v12 = vstv %s3367_s7  ;;  %s3401_s20 = sld [smem:[#allocation6 + $0x1b]] }
  0x65   : > { %v2773_v13 = vpack.c.bf16 %v449_v0, %v449_v0  ;;  %v476_v15 = vadd.f32 %v474_v2, %v464_v59  ;;  %v493_v16 = vmul.f32 %v492_v10, %v3227_v5  ;;  %s3404_s12 = sld [smem:[#allocation6 + $0x1f]]  ;;  %v497_v18 = vmul.f32 %v496_v12, %v3225_v3 }
  0x66   : > { %v2774_v14 = vpack.c.bf16 %v450_v1, %v450_v1  ;;  %v477_v17 = vadd.f32 %v475_v8, %v465_v4  ;;  %v499_v19 = vstv %s3376_s9  ;;  %v502_v20 = vstv %s3380_s22  ;;  %s3409_s18 = sld [smem:[#allocation6 + $0x20]] }
  0x67   : > { %2299 = vst.msk [vmem:[%s3270_s8 + $0x30] sm:$0xf] %vm285_vm0, %v2773_v13  ;;  %v478_v21 = vadd.f32 %v476_v15, %v471_v6  ;;  %v503_v22 = vmul.f32 %v502_v20, %v3234_v9  ;;  %v494_v23 = vmul.f32 %v492_v10, %v3231_v7  ;;  %v504_v24 = vmul.f32 %v502_v20, %v3238_v11  ;;  %s3418_s23 = sld [smem:[#allocation7 + $0xa]] }
  0x68   : > { %2300 = vst.msk [vmem:[%s3270_s8 + $0x34] sm:$0xf] %vm285_vm0, %v2774_v14  ;;  %v479_v25 = vadd.f32 %v477_v17, %v471_v6  ;;  %v500_v26 = vadd.f32 %v499_v19, %v497_v18  ;;  %v521_v27 = vstv %s3383_s21  ;;  %v525_v28 = vstv %s3388_s26  ;;  %s3422_s24 = sld [smem:[#allocation6 + $0x1e]] }
  0x69   : > { %v2775_v29 = vpack.c.bf16 %v478_v21, %v478_v21  ;;  %v505_v30 = vadd.f32 %v503_v22, %v493_v16  ;;  %v506_v31 = vadd.f32 %v504_v24, %v494_v23  ;;  %v522_v32 = vmul.f32 %v521_v27, %v3227_v5  ;;  %s3425_s25 = sld [smem:[#allocation6 + $0x22]] }
  0x6a   : > { %v2776_v33 = vpack.c.bf16 %v479_v25, %v479_v25  ;;  %v526_v34 = vmul.f32 %v525_v28, %v3225_v3  ;;  %v528_v35 = vstv %s3394_s11  ;;  %v531_v36 = vstv %s3401_s20  ;;  %s3430_s29 = sld [smem:[#allocation6 + $0x23]] }
  0x6b   : > { %2307 = vst.msk [vmem:[%s3270_s8 + $0x38] sm:$0xf] %vm285_vm0, %v2775_v29  ;;  %v507_v37 = vadd.f32 %v505_v30, %v500_v26  ;;  %v508_v38 = vadd.f32 %v506_v31, %v500_v26  ;;  %v532_v39 = vmul.f32 %v531_v36, %v3234_v9  ;;  %v523_v40 = vmul.f32 %v521_v27, %v3231_v7  ;;  %s3436_s30 = sld [smem:[#allocation7 + $0xb]] }
  0x6c   : > { %2308 = vst.msk [vmem:[%s3270_s8 + $0x3c] sm:$0xf] %vm285_vm0, %v2776_v33  ;;  %v529_v41 = vadd.f32 %v528_v35, %v526_v34  ;;  %v533_v42 = vmul.f32 %v531_v36, %v3238_v11  ;;  %v550_v43 = vstv %s3404_s12  ;;  %v554_v44 = vstv %s3409_s18  ;;  %s3443_s4 = sld [smem:[#allocation6 + $0x21]] }
  0x6d   : > { %v2777_v45 = vpack.c.bf16 %v507_v37, %v507_v37  ;;  %v2778_v46 = vpack.c.bf16 %v508_v38, %v508_v38  ;;  %v534_v47 = vadd.f32 %v532_v39, %v522_v32  ;;  %v551_v48 = vmul.f32 %v550_v43, %v3227_v5  ;;  %s3446_s5 = sld [smem:[#allocation6 + $0x25]] }
  0x6e   : > { %v535_v49 = vadd.f32 %v533_v42, %v523_v40  ;;  %v555_v50 = vmul.f32 %v554_v44, %v3225_v3  ;;  %v557_v51 = vstv %s3418_s23  ;;  %v560_v52 = vstv %s3422_s24  ;;  %s3451_s6 = sld [smem:[#allocation6 + $0x26]] }
  0x6f   : > { %2315 = vst.msk [vmem:[%s3270_s8 + $0x40] sm:$0xf] %vm285_vm0, %v2777_v45  ;;  %2316 = vst.msk [vmem:[%s3270_s8 + $0x44] sm:$0xf] %vm285_vm0, %v2778_v46  ;;  %v536_v53 = vadd.f32 %v534_v47, %v529_v41  ;;  %v561_v54 = vmul.f32 %v560_v52, %v3234_v9  ;;  %v552_v55 = vmul.f32 %v550_v43, %v3231_v7  ;;  %s3460_s15 = sld [smem:[#allocation7 + $0xc]]  ;;  %v579_v59 = vstv %s3425_s25 }
  0x70   : > { %v562_v56 = vmul.f32 %v560_v52, %v3238_v11  ;;  %v537_v57 = vadd.f32 %v535_v49, %v529_v41  ;;  %v558_v58 = vadd.f32 %v557_v51, %v555_v50  ;;  %v583_v60 = vstv %s3430_s29  ;;  %s3464_s19 = sld [smem:[#allocation6 + $0x24]] }
  0x71   : > { %v2779_v61 = vpack.c.bf16 %v536_v53, %v536_v53  ;;  %v563_v62 = vadd.f32 %v561_v54, %v551_v48  ;;  %v580_v0 = vmul.f32 %v579_v59, %v3227_v5  ;;  %s3467_s7 = sld [smem:[#allocation6 + $0x28]]  ;;  %v584_v2 = vmul.f32 %v583_v60, %v3225_v3 }
  0x72   : > { %v564_v63 = vadd.f32 %v562_v56, %v552_v55  ;;  %v2780_v1 = vpack.c.bf16 %v537_v57, %v537_v57  ;;  %v586_v4 = vstv %s3436_s30  ;;  %v589_v6 = vstv %s3443_s4  ;;  %s3472_s9 = sld [smem:[#allocation6 + $0x29]] }
  0x73   : > { %2323 = vst.msk [vmem:[%s3270_s8 + $0x48] sm:$0xf] %vm285_vm0, %v2779_v61  ;;  %v565_v8 = vadd.f32 %v563_v62, %v558_v58  ;;  %v590_v12 = vmul.f32 %v589_v6, %v3234_v9  ;;  %v581_v13 = vmul.f32 %v579_v59, %v3231_v7  ;;  %s3478_s22 = sld [smem:[#allocation7 + $0xd]]  ;;  %v587_v14 = vadd.f32 %v586_v4, %v584_v2 }
  0x74   : > { %v566_v10 = vadd.f32 %v564_v63, %v558_v58  ;;  %2324 = vst.msk [vmem:[%s3270_s8 + $0x4c] sm:$0xf] %vm285_vm0, %v2780_v1  ;;  %v591_v15 = vmul.f32 %v589_v6, %v3238_v11  ;;  %v608_v16 = vstv %s3446_s5  ;;  %v612_v17 = vstv %s3451_s6  ;;  %s3485_s21 = sld [smem:[#allocation6 + $0x27]] }
  0x75   : > { %v2781_v18 = vpack.c.bf16 %v565_v8, %v565_v8  ;;  %v592_v20 = vadd.f32 %v590_v12, %v580_v0  ;;  %v609_v21 = vmul.f32 %v608_v16, %v3227_v5  ;;  %s3488_s26 = sld [smem:[#allocation6 + $0x2b]]  ;;  %v613_v23 = vmul.f32 %v612_v17, %v3225_v3 }
  0x76   : > { %v2782_v19 = vpack.c.bf16 %v566_v10, %v566_v10  ;;  %v593_v22 = vadd.f32 %v591_v15, %v581_v13  ;;  %v615_v24 = vstv %s3460_s15  ;;  %v618_v25 = vstv %s3464_s19  ;;  %s3493_s11 = sld [smem:[#allocation6 + $0x2c]] }
  0x77   : > { %2331 = vst.msk [vmem:[%s3270_s8 + $0x50] sm:$0xf] %vm285_vm0, %v2781_v18  ;;  %v594_v26 = vadd.f32 %v592_v20, %v587_v14  ;;  %v619_v27 = vmul.f32 %v618_v25, %v3234_v9  ;;  %v610_v28 = vmul.f32 %v608_v16, %v3231_v7  ;;  %v620_v29 = vmul.f32 %v618_v25, %v3238_v11  ;;  %s3502_s20 = sld [smem:[#allocation7 + $0xe]] }
  0x78   : > { %2332 = vst.msk [vmem:[%s3270_s8 + $0x54] sm:$0xf] %vm285_vm0, %v2782_v19  ;;  %v595_v30 = vadd.f32 %v593_v22, %v587_v14  ;;  %v616_v31 = vadd.f32 %v615_v24, %v613_v23  ;;  %v637_v32 = vstv %s3467_s7  ;;  %v641_v33 = vstv %s3472_s9  ;;  %s3506_s12 = sld [smem:[#allocation6 + $0x2a]] }
  0x79   : > { %v2783_v34 = vpack.c.bf16 %v594_v26, %v594_v26  ;;  %v621_v35 = vadd.f32 %v619_v27, %v609_v21  ;;  %v622_v36 = vadd.f32 %v620_v29, %v610_v28  ;;  %v638_v37 = vmul.f32 %v637_v32, %v3227_v5  ;;  %s3509_s18 = sld [smem:[#allocation6 + $0x2e]] }
  0x7a   : > { %v2784_v38 = vpack.c.bf16 %v595_v30, %v595_v30  ;;  %v642_v39 = vmul.f32 %v641_v33, %v3225_v3  ;;  %v644_v40 = vstv %s3478_s22  ;;  %v647_v41 = vstv %s3485_s21  ;;  %s3514_s23 = sld [smem:[#allocation6 + $0x2f]] }
  0x7b   : > { %2339 = vst.msk [vmem:[%s3270_s8 + $0x58] sm:$0xf] %vm285_vm0, %v2783_v34  ;;  %v623_v42 = vadd.f32 %v621_v35, %v616_v31  ;;  %v624_v43 = vadd.f32 %v622_v36, %v616_v31  ;;  %v648_v44 = vmul.f32 %v647_v41, %v3234_v9  ;;  %v639_v45 = vmul.f32 %v637_v32, %v3231_v7  ;;  %s3520_s24 = sld [smem:[#allocation7 + $0xf]] }
  0x7c   : > { %2340 = vst.msk [vmem:[%s3270_s8 + $0x5c] sm:$0xf] %vm285_vm0, %v2784_v38  ;;  %v645_v46 = vadd.f32 %v644_v40, %v642_v39  ;;  %v649_v47 = vmul.f32 %v647_v41, %v3238_v11  ;;  %v666_v48 = vstv %s3488_s26  ;;  %v670_v49 = vstv %s3493_s11  ;;  %s3527_s25 = sld [smem:[#allocation6 + $0x2d]] }
  0x7d   : > { %v2785_v50 = vpack.c.bf16 %v623_v42, %v623_v42  ;;  %v2786_v51 = vpack.c.bf16 %v624_v43, %v624_v43  ;;  %v650_v52 = vadd.f32 %v648_v44, %v638_v37  ;;  %v667_v53 = vmul.f32 %v666_v48, %v3227_v5  ;;  %s3530_s29 = sld [smem:[#allocation6 + $0x31]] }
  0x7e   : > { %v651_v54 = vadd.f32 %v649_v47, %v639_v45  ;;  %v671_v55 = vmul.f32 %v670_v49, %v3225_v3  ;;  %v673_v56 = vstv %s3502_s20  ;;  %v676_v57 = vstv %s3506_s12  ;;  %s3535_s30 = sld [smem:[#allocation6 + $0x32]] }
  0x7f   : > { %2347 = vst.msk [vmem:[%s3270_s8 + $0x60] sm:$0xf] %vm285_vm0, %v2785_v50  ;;  %2348 = vst.msk [vmem:[%s3270_s8 + $0x64] sm:$0xf] %vm285_vm0, %v2786_v51  ;;  %v652_v58 = vadd.f32 %v650_v52, %v645_v46  ;;  %v677_v59 = vmul.f32 %v676_v57, %v3234_v9  ;;  %v668_v60 = vmul.f32 %v666_v48, %v3231_v7  ;;  %s3544_s4 = sld [smem:[#allocation7 + $0x10]]  ;;  %v695_v0 = vstv %s3509_s18 }
  0x80   : > { %v678_v61 = vmul.f32 %v676_v57, %v3238_v11  ;;  %v653_v62 = vadd.f32 %v651_v54, %v645_v46  ;;  %v674_v63 = vadd.f32 %v673_v56, %v671_v55  ;;  %v699_v1 = vstv %s3514_s23  ;;  %s3548_s5 = sld [smem:[#allocation6 + $0x30]] }
  0x81   : > { %v2787_v2 = vpack.c.bf16 %v652_v58, %v652_v58  ;;  %v679_v4 = vadd.f32 %v677_v59, %v667_v53  ;;  %v696_v8 = vmul.f32 %v695_v0, %v3227_v5  ;;  %s3551_s6 = sld [smem:[#allocation6 + $0x34]]  ;;  %v700_v12 = vmul.f32 %v699_v1, %v3225_v3 }
  0x82   : > { %v680_v6 = vadd.f32 %v678_v61, %v668_v60  ;;  %v2788_v10 = vpack.c.bf16 %v653_v62, %v653_v62  ;;  %v702_v13 = vstv %s3520_s24  ;;  %v705_v14 = vstv %s3527_s25  ;;  %s3556_s15 = sld [smem:[#allocation6 + $0x35]] }
  0x83   : > { %2355 = vst.msk [vmem:[%s3270_s8 + $0x68] sm:$0xf] %vm285_vm0, %v2787_v2  ;;  %v681_v15 = vadd.f32 %v679_v4, %v674_v63  ;;  %v706_v17 = vmul.f32 %v705_v14, %v3234_v9  ;;  %v697_v18 = vmul.f32 %v695_v0, %v3231_v7  ;;  %s3562_s19 = sld [smem:[#allocation7 + $0x11]]  ;;  %v703_v19 = vadd.f32 %v702_v13, %v700_v12 }
  0x84   : > { %v682_v16 = vadd.f32 %v680_v6, %v674_v63  ;;  %2356 = vst.msk [vmem:[%s3270_s8 + $0x6c] sm:$0xf] %vm285_vm0, %v2788_v10  ;;  %v707_v20 = vmul.f32 %v705_v14, %v3238_v11  ;;  %v724_v21 = vstv %s3530_s29  ;;  %v728_v22 = vstv %s3535_s30  ;;  %s3569_s7 = sld [smem:[#allocation6 + $0x33]] }
  0x85   : > { %v2789_v23 = vpack.c.bf16 %v681_v15, %v681_v15  ;;  %v708_v25 = vadd.f32 %v706_v17, %v696_v8  ;;  %v725_v26 = vmul.f32 %v724_v21, %v3227_v5  ;;  %s3572_s9 = sld [smem:[#allocation6 + $0x37]]  ;;  %v729_v28 = vmul.f32 %v728_v22, %v3225_v3 }
  0x86   : > { %v2790_v24 = vpack.c.bf16 %v682_v16, %v682_v16  ;;  %v709_v27 = vadd.f32 %v707_v20, %v697_v18  ;;  %v731_v29 = vstv %s3544_s4  ;;  %v734_v30 = vstv %s3548_s5  ;;  %s3577_s22 = sld [smem:[#allocation6 + $0x38]] }
  0x87   : > { %2363 = vst.msk [vmem:[%s3270_s8 + $0x70] sm:$0xf] %vm285_vm0, %v2789_v23  ;;  %v710_v31 = vadd.f32 %v708_v25, %v703_v19  ;;  %v735_v32 = vmul.f32 %v734_v30, %v3234_v9  ;;  %v726_v33 = vmul.f32 %v724_v21, %v3231_v7  ;;  %v736_v34 = vmul.f32 %v734_v30, %v3238_v11  ;;  %s3586_s21 = sld [smem:[#allocation7 + $0x12]] }
  0x88   : > { %2364 = vst.msk [vmem:[%s3270_s8 + $0x74] sm:$0xf] %vm285_vm0, %v2790_v24  ;;  %v711_v35 = vadd.f32 %v709_v27, %v703_v19  ;;  %v732_v36 = vadd.f32 %v731_v29, %v729_v28  ;;  %v753_v37 = vstv %s3551_s6  ;;  %v757_v38 = vstv %s3556_s15  ;;  %s3590_s26 = sld [smem:[#allocation6 + $0x36]] }
  0x89   : > { %v2791_v39 = vpack.c.bf16 %v710_v31, %v710_v31  ;;  %v737_v40 = vadd.f32 %v735_v32, %v725_v26  ;;  %v738_v41 = vadd.f32 %v736_v34, %v726_v33  ;;  %v754_v42 = vmul.f32 %v753_v37, %v3227_v5  ;;  %s3593_s11 = sld [smem:[#allocation6 + $0x3a]] }
  0x8a   : > { %v2792_v43 = vpack.c.bf16 %v711_v35, %v711_v35  ;;  %v758_v44 = vmul.f32 %v757_v38, %v3225_v3  ;;  %v760_v45 = vstv %s3562_s19  ;;  %v763_v46 = vstv %s3569_s7  ;;  %s3598_s20 = sld [smem:[#allocation6 + $0x3b]] }
  0x8b   : > { %2371 = vst.msk [vmem:[%s3270_s8 + $0x78] sm:$0xf] %vm285_vm0, %v2791_v39  ;;  %v739_v47 = vadd.f32 %v737_v40, %v732_v36  ;;  %v740_v48 = vadd.f32 %v738_v41, %v732_v36  ;;  %v764_v49 = vmul.f32 %v763_v46, %v3234_v9  ;;  %v755_v50 = vmul.f32 %v753_v37, %v3231_v7  ;;  %s3604_s12 = sld [smem:[#allocation7 + $0x13]] }
  0x8c   : > { %2372 = vst.msk [vmem:[%s3270_s8 + $0x7c] sm:$0xf] %vm285_vm0, %v2792_v43  ;;  %v761_v51 = vadd.f32 %v760_v45, %v758_v44  ;;  %v765_v52 = vmul.f32 %v763_v46, %v3238_v11  ;;  %v782_v53 = vstv %s3572_s9  ;;  %v786_v54 = vstv %s3577_s22  ;;  %s3611_s18 = sld [smem:[#allocation6 + $0x39]] }
  0x8d   : > { %v2793_v55 = vpack.c.bf16 %v739_v47, %v739_v47  ;;  %v2794_v56 = vpack.c.bf16 %v740_v48, %v740_v48  ;;  %v766_v57 = vadd.f32 %v764_v49, %v754_v42  ;;  %v783_v58 = vmul.f32 %v782_v53, %v3227_v5  ;;  %s3614_s23 = sld [smem:[#allocation6 + $0x3d]] }
  0x8e   : > { %v767_v59 = vadd.f32 %v765_v52, %v755_v50  ;;  %v787_v60 = vmul.f32 %v786_v54, %v3225_v3  ;;  %v789_v61 = vstv %s3586_s21  ;;  %v792_v62 = vstv %s3590_s26  ;;  %s3619_s24 = sld [smem:[#allocation6 + $0x3e]] }
  0x8f   : > { %2379 = vst.msk [vmem:[%s3270_s8 + $0x80] sm:$0xf] %vm285_vm0, %v2793_v55  ;;  %2380 = vst.msk [vmem:[%s3270_s8 + $0x84] sm:$0xf] %vm285_vm0, %v2794_v56  ;;  %v768_v63 = vadd.f32 %v766_v57, %v761_v51  ;;  %v793_v0 = vmul.f32 %v792_v62, %v3234_v9  ;;  %v784_v1 = vmul.f32 %v782_v53, %v3231_v7  ;;  %s3628_s25 = sld [smem:[#allocation7 + $0x14]]  ;;  %v811_v8 = vstv %s3593_s11 }
  0x90   : > { %v794_v2 = vmul.f32 %v792_v62, %v3238_v11  ;;  %v769_v4 = vadd.f32 %v767_v59, %v761_v51  ;;  %v790_v6 = vadd.f32 %v789_v61, %v787_v60  ;;  %v815_v10 = vstv %s3598_s20  ;;  %s3632_s29 = sld [smem:[#allocation6 + $0x3c]] }
  0x91   : > { %v2795_v12 = vpack.c.bf16 %v768_v63, %v768_v63  ;;  %v795_v13 = vadd.f32 %v793_v0, %v783_v58  ;;  %v812_v15 = vmul.f32 %v811_v8, %v3227_v5  ;;  %s3635_s30 = sld [smem:[#allocation6 + $0x40]]  ;;  %v816_v17 = vmul.f32 %v815_v10, %v3225_v3 }
  0x92   : > { %v796_v14 = vadd.f32 %v794_v2, %v784_v1  ;;  %v2796_v16 = vpack.c.bf16 %v769_v4, %v769_v4  ;;  %v818_v18 = vstv %s3604_s12  ;;  %v821_v19 = vstv %s3611_s18  ;;  %s3640_s4 = sld [smem:[#allocation6 + $0x41]] }
  0x93   : > { %2387 = vst.msk [vmem:[%s3270_s8 + $0x88] sm:$0xf] %vm285_vm0, %v2795_v12  ;;  %v797_v20 = vadd.f32 %v795_v13, %v790_v6  ;;  %v822_v22 = vmul.f32 %v821_v19, %v3234_v9  ;;  %v813_v23 = vmul.f32 %v811_v8, %v3231_v7  ;;  %s3646_s5 = sld [smem:[#allocation7 + $0x15]]  ;;  %v819_v24 = vadd.f32 %v818_v18, %v816_v17 }
  0x94   : > { %v798_v21 = vadd.f32 %v796_v14, %v790_v6  ;;  %2388 = vst.msk [vmem:[%s3270_s8 + $0x8c] sm:$0xf] %vm285_vm0, %v2796_v16  ;;  %v823_v25 = vmul.f32 %v821_v19, %v3238_v11  ;;  %v840_v26 = vstv %s3614_s23  ;;  %v844_v27 = vstv %s3619_s24  ;;  %s3653_s6 = sld [smem:[#allocation6 + $0x3f]] }
  0x95   : > { %v2797_v28 = vpack.c.bf16 %v797_v20, %v797_v20  ;;  %v824_v30 = vadd.f32 %v822_v22, %v812_v15  ;;  %v841_v31 = vmul.f32 %v840_v26, %v3227_v5  ;;  %s3656_s15 = sld [smem:[#allocation6 + $0x43]]  ;;  %v845_v33 = vmul.f32 %v844_v27, %v3225_v3 }
  0x96   : > { %v2798_v29 = vpack.c.bf16 %v798_v21, %v798_v21  ;;  %v825_v32 = vadd.f32 %v823_v25, %v813_v23  ;;  %v847_v34 = vstv %s3628_s25  ;;  %v850_v35 = vstv %s3632_s29  ;;  %s3661_s19 = sld [smem:[#allocation6 + $0x44]]  ;;  %v3729_v25 = vld [vmem:[%s3207_s10] sm:$0xff] }
  0x97   : > { %2395 = vst.msk [vmem:[%s3270_s8 + $0x90] sm:$0xf] %vm285_vm0, %v2797_v28  ;;  %v826_v36 = vadd.f32 %v824_v30, %v819_v24  ;;  %v851_v37 = vmul.f32 %v850_v35, %v3234_v9  ;;  %v842_v38 = vmul.f32 %v840_v26, %v3231_v7  ;;  %v852_v39 = vmul.f32 %v850_v35, %v3238_v11  ;;  %s3670_s7 = sld [smem:[#allocation7 + $0x16]] }
  0x98   : > { %2396 = vst.msk [vmem:[%s3270_s8 + $0x94] sm:$0xf] %vm285_vm0, %v2798_v29  ;;  %v827_v40 = vadd.f32 %v825_v32, %v819_v24  ;;  %v848_v41 = vadd.f32 %v847_v34, %v845_v33  ;;  %v869_v42 = vstv %s3635_s30  ;;  %v873_v43 = vstv %s3640_s4  ;;  %s3674_s9 = sld [smem:[#allocation6 + $0x42]]  ;;  %v3738_v29 = vld [vmem:[%s3207_s10 + $0x8] sm:$0xff] }
  0x99   : > { %v2799_v44 = vpack.c.bf16 %v826_v36, %v826_v36  ;;  %v853_v45 = vadd.f32 %v851_v37, %v841_v31  ;;  %v854_v46 = vadd.f32 %v852_v39, %v842_v38  ;;  %v870_v47 = vmul.f32 %v869_v42, %v3227_v5  ;;  %s3677_s22 = sld [smem:[#allocation6 + $0x46]] }
  0x9a   : > { %v2800_v48 = vpack.c.bf16 %v827_v40, %v827_v40  ;;  %v874_v49 = vmul.f32 %v873_v43, %v3225_v3  ;;  %v876_v50 = vstv %s3646_s5  ;;  %v879_v51 = vstv %s3653_s6  ;;  %s3682_s21 = sld [smem:[#allocation6 + $0x47]] }
  0x9b   : > { %2403 = vst.msk [vmem:[%s3270_s8 + $0x98] sm:$0xf] %vm285_vm0, %v2799_v44  ;;  %v855_v52 = vadd.f32 %v853_v45, %v848_v41  ;;  %v856_v53 = vadd.f32 %v854_v46, %v848_v41  ;;  %v880_v54 = vmul.f32 %v879_v51, %v3234_v9  ;;  %v871_v55 = vmul.f32 %v869_v42, %v3231_v7  ;;  %s3688_s26 = sld [smem:[#allocation7 + $0x17]] }
  0x9c   : > { %2404 = vst.msk [vmem:[%s3270_s8 + $0x9c] sm:$0xf] %vm285_vm0, %v2800_v48  ;;  %v877_v56 = vadd.f32 %v876_v50, %v874_v49  ;;  %v881_v57 = vmul.f32 %v879_v51, %v3238_v11  ;;  %v898_v58 = vstv %s3656_s15  ;;  %v902_v59 = vstv %s3661_s19  ;;  %s3695_s11 = sld [smem:[#allocation6 + $0x45]] }
  0x9d   : > { %v2801_v60 = vpack.c.bf16 %v855_v52, %v855_v52  ;;  %v2802_v61 = vpack.c.bf16 %v856_v53, %v856_v53  ;;  %v882_v62 = vadd.f32 %v880_v54, %v870_v47  ;;  %v899_v63 = vmul.f32 %v898_v58, %v3227_v5  ;;  %s3698_s20 = sld [smem:[#allocation6 + $0x49]] }
  0x9e   : > { %v883_v0 = vadd.f32 %v881_v57, %v871_v55  ;;  %v903_v1 = vmul.f32 %v902_v59, %v3225_v3  ;;  %v905_v2 = vstv %s3670_s7  ;;  %v908_v4 = vstv %s3674_s9  ;;  %s3703_s12 = sld [smem:[#allocation6 + $0x4a]] }
  0x9f   : > { %2411 = vst.msk [vmem:[%s3270_s8 + $0xa0] sm:$0xf] %vm285_vm0, %v2801_v60  ;;  %2412 = vst.msk [vmem:[%s3270_s8 + $0xa4] sm:$0xf] %vm285_vm0, %v2802_v61  ;;  %v884_v6 = vadd.f32 %v882_v62, %v877_v56  ;;  %v909_v8 = vmul.f32 %v908_v4, %v3234_v9  ;;  %v900_v10 = vmul.f32 %v898_v58, %v3231_v7  ;;  %s3712_s18 = sld [smem:[#allocation7 + $0x18]]  ;;  %v927_v15 = vstv %s3677_s22 }
  0xa0   : > { %v910_v12 = vmul.f32 %v908_v4, %v3238_v11  ;;  %v885_v13 = vadd.f32 %v883_v0, %v877_v56  ;;  %v906_v14 = vadd.f32 %v905_v2, %v903_v1  ;;  %v931_v16 = vstv %s3682_s21  ;;  %s3716_s23 = sld [smem:[#allocation6 + $0x48]] }
  0xa1   : > { %v2803_v17 = vpack.c.bf16 %v884_v6, %v884_v6  ;;  %v911_v18 = vadd.f32 %v909_v8, %v899_v63  ;;  %v928_v19 = vmul.f32 %v927_v15, %v3227_v5  ;;  %s3719_s24 = sld [smem:[#allocation6 + $0x4c]]  ;;  %v932_v20 = vmul.f32 %v931_v16, %v3225_v3 }
  0xa2   : > { %v912_v9 = vadd.f32 %v910_v12, %v900_v10  ;;  %v2804_v11 = vpack.c.bf16 %v885_v13, %v885_v13  ;;  %v934_v21 = vstv %s3688_s26  ;;  %v937_v22 = vstv %s3695_s11  ;;  %s3724_s25 = sld [smem:[#allocation6 + $0x4d]] }
  0xa3   : > { %2419 = vst.msk [vmem:[%s3270_s8 + $0xa8] sm:$0xf] %vm285_vm0, %v2803_v17  ;;  %v913_v23 = vadd.f32 %v911_v18, %v906_v14  ;;  %v938_v26 = vmul.f32 %v3729_v25, %v937_v22  ;;  %v929_v27 = vmul.f32 %v927_v15, %v3231_v7  ;;  %s3733_s29 = sld [smem:[#allocation7 + $0x19]]  ;;  %v935_v28 = vadd.f32 %v934_v21, %v932_v20 }
  0xa4   : > { %v914_v24 = vadd.f32 %v912_v9, %v906_v14  ;;  %2420 = vst.msk [vmem:[%s3270_s8 + $0xac] sm:$0xf] %vm285_vm0, %v2804_v11  ;;  %v939_v30 = vmul.f32 %v3738_v29, %v937_v22  ;;  %v956_v31 = vstv %s3698_s20  ;;  %v960_v32 = vstv %s3703_s12  ;;  %s3743_s30 = sld [smem:[#allocation6 + $0x4b]] }
  0xa5   : > { %v2805_v33 = vpack.c.bf16 %v913_v23, %v913_v23  ;;  %v940_v35 = vadd.f32 %v938_v26, %v928_v19  ;;  %v957_v36 = vmul.f32 %v956_v31, %v3227_v5  ;;  %s3746_s4 = sld [smem:[#allocation6 + $0x4f]]  ;;  %v961_v38 = vmul.f32 %v960_v32, %v3225_v3 }
  0xa6   : > { %v2806_v34 = vpack.c.bf16 %v914_v24, %v914_v24  ;;  %v941_v37 = vadd.f32 %v939_v30, %v929_v27  ;;  %v963_v39 = vstv %s3712_s18  ;;  %v966_v40 = vstv %s3716_s23  ;;  %s3751_s5 = sld [smem:[#allocation6 + $0x50]] }
  0xa7   : > { %2427 = vst.msk [vmem:[%s3270_s8 + $0xb0] sm:$0xf] %vm285_vm0, %v2805_v33  ;;  %v942_v41 = vadd.f32 %v940_v35, %v935_v28  ;;  %v967_v42 = vmul.f32 %v3729_v25, %v966_v40  ;;  %v958_v43 = vmul.f32 %v956_v31, %v3231_v7  ;;  %v968_v44 = vmul.f32 %v3738_v29, %v966_v40  ;;  %s3760_s6 = sld [smem:[#allocation7 + $0x1a]] }
  0xa8   : > { %2428 = vst.msk [vmem:[%s3270_s8 + $0xb4] sm:$0xf] %vm285_vm0, %v2806_v34  ;;  %v943_v45 = vadd.f32 %v941_v37, %v935_v28  ;;  %v964_v46 = vadd.f32 %v963_v39, %v961_v38  ;;  %v985_v47 = vstv %s3719_s24  ;;  %v989_v48 = vstv %s3724_s25  ;;  %s3764_s15 = sld [smem:[#allocation6 + $0x4e]] }
  0xa9   : > { %v2807_v49 = vpack.c.bf16 %v942_v41, %v942_v41  ;;  %v969_v50 = vadd.f32 %v967_v42, %v957_v36  ;;  %v970_v51 = vadd.f32 %v968_v44, %v958_v43  ;;  %v986_v52 = vmul.f32 %v985_v47, %v3227_v5  ;;  %s3767_s19 = sld [smem:[#allocation6 + $0x52]] }
  0xaa   : > { %v2808_v53 = vpack.c.bf16 %v943_v45, %v943_v45  ;;  %v990_v54 = vmul.f32 %v989_v48, %v3225_v3  ;;  %v992_v55 = vstv %s3733_s29  ;;  %v995_v56 = vstv %s3743_s30  ;;  %s3772_s7 = sld [smem:[#allocation6 + $0x53]] }
  0xab   : > { %2435 = vst.msk [vmem:[%s3270_s8 + $0xb8] sm:$0xf] %vm285_vm0, %v2807_v49  ;;  %v971_v57 = vadd.f32 %v969_v50, %v964_v46  ;;  %v972_v58 = vadd.f32 %v970_v51, %v964_v46  ;;  %v996_v59 = vmul.f32 %v3729_v25, %v995_v56  ;;  %v987_v60 = vmul.f32 %v985_v47, %v3231_v7  ;;  %s3778_s9 = sld [smem:[#allocation7 + $0x1b]] }
  0xac   : > { %2436 = vst.msk [vmem:[%s3270_s8 + $0xbc] sm:$0xf] %vm285_vm0, %v2808_v53  ;;  %v993_v61 = vadd.f32 %v992_v55, %v990_v54  ;;  %v997_v62 = vmul.f32 %v3738_v29, %v995_v56  ;;  %v1014_v63 = vstv %s3746_s4  ;;  %v1018_v0 = vstv %s3751_s5  ;;  %s3785_s22 = sld [smem:[#allocation6 + $0x51]] }
  0xad   : > { %v2809_v1 = vpack.c.bf16 %v971_v57, %v971_v57  ;;  %v2810_v2 = vpack.c.bf16 %v972_v58, %v972_v58  ;;  %v998_v4 = vadd.f32 %v996_v59, %v986_v52  ;;  %v1015_v6 = vmul.f32 %v1014_v63, %v3227_v5  ;;  %s3788_s21 = sld [smem:[#allocation6 + $0x55]] }
  0xae   : > { %v999_v8 = vadd.f32 %v997_v62, %v987_v60  ;;  %v1019_v10 = vmul.f32 %v1018_v0, %v3225_v3  ;;  %v1021_v12 = vstv %s3760_s6  ;;  %v1024_v13 = vstv %s3764_s15  ;;  %s3793_s26 = sld [smem:[#allocation6 + $0x56]] }
  0xaf   : > { %2443 = vst.msk [vmem:[%s3270_s8 + $0xc0] sm:$0xf] %vm285_vm0, %v2809_v1  ;;  %2444 = vst.msk [vmem:[%s3270_s8 + $0xc4] sm:$0xf] %vm285_vm0, %v2810_v2  ;;  %v1000_v14 = vadd.f32 %v998_v4, %v993_v61  ;;  %v1025_v15 = vmul.f32 %v3729_v25, %v1024_v13  ;;  %v1016_v16 = vmul.f32 %v1014_v63, %v3231_v7  ;;  %s3802_s11 = sld [smem:[#allocation7 + $0x1c]]  ;;  %v1043_v19 = vstv %s3767_s19 }
  0xb0   : > { %v1026_v17 = vmul.f32 %v3738_v29, %v1024_v13  ;;  %v1001_v18 = vadd.f32 %v999_v8, %v993_v61  ;;  %v1022_v9 = vadd.f32 %v1021_v12, %v1019_v10  ;;  %v1047_v11 = vstv %s3772_s7  ;;  %s3806_s20 = sld [smem:[#allocation6 + $0x54]] }
  0xb1   : > { %v2811_v20 = vpack.c.bf16 %v1000_v14, %v1000_v14  ;;  %v1027_v21 = vadd.f32 %v1025_v15, %v1015_v6  ;;  %v1044_v23 = vmul.f32 %v1043_v19, %v3227_v5  ;;  %s3809_s12 = sld [smem:[#allocation6 + $0x58]]  ;;  %v1048_v26 = vmul.f32 %v1047_v11, %v3225_v3 }
  0xb2   : > { %v1028_v22 = vadd.f32 %v1026_v17, %v1016_v16  ;;  %v2812_v24 = vpack.c.bf16 %v1001_v18, %v1001_v18  ;;  %v1050_v27 = vstv %s3778_s9  ;;  %v1053_v28 = vstv %s3785_s22  ;;  %s3814_s18 = sld [smem:[#allocation6 + $0x59]] }
  0xb3   : > { %2451 = vst.msk [vmem:[%s3270_s8 + $0xc8] sm:$0xf] %vm285_vm0, %v2811_v20  ;;  %v1029_v30 = vadd.f32 %v1027_v21, %v1022_v9  ;;  %v1054_v32 = vmul.f32 %v3729_v25, %v1053_v28  ;;  %v1045_v33 = vmul.f32 %v1043_v19, %v3231_v7  ;;  %s3820_s23 = sld [smem:[#allocation7 + $0x1d]]  ;;  %v1051_v34 = vadd.f32 %v1050_v27, %v1048_v26 }
  0xb4   : > { %v1030_v31 = vadd.f32 %v1028_v22, %v1022_v9  ;;  %2452 = vst.msk [vmem:[%s3270_s8 + $0xcc] sm:$0xf] %vm285_vm0, %v2812_v24  ;;  %v1055_v35 = vmul.f32 %v3738_v29, %v1053_v28  ;;  %v1072_v36 = vstv %s3788_s21  ;;  %v1076_v37 = vstv %s3793_s26  ;;  %s3827_s24 = sld [smem:[#allocation6 + $0x57]] }
  0xb5   : > { %v2813_v38 = vpack.c.bf16 %v1029_v30, %v1029_v30  ;;  %v1056_v40 = vadd.f32 %v1054_v32, %v1044_v23  ;;  %v1073_v41 = vmul.f32 %v1072_v36, %v3227_v5  ;;  %s3830_s25 = sld [smem:[#allocation6 + $0x5b]]  ;;  %v1077_v43 = vmul.f32 %v1076_v37, %v3225_v3 }
  0xb6   : > { %v2814_v39 = vpack.c.bf16 %v1030_v31, %v1030_v31  ;;  %v1057_v42 = vadd.f32 %v1055_v35, %v1045_v33  ;;  %v1079_v44 = vstv %s3802_s11  ;;  %v1082_v45 = vstv %s3806_s20  ;;  %s3835_s29 = sld [smem:[#allocation6 + $0x5c]] }
  0xb7   : > { %2459 = vst.msk [vmem:[%s3270_s8 + $0xd0] sm:$0xf] %vm285_vm0, %v2813_v38  ;;  %v1058_v46 = vadd.f32 %v1056_v40, %v1051_v34  ;;  %v1083_v47 = vmul.f32 %v3729_v25, %v1082_v45  ;;  %v1074_v48 = vmul.f32 %v1072_v36, %v3231_v7  ;;  %v1084_v49 = vmul.f32 %v3738_v29, %v1082_v45  ;;  %s3844_s30 = sld [smem:[#allocation7 + $0x1e]] }
  0xb8   : > { %2460 = vst.msk [vmem:[%s3270_s8 + $0xd4] sm:$0xf] %vm285_vm0, %v2814_v39  ;;  %v1059_v50 = vadd.f32 %v1057_v42, %v1051_v34  ;;  %v1080_v51 = vadd.f32 %v1079_v44, %v1077_v43  ;;  %v1101_v52 = vstv %s3809_s12  ;;  %v1105_v53 = vstv %s3814_s18  ;;  %s3848_s4 = sld [smem:[#allocation6 + $0x5a]] }
  0xb9   : > { %v2815_v54 = vpack.c.bf16 %v1058_v46, %v1058_v46  ;;  %v1085_v55 = vadd.f32 %v1083_v47, %v1073_v41  ;;  %v1086_v56 = vadd.f32 %v1084_v49, %v1074_v48  ;;  %v1102_v57 = vmul.f32 %v1101_v52, %v3227_v5  ;;  %s3851_s5 = sld [smem:[#allocation6 + $0x5e]] }
  0xba   : > { %v2816_v58 = vpack.c.bf16 %v1059_v50, %v1059_v50  ;;  %v1106_v59 = vmul.f32 %v1105_v53, %v3225_v3  ;;  %v1108_v60 = vstv %s3820_s23  ;;  %v1111_v61 = vstv %s3827_s24  ;;  %s3856_s6 = sld [smem:[#allocation6 + $0x5f]] }
  0xbb   : > { %2467 = vst.msk [vmem:[%s3270_s8 + $0xd8] sm:$0xf] %vm285_vm0, %v2815_v54  ;;  %v1087_v62 = vadd.f32 %v1085_v55, %v1080_v51  ;;  %v1088_v63 = vadd.f32 %v1086_v56, %v1080_v51  ;;  %v1112_v0 = vmul.f32 %v3729_v25, %v1111_v61  ;;  %v1103_v1 = vmul.f32 %v1101_v52, %v3231_v7  ;;  %s3862_s15 = sld [smem:[#allocation7 + $0x1f]] }
  0xbc   : > { %2468 = vst.msk [vmem:[%s3270_s8 + $0xdc] sm:$0xf] %vm285_vm0, %v2816_v58  ;;  %v1109_v2 = vadd.f32 %v1108_v60, %v1106_v59  ;;  %v1113_v4 = vmul.f32 %v3738_v29, %v1111_v61  ;;  %v1130_v6 = vstv %s3830_s25  ;;  %v1134_v8 = vstv %s3835_s29  ;;  %s3869_s19 = sld [smem:[#allocation6 + $0x5d]] }
  0xbd   : > { %v2817_v10 = vpack.c.bf16 %v1087_v62, %v1087_v62  ;;  %v2818_v12 = vpack.c.bf16 %v1088_v63, %v1088_v63  ;;  %v1114_v13 = vadd.f32 %v1112_v0, %v1102_v57  ;;  %v1131_v14 = vmul.f32 %v1130_v6, %v3227_v5  ;;  %s3872_s7 = sld [smem:[#allocation6 + $0x61]] }
  0xbe   : > { %v1115_v15 = vadd.f32 %v1113_v4, %v1103_v1  ;;  %v1135_v16 = vmul.f32 %v1134_v8, %v3225_v3  ;;  %v1137_v17 = vstv %s3844_s30  ;;  %v1140_v18 = vstv %s3848_s4  ;;  %s3877_s9 = sld [smem:[#allocation6 + $0x62]] }
  0xbf   : > { %2475 = vst.msk [vmem:[%s3270_s8 + $0xe0] sm:$0xf] %vm285_vm0, %v2817_v10  ;;  %2476 = vst.msk [vmem:[%s3270_s8 + $0xe4] sm:$0xf] %vm285_vm0, %v2818_v12  ;;  %v1116_v9 = vadd.f32 %v1114_v13, %v1109_v2  ;;  %v1141_v19 = vmul.f32 %v3729_v25, %v1140_v18  ;;  %v1132_v11 = vmul.f32 %v1130_v6, %v3231_v7  ;;  %s3886_s22 = sld [smem:[#allocation7 + $0x20]]  ;;  %v1159_v23 = vstv %s3851_s5 }
  0xc0   : > { %v1142_v20 = vmul.f32 %v3738_v29, %v1140_v18  ;;  %v1117_v21 = vadd.f32 %v1115_v15, %v1109_v2  ;;  %v1138_v22 = vadd.f32 %v1137_v17, %v1135_v16  ;;  %v1163_v24 = vstv %s3856_s6  ;;  %s3890_s21 = sld [smem:[#allocation6 + $0x60]] }
  0xc1   : > { %v2819_v26 = vpack.c.bf16 %v1116_v9, %v1116_v9  ;;  %v1143_v27 = vadd.f32 %v1141_v19, %v1131_v14  ;;  %v1160_v30 = vmul.f32 %v1159_v23, %v3227_v5  ;;  %s3893_s26 = sld [smem:[#allocation6 + $0x64]]  ;;  %v1164_v32 = vmul.f32 %v1163_v24, %v3225_v3 }
  0xc2   : > { %v1144_v28 = vadd.f32 %v1142_v20, %v1132_v11  ;;  %v2820_v31 = vpack.c.bf16 %v1117_v21, %v1117_v21  ;;  %v1166_v33 = vstv %s3862_s15  ;;  %v1169_v34 = vstv %s3869_s19  ;;  %s3898_s11 = sld [smem:[#allocation6 + $0x65]] }
  0xc3   : > { %2483 = vst.msk [vmem:[%s3270_s8 + $0xe8] sm:$0xf] %vm285_vm0, %v2819_v26  ;;  %v1145_v35 = vadd.f32 %v1143_v27, %v1138_v22  ;;  %v1170_v37 = vmul.f32 %v3729_v25, %v1169_v34  ;;  %v1161_v38 = vmul.f32 %v1159_v23, %v3231_v7  ;;  %s3904_s20 = sld [smem:[#allocation7 + $0x21]]  ;;  %v1167_v39 = vadd.f32 %v1166_v33, %v1164_v32 }
  0xc4   : > { %v1146_v36 = vadd.f32 %v1144_v28, %v1138_v22  ;;  %2484 = vst.msk [vmem:[%s3270_s8 + $0xec] sm:$0xf] %vm285_vm0, %v2820_v31  ;;  %v1171_v40 = vmul.f32 %v3738_v29, %v1169_v34  ;;  %v1188_v41 = vstv %s3872_s7  ;;  %v1192_v42 = vstv %s3877_s9  ;;  %s3911_s12 = sld [smem:[#allocation6 + $0x63]] }
  0xc5   : > { %v2821_v43 = vpack.c.bf16 %v1145_v35, %v1145_v35  ;;  %v1172_v45 = vadd.f32 %v1170_v37, %v1160_v30  ;;  %v1189_v46 = vmul.f32 %v1188_v41, %v3227_v5  ;;  %s3914_s18 = sld [smem:[#allocation6 + $0x67]]  ;;  %v1193_v48 = vmul.f32 %v1192_v42, %v3225_v3 }
  0xc6   : > { %v2822_v44 = vpack.c.bf16 %v1146_v36, %v1146_v36  ;;  %v1173_v47 = vadd.f32 %v1171_v40, %v1161_v38  ;;  %v1195_v49 = vstv %s3886_s22  ;;  %v1198_v50 = vstv %s3890_s21  ;;  %s3919_s23 = sld [smem:[#allocation6 + $0x68]] }
  0xc7   : > { %2491 = vst.msk [vmem:[%s3270_s8 + $0xf0] sm:$0xf] %vm285_vm0, %v2821_v43  ;;  %v1174_v51 = vadd.f32 %v1172_v45, %v1167_v39  ;;  %v1199_v52 = vmul.f32 %v3729_v25, %v1198_v50  ;;  %v1190_v53 = vmul.f32 %v1188_v41, %v3231_v7  ;;  %v1200_v54 = vmul.f32 %v3738_v29, %v1198_v50  ;;  %s3928_s24 = sld [smem:[#allocation7 + $0x22]] }
  0xc8   : > { %2492 = vst.msk [vmem:[%s3270_s8 + $0xf4] sm:$0xf] %vm285_vm0, %v2822_v44  ;;  %v1175_v55 = vadd.f32 %v1173_v47, %v1167_v39  ;;  %v1196_v56 = vadd.f32 %v1195_v49, %v1193_v48  ;;  %v1217_v57 = vstv %s3893_s26  ;;  %v1221_v58 = vstv %s3898_s11  ;;  %s3932_s25 = sld [smem:[#allocation6 + $0x66]] }
  0xc9   : > { %v2823_v59 = vpack.c.bf16 %v1174_v51, %v1174_v51  ;;  %v1201_v60 = vadd.f32 %v1199_v52, %v1189_v46  ;;  %v1202_v61 = vadd.f32 %v1200_v54, %v1190_v53  ;;  %v1218_v62 = vmul.f32 %v1217_v57, %v3227_v5  ;;  %s3935_s29 = sld [smem:[#allocation6 + $0x6a]] }
  0xca   : > { %v2824_v63 = vpack.c.bf16 %v1175_v55, %v1175_v55  ;;  %v1222_v0 = vmul.f32 %v1221_v58, %v3225_v3  ;;  %v1224_v1 = vstv %s3904_s20  ;;  %v1227_v2 = vstv %s3911_s12  ;;  %s3940_s30 = sld [smem:[#allocation6 + $0x6b]] }
  0xcb   : > { %2499 = vst.msk [vmem:[%s3270_s8 + $0xf8] sm:$0xf] %vm285_vm0, %v2823_v59  ;;  %v1203_v4 = vadd.f32 %v1201_v60, %v1196_v56  ;;  %v1204_v6 = vadd.f32 %v1202_v61, %v1196_v56  ;;  %v1228_v8 = vmul.f32 %v3729_v25, %v1227_v2  ;;  %v1219_v10 = vmul.f32 %v1217_v57, %v3231_v7  ;;  %s3946_s4 = sld [smem:[#allocation7 + $0x23]] }
  0xcc   : > { %2500 = vst.msk [vmem:[%s3270_s8 + $0xfc] sm:$0xf] %vm285_vm0, %v2824_v63  ;;  %v1225_v12 = vadd.f32 %v1224_v1, %v1222_v0  ;;  %v1229_v13 = vmul.f32 %v3738_v29, %v1227_v2  ;;  %v1246_v14 = vstv %s3914_s18  ;;  %v1250_v15 = vstv %s3919_s23  ;;  %s3953_s5 = sld [smem:[#allocation6 + $0x69]] }
  0xcd   : > { %v2825_v16 = vpack.c.bf16 %v1203_v4, %v1203_v4  ;;  %v2826_v17 = vpack.c.bf16 %v1204_v6, %v1204_v6  ;;  %v1230_v18 = vadd.f32 %v1228_v8, %v1218_v62  ;;  %v1247_v9 = vmul.f32 %v1246_v14, %v3227_v5  ;;  %s3956_s6 = sld [smem:[#allocation6 + $0x6d]] }
  0xce   : > { %v1231_v19 = vadd.f32 %v1229_v13, %v1219_v10  ;;  %v1251_v11 = vmul.f32 %v1250_v15, %v3225_v3  ;;  %v1253_v20 = vstv %s3928_s24  ;;  %v1256_v21 = vstv %s3932_s25  ;;  %s3961_s15 = sld [smem:[#allocation6 + $0x6e]] }
  0xcf   : > { %2507 = vst.msk [vmem:[%s3270_s8 + $0x100] sm:$0xf] %vm285_vm0, %v2825_v16  ;;  %2508 = vst.msk [vmem:[%s3270_s8 + $0x104] sm:$0xf] %vm285_vm0, %v2826_v17  ;;  %v1232_v22 = vadd.f32 %v1230_v18, %v1225_v12  ;;  %v1257_v23 = vmul.f32 %v3729_v25, %v1256_v21  ;;  %v1248_v24 = vmul.f32 %v1246_v14, %v3231_v7  ;;  %s3970_s19 = sld [smem:[#allocation7 + $0x24]]  ;;  %v1275_v30 = vstv %s3935_s29 }
  0xd0   : > { %v1258_v26 = vmul.f32 %v3738_v29, %v1256_v21  ;;  %v1233_v27 = vadd.f32 %v1231_v19, %v1225_v12  ;;  %v1254_v28 = vadd.f32 %v1253_v20, %v1251_v11  ;;  %v1279_v31 = vstv %s3940_s30  ;;  %s3974_s7 = sld [smem:[#allocation6 + $0x6c]] }
  0xd1   : > { %v2827_v32 = vpack.c.bf16 %v1232_v22, %v1232_v22  ;;  %v1259_v33 = vadd.f32 %v1257_v23, %v1247_v9  ;;  %v1276_v35 = vmul.f32 %v1275_v30, %v3227_v5  ;;  %s3977_s9 = sld [smem:[#allocation6 + $0x70]]  ;;  %v1280_v37 = vmul.f32 %v1279_v31, %v3225_v3 }
  0xd2   : > { %v1260_v34 = vadd.f32 %v1258_v26, %v1248_v24  ;;  %v2828_v36 = vpack.c.bf16 %v1233_v27, %v1233_v27  ;;  %v1282_v38 = vstv %s3946_s4  ;;  %v1285_v39 = vstv %s3953_s5  ;;  %s3982_s22 = sld [smem:[#allocation6 + $0x71]] }
  0xd3   : > { %2515 = vst.msk [vmem:[%s3270_s8 + $0x108] sm:$0xf] %vm285_vm0, %v2827_v32  ;;  %v1261_v40 = vadd.f32 %v1259_v33, %v1254_v28  ;;  %v1286_v42 = vmul.f32 %v3729_v25, %v1285_v39  ;;  %v1277_v43 = vmul.f32 %v1275_v30, %v3231_v7  ;;  %s3988_s21 = sld [smem:[#allocation7 + $0x25]]  ;;  %v1283_v44 = vadd.f32 %v1282_v38, %v1280_v37 }
  0xd4   : > { %v1262_v41 = vadd.f32 %v1260_v34, %v1254_v28  ;;  %2516 = vst.msk [vmem:[%s3270_s8 + $0x10c] sm:$0xf] %vm285_vm0, %v2828_v36  ;;  %v1287_v45 = vmul.f32 %v3738_v29, %v1285_v39  ;;  %v1304_v46 = vstv %s3956_s6  ;;  %v1308_v47 = vstv %s3961_s15  ;;  %s3995_s26 = sld [smem:[#allocation6 + $0x6f]] }
  0xd5   : > { %v2829_v48 = vpack.c.bf16 %v1261_v40, %v1261_v40  ;;  %v1288_v50 = vadd.f32 %v1286_v42, %v1276_v35  ;;  %v1305_v51 = vmul.f32 %v1304_v46, %v3227_v5  ;;  %s3998_s11 = sld [smem:[#allocation6 + $0x73]]  ;;  %v1309_v53 = vmul.f32 %v1308_v47, %v3225_v3 }
  0xd6   : > { %v2830_v49 = vpack.c.bf16 %v1262_v41, %v1262_v41  ;;  %v1289_v52 = vadd.f32 %v1287_v45, %v1277_v43  ;;  %v1311_v54 = vstv %s3970_s19  ;;  %v1314_v55 = vstv %s3974_s7  ;;  %s4003_s20 = sld [smem:[#allocation6 + $0x74]] }
  0xd7   : > { %2523 = vst.msk [vmem:[%s3270_s8 + $0x110] sm:$0xf] %vm285_vm0, %v2829_v48  ;;  %v1290_v56 = vadd.f32 %v1288_v50, %v1283_v44  ;;  %v1315_v57 = vmul.f32 %v3729_v25, %v1314_v55  ;;  %v1306_v58 = vmul.f32 %v1304_v46, %v3231_v7  ;;  %v1316_v59 = vmul.f32 %v3738_v29, %v1314_v55  ;;  %s4012_s12 = sld [smem:[#allocation7 + $0x26]] }
  0xd8   : > { %2524 = vst.msk [vmem:[%s3270_s8 + $0x114] sm:$0xf] %vm285_vm0, %v2830_v49  ;;  %v1291_v60 = vadd.f32 %v1289_v52, %v1283_v44  ;;  %v1312_v61 = vadd.f32 %v1311_v54, %v1309_v53  ;;  %v1333_v62 = vstv %s3977_s9  ;;  %v1337_v63 = vstv %s3982_s22  ;;  %s4016_s18 = sld [smem:[#allocation6 + $0x72]] }
  0xd9   : > { %v2831_v0 = vpack.c.bf16 %v1290_v56, %v1290_v56  ;;  %v1317_v1 = vadd.f32 %v1315_v57, %v1305_v51  ;;  %v1318_v2 = vadd.f32 %v1316_v59, %v1306_v58  ;;  %v1334_v4 = vmul.f32 %v1333_v62, %v3227_v5  ;;  %s4019_s23 = sld [smem:[#allocation6 + $0x76]] }
  0xda   : > { %v2832_v6 = vpack.c.bf16 %v1291_v60, %v1291_v60  ;;  %v1338_v8 = vmul.f32 %v1337_v63, %v3225_v3  ;;  %v1340_v10 = vstv %s3988_s21  ;;  %v1343_v12 = vstv %s3995_s26  ;;  %s4024_s24 = sld [smem:[#allocation6 + $0x77]] }
  0xdb   : > { %2531 = vst.msk [vmem:[%s3270_s8 + $0x118] sm:$0xf] %vm285_vm0, %v2831_v0  ;;  %v1319_v13 = vadd.f32 %v1317_v1, %v1312_v61  ;;  %v1320_v14 = vadd.f32 %v1318_v2, %v1312_v61  ;;  %v1344_v15 = vmul.f32 %v3729_v25, %v1343_v12  ;;  %v1335_v16 = vmul.f32 %v1333_v62, %v3231_v7  ;;  %s4030_s25 = sld [smem:[#allocation7 + $0x27]] }
  0xdc   : > { %2532 = vst.msk [vmem:[%s3270_s8 + $0x11c] sm:$0xf] %vm285_vm0, %v2832_v6  ;;  %v1341_v17 = vadd.f32 %v1340_v10, %v1338_v8  ;;  %v1345_v18 = vmul.f32 %v3738_v29, %v1343_v12  ;;  %v1362_v9 = vstv %s3998_s11  ;;  %v1366_v19 = vstv %s4003_s20  ;;  %s4037_s29 = sld [smem:[#allocation6 + $0x75]] }
  0xdd   : > { %v2833_v11 = vpack.c.bf16 %v1319_v13, %v1319_v13  ;;  %v2834_v20 = vpack.c.bf16 %v1320_v14, %v1320_v14  ;;  %v1346_v21 = vadd.f32 %v1344_v15, %v1334_v4  ;;  %v1363_v22 = vmul.f32 %v1362_v9, %v3227_v5  ;;  %s4040_s30 = sld [smem:[#allocation6 + $0x79]] }
  0xde   : > { %v1347_v23 = vadd.f32 %v1345_v18, %v1335_v16  ;;  %v1367_v24 = vmul.f32 %v1366_v19, %v3225_v3  ;;  %v1369_v26 = vstv %s4012_s12  ;;  %v1372_v27 = vstv %s4016_s18  ;;  %s4045_s4 = sld [smem:[#allocation6 + $0x7a]] }
  0xdf   : > { %2539 = vst.msk [vmem:[%s3270_s8 + $0x120] sm:$0xf] %vm285_vm0, %v2833_v11  ;;  %2540 = vst.msk [vmem:[%s3270_s8 + $0x124] sm:$0xf] %vm285_vm0, %v2834_v20  ;;  %v1348_v28 = vadd.f32 %v1346_v21, %v1341_v17  ;;  %v1373_v30 = vmul.f32 %v3729_v25, %v1372_v27  ;;  %v1364_v31 = vmul.f32 %v1362_v9, %v3231_v7  ;;  %s4054_s5 = sld [smem:[#allocation7 + $0x28]]  ;;  %v1391_v35 = vstv %s4019_s23 }
  0xe0   : > { %v1374_v32 = vmul.f32 %v3738_v29, %v1372_v27  ;;  %v1349_v33 = vadd.f32 %v1347_v23, %v1341_v17  ;;  %v1370_v34 = vadd.f32 %v1369_v26, %v1367_v24  ;;  %v1395_v36 = vstv %s4024_s24  ;;  %s4058_s6 = sld [smem:[#allocation6 + $0x78]] }
  0xe1   : > { %v2835_v37 = vpack.c.bf16 %v1348_v28, %v1348_v28  ;;  %v1375_v38 = vadd.f32 %v1373_v30, %v1363_v22  ;;  %v1392_v40 = vmul.f32 %v1391_v35, %v3227_v5  ;;  %s4061_s15 = sld [smem:[#allocation6 + $0x7c]]  ;;  %v1396_v42 = vmul.f32 %v1395_v36, %v3225_v3 }
  0xe2   : > { %v1376_v39 = vadd.f32 %v1374_v32, %v1364_v31  ;;  %v2836_v41 = vpack.c.bf16 %v1349_v33, %v1349_v33  ;;  %v1398_v43 = vstv %s4030_s25  ;;  %v1401_v44 = vstv %s4037_s29  ;;  %s4066_s19 = sld [smem:[#allocation6 + $0x7d]] }
  0xe3   : > { %2547 = vst.msk [vmem:[%s3270_s8 + $0x128] sm:$0xf] %vm285_vm0, %v2835_v37  ;;  %v1377_v45 = vadd.f32 %v1375_v38, %v1370_v34  ;;  %v1402_v47 = vmul.f32 %v3729_v25, %v1401_v44  ;;  %v1393_v48 = vmul.f32 %v1391_v35, %v3231_v7  ;;  %s4072_s7 = sld [smem:[#allocation7 + $0x29]]  ;;  %v1399_v49 = vadd.f32 %v1398_v43, %v1396_v42 }
  0xe4   : > { %v1378_v46 = vadd.f32 %v1376_v39, %v1370_v34  ;;  %2548 = vst.msk [vmem:[%s3270_s8 + $0x12c] sm:$0xf] %vm285_vm0, %v2836_v41  ;;  %v1403_v50 = vmul.f32 %v3738_v29, %v1401_v44  ;;  %v1420_v51 = vstv %s4040_s30  ;;  %v1424_v52 = vstv %s4045_s4  ;;  %s4079_s9 = sld [smem:[#allocation6 + $0x7b]] }
  0xe5   : > { %v2837_v53 = vpack.c.bf16 %v1377_v45, %v1377_v45  ;;  %v1404_v55 = vadd.f32 %v1402_v47, %v1392_v40  ;;  %v1421_v56 = vmul.f32 %v1420_v51, %v3227_v5  ;;  %s4082_s22 = sld [smem:[#allocation6 + $0x7f]]  ;;  %v1425_v58 = vmul.f32 %v1424_v52, %v3225_v3 }
  0xe6   : > { %v2838_v54 = vpack.c.bf16 %v1378_v46, %v1378_v46  ;;  %v1405_v57 = vadd.f32 %v1403_v50, %v1393_v48  ;;  %v1427_v59 = vstv %s4054_s5  ;;  %v1430_v60 = vstv %s4058_s6  ;;  %s4087_s21 = sld [smem:[#allocation6 + $0x80]] }
  0xe7   : > { %2555 = vst.msk [vmem:[%s3270_s8 + $0x130] sm:$0xf] %vm285_vm0, %v2837_v53  ;;  %v1406_v61 = vadd.f32 %v1404_v55, %v1399_v49  ;;  %v1431_v62 = vmul.f32 %v3729_v25, %v1430_v60  ;;  %v1422_v63 = vmul.f32 %v1420_v51, %v3231_v7  ;;  %v1432_v0 = vmul.f32 %v3738_v29, %v1430_v60  ;;  %s4096_s26 = sld [smem:[#allocation7 + $0x2a]] }
  0xe8   : > { %2556 = vst.msk [vmem:[%s3270_s8 + $0x134] sm:$0xf] %vm285_vm0, %v2838_v54  ;;  %v1407_v1 = vadd.f32 %v1405_v57, %v1399_v49  ;;  %v1428_v2 = vadd.f32 %v1427_v59, %v1425_v58  ;;  %v1449_v4 = vstv %s4061_s15  ;;  %v1453_v6 = vstv %s4066_s19  ;;  %s4100_s11 = sld [smem:[#allocation6 + $0x7e]] }
  0xe9   : > { %v2839_v8 = vpack.c.bf16 %v1406_v61, %v1406_v61  ;;  %v1433_v10 = vadd.f32 %v1431_v62, %v1421_v56  ;;  %v1434_v12 = vadd.f32 %v1432_v0, %v1422_v63  ;;  %v1450_v13 = vmul.f32 %v1449_v4, %v3227_v5  ;;  %s4103_s20 = sld [smem:[#allocation6 + $0x82]] }
  0xea   : > { %v2840_v14 = vpack.c.bf16 %v1407_v1, %v1407_v1  ;;  %v1454_v15 = vmul.f32 %v1453_v6, %v3225_v3  ;;  %v1456_v16 = vstv %s4072_s7  ;;  %v1459_v17 = vstv %s4079_s9  ;;  %s4108_s12 = sld [smem:[#allocation6 + $0x83]] }
  0xeb   : > { %2563 = vst.msk [vmem:[%s3270_s8 + $0x138] sm:$0xf] %vm285_vm0, %v2839_v8  ;;  %v1435_v18 = vadd.f32 %v1433_v10, %v1428_v2  ;;  %v1436_v9 = vadd.f32 %v1434_v12, %v1428_v2  ;;  %v1460_v19 = vmul.f32 %v3729_v25, %v1459_v17  ;;  %v1451_v11 = vmul.f32 %v1449_v4, %v3231_v7  ;;  %s4114_s18 = sld [smem:[#allocation7 + $0x2b]] }
  0xec   : > { %2564 = vst.msk [vmem:[%s3270_s8 + $0x13c] sm:$0xf] %vm285_vm0, %v2840_v14  ;;  %v1457_v20 = vadd.f32 %v1456_v16, %v1454_v15  ;;  %v1461_v21 = vmul.f32 %v3738_v29, %v1459_v17  ;;  %v1478_v22 = vstv %s4082_s22  ;;  %v1482_v23 = vstv %s4087_s21  ;;  %s4121_s23 = sld [smem:[#allocation6 + $0x81]] }
  0xed   : > { %v2841_v24 = vpack.c.bf16 %v1435_v18, %v1435_v18  ;;  %v2842_v26 = vpack.c.bf16 %v1436_v9, %v1436_v9  ;;  %v1462_v27 = vadd.f32 %v1460_v19, %v1450_v13  ;;  %v1479_v28 = vmul.f32 %v1478_v22, %v3227_v5  ;;  %s4124_s24 = sld [smem:[#allocation6 + $0x85]] }
  0xee   : > { %v1463_v30 = vadd.f32 %v1461_v21, %v1451_v11  ;;  %v1483_v31 = vmul.f32 %v1482_v23, %v3225_v3  ;;  %v1485_v32 = vstv %s4096_s26  ;;  %v1488_v33 = vstv %s4100_s11  ;;  %s4129_s25 = sld [smem:[#allocation6 + $0x86]] }
  0xef   : > { %2571 = vst.msk [vmem:[%s3270_s8 + $0x140] sm:$0xf] %vm285_vm0, %v2841_v24  ;;  %2572 = vst.msk [vmem:[%s3270_s8 + $0x144] sm:$0xf] %vm285_vm0, %v2842_v26  ;;  %v1464_v34 = vadd.f32 %v1462_v27, %v1457_v20  ;;  %v1489_v35 = vmul.f32 %v3729_v25, %v1488_v33  ;;  %v1480_v36 = vmul.f32 %v1478_v22, %v3231_v7  ;;  %s4138_s29 = sld [smem:[#allocation7 + $0x2c]]  ;;  %v1507_v40 = vstv %s4103_s20 }
  0xf0   : > { %v1490_v37 = vmul.f32 %v3738_v29, %v1488_v33  ;;  %v1465_v38 = vadd.f32 %v1463_v30, %v1457_v20  ;;  %v1486_v39 = vadd.f32 %v1485_v32, %v1483_v31  ;;  %v1511_v41 = vstv %s4108_s12  ;;  %s4142_s30 = sld [smem:[#allocation6 + $0x84]] }
  0xf1   : > { %v2843_v42 = vpack.c.bf16 %v1464_v34, %v1464_v34  ;;  %v1491_v43 = vadd.f32 %v1489_v35, %v1479_v28  ;;  %v1508_v45 = vmul.f32 %v1507_v40, %v3227_v5  ;;  %s4145_s4 = sld [smem:[#allocation6 + $0x88]]  ;;  %v1512_v47 = vmul.f32 %v1511_v41, %v3225_v3 }
  0xf2   : > { %v1492_v44 = vadd.f32 %v1490_v37, %v1480_v36  ;;  %v2844_v46 = vpack.c.bf16 %v1465_v38, %v1465_v38  ;;  %v1514_v48 = vstv %s4114_s18  ;;  %v1517_v49 = vstv %s4121_s23  ;;  %s4150_s5 = sld [smem:[#allocation6 + $0x89]] }
  0xf3   : > { %2579 = vst.msk [vmem:[%s3270_s8 + $0x148] sm:$0xf] %vm285_vm0, %v2843_v42  ;;  %v1493_v50 = vadd.f32 %v1491_v43, %v1486_v39  ;;  %v1518_v52 = vmul.f32 %v3729_v25, %v1517_v49  ;;  %v1509_v53 = vmul.f32 %v1507_v40, %v3231_v7  ;;  %s4156_s6 = sld [smem:[#allocation7 + $0x2d]]  ;;  %v1515_v54 = vadd.f32 %v1514_v48, %v1512_v47 }
  0xf4   : > { %v1494_v51 = vadd.f32 %v1492_v44, %v1486_v39  ;;  %2580 = vst.msk [vmem:[%s3270_s8 + $0x14c] sm:$0xf] %vm285_vm0, %v2844_v46  ;;  %v1519_v55 = vmul.f32 %v3738_v29, %v1517_v49  ;;  %v1536_v56 = vstv %s4124_s24  ;;  %v1540_v57 = vstv %s4129_s25  ;;  %s4163_s15 = sld [smem:[#allocation6 + $0x87]] }
  0xf5   : > { %v2845_v58 = vpack.c.bf16 %v1493_v50, %v1493_v50  ;;  %v1520_v60 = vadd.f32 %v1518_v52, %v1508_v45  ;;  %v1537_v61 = vmul.f32 %v1536_v56, %v3227_v5  ;;  %s4166_s19 = sld [smem:[#allocation6 + $0x8b]]  ;;  %v1541_v63 = vmul.f32 %v1540_v57, %v3225_v3 }
  0xf6   : > { %v2846_v59 = vpack.c.bf16 %v1494_v51, %v1494_v51  ;;  %v1521_v62 = vadd.f32 %v1519_v55, %v1509_v53  ;;  %v1543_v0 = vstv %s4138_s29  ;;  %v1546_v1 = vstv %s4142_s30  ;;  %s4171_s7 = sld [smem:[#allocation6 + $0x8c]]  ;;  %v4239_v55 = vld [vmem:[%s3207_s10] sm:$0xff] }
  0xf7   : > { %2587 = vst.msk [vmem:[%s3270_s8 + $0x150] sm:$0xf] %vm285_vm0, %v2845_v58  ;;  %v1522_v2 = vadd.f32 %v1520_v60, %v1515_v54  ;;  %v1547_v4 = vmul.f32 %v3729_v25, %v1546_v1  ;;  %v1538_v6 = vmul.f32 %v1536_v56, %v3231_v7  ;;  %v1548_v8 = vmul.f32 %v3738_v29, %v1546_v1  ;;  %s4180_s9 = sld [smem:[#allocation7 + $0x2e]] }
  0xf8   : > { %2588 = vst.msk [vmem:[%s3270_s8 + $0x154] sm:$0xf] %vm285_vm0, %v2846_v59  ;;  %v1523_v10 = vadd.f32 %v1521_v62, %v1515_v54  ;;  %v1544_v12 = vadd.f32 %v1543_v0, %v1541_v63  ;;  %v1565_v13 = vstv %s4145_s4  ;;  %v1569_v14 = vstv %s4150_s5  ;;  %s4184_s22 = sld [smem:[#allocation6 + $0x8a]]  ;;  %v4248_v59 = vld [vmem:[%s3207_s10 + $0x8] sm:$0xff] }
  0xf9   : > { %v2847_v15 = vpack.c.bf16 %v1522_v2, %v1522_v2  ;;  %v1549_v16 = vadd.f32 %v1547_v4, %v1537_v61  ;;  %v1550_v17 = vadd.f32 %v1548_v8, %v1538_v6  ;;  %v1566_v18 = vmul.f32 %v1565_v13, %v3227_v5  ;;  %s4187_s21 = sld [smem:[#allocation6 + $0x8e]] }
  0xfa   : > { %v2848_v9 = vpack.c.bf16 %v1523_v10, %v1523_v10  ;;  %v1570_v19 = vmul.f32 %v1569_v14, %v3225_v3  ;;  %v1572_v11 = vstv %s4156_s6  ;;  %v1575_v20 = vstv %s4163_s15  ;;  %s4192_s26 = sld [smem:[#allocation6 + $0x8f]] }
  0xfb   : > { %2595 = vst.msk [vmem:[%s3270_s8 + $0x158] sm:$0xf] %vm285_vm0, %v2847_v15  ;;  %v1551_v21 = vadd.f32 %v1549_v16, %v1544_v12  ;;  %v1552_v22 = vadd.f32 %v1550_v17, %v1544_v12  ;;  %v1576_v23 = vmul.f32 %v3729_v25, %v1575_v20  ;;  %v1567_v24 = vmul.f32 %v1565_v13, %v3231_v7  ;;  %s4198_s11 = sld [smem:[#allocation7 + $0x2f]] }
  0xfc   : > { %2596 = vst.msk [vmem:[%s3270_s8 + $0x15c] sm:$0xf] %vm285_vm0, %v2848_v9  ;;  %v1573_v26 = vadd.f32 %v1572_v11, %v1570_v19  ;;  %v1577_v27 = vmul.f32 %v3738_v29, %v1575_v20  ;;  %v1594_v28 = vstv %s4166_s19  ;;  %v1598_v30 = vstv %s4171_s7  ;;  %s4205_s20 = sld [smem:[#allocation6 + $0x8d]] }
  0xfd   : > { %v2849_v31 = vpack.c.bf16 %v1551_v21, %v1551_v21  ;;  %v2850_v32 = vpack.c.bf16 %v1552_v22, %v1552_v22  ;;  %v1578_v33 = vadd.f32 %v1576_v23, %v1566_v18  ;;  %v1595_v34 = vmul.f32 %v1594_v28, %v3227_v5  ;;  %s4208_s12 = sld [smem:[#allocation6 + $0x91]] }
  0xfe   : > { %v1579_v35 = vadd.f32 %v1577_v27, %v1567_v24  ;;  %v1599_v36 = vmul.f32 %v1598_v30, %v3225_v3  ;;  %v1601_v37 = vstv %s4180_s9  ;;  %v1604_v38 = vstv %s4184_s22  ;;  %s4213_s18 = sld [smem:[#allocation6 + $0x92]] }
  0xff   : > { %2603 = vst.msk [vmem:[%s3270_s8 + $0x160] sm:$0xf] %vm285_vm0, %v2849_v31  ;;  %2604 = vst.msk [vmem:[%s3270_s8 + $0x164] sm:$0xf] %vm285_vm0, %v2850_v32  ;;  %v1580_v39 = vadd.f32 %v1578_v33, %v1573_v26  ;;  %v1605_v40 = vmul.f32 %v3729_v25, %v1604_v38  ;;  %v1596_v41 = vmul.f32 %v1594_v28, %v3231_v7  ;;  %s4222_s23 = sld [smem:[#allocation7 + $0x30]]  ;;  %v1623_v45 = vstv %s4187_s21 }
 0x100   : > { %v1606_v42 = vmul.f32 %v3738_v29, %v1604_v38  ;;  %v1581_v43 = vadd.f32 %v1579_v35, %v1573_v26  ;;  %v1602_v44 = vadd.f32 %v1601_v37, %v1599_v36  ;;  %v1627_v46 = vstv %s4192_s26  ;;  %s4226_s24 = sld [smem:[#allocation6 + $0x90]] }
 0x101   : > { %v2851_v47 = vpack.c.bf16 %v1580_v39, %v1580_v39  ;;  %v1607_v48 = vadd.f32 %v1605_v40, %v1595_v34  ;;  %v1624_v49 = vmul.f32 %v1623_v45, %v3227_v5  ;;  %s4229_s25 = sld [smem:[#allocation6 + $0x94]]  ;;  %v1628_v50 = vmul.f32 %v1627_v46, %v3225_v3 }
 0x102   : > { %v1608_v25 = vadd.f32 %v1606_v42, %v1596_v41  ;;  %v2852_v29 = vpack.c.bf16 %v1581_v43, %v1581_v43  ;;  %v1630_v51 = vstv %s4198_s11  ;;  %v1633_v52 = vstv %s4205_s20  ;;  %s4234_s29 = sld [smem:[#allocation6 + $0x95]] }
 0x103   : > { %2611 = vst.msk [vmem:[%s3270_s8 + $0x168] sm:$0xf] %vm285_vm0, %v2851_v47  ;;  %v1609_v53 = vadd.f32 %v1607_v48, %v1602_v44  ;;  %v1634_v56 = vmul.f32 %v4239_v55, %v1633_v52  ;;  %v1625_v57 = vmul.f32 %v1623_v45, %v3231_v7  ;;  %s4243_s30 = sld [smem:[#allocation7 + $0x31]]  ;;  %v1631_v58 = vadd.f32 %v1630_v51, %v1628_v50 }
 0x104   : > { %v1610_v54 = vadd.f32 %v1608_v25, %v1602_v44  ;;  %2612 = vst.msk [vmem:[%s3270_s8 + $0x16c] sm:$0xf] %vm285_vm0, %v2852_v29  ;;  %v1635_v60 = vmul.f32 %v4248_v59, %v1633_v52  ;;  %v1652_v61 = vstv %s4208_s12  ;;  %v1656_v62 = vstv %s4213_s18  ;;  %s4253_s4 = sld [smem:[#allocation6 + $0x93]] }
 0x105   : > { %v2853_v63 = vpack.c.bf16 %v1609_v53, %v1609_v53  ;;  %v1636_v1 = vadd.f32 %v1634_v56, %v1624_v49  ;;  %v1653_v2 = vmul.f32 %v1652_v61, %v3227_v5  ;;  %s4256_s5 = sld [smem:[#allocation6 + $0x97]]  ;;  %v1657_v6 = vmul.f32 %v1656_v62, %v3225_v3 }
 0x106   : > { %v2854_v0 = vpack.c.bf16 %v1610_v54, %v1610_v54  ;;  %v1637_v4 = vadd.f32 %v1635_v60, %v1625_v57  ;;  %v1659_v8 = vstv %s4222_s23  ;;  %v1662_v10 = vstv %s4226_s24  ;;  %s4261_s10 = sld [smem:[#allocation6 + $0x98]] }
 0x107   : > { %2619 = vst.msk [vmem:[%s3270_s8 + $0x170] sm:$0xf] %vm285_vm0, %v2853_v63  ;;  %v1638_v12 = vadd.f32 %v1636_v1, %v1631_v58  ;;  %v1663_v13 = vmul.f32 %v4239_v55, %v1662_v10  ;;  %v1654_v14 = vmul.f32 %v1652_v61, %v3231_v7  ;;  %v1664_v15 = vmul.f32 %v4248_v59, %v1662_v10  ;;  %s4270_s6 = sld [smem:[#allocation7 + $0x32]] }
 0x108   : > { %2620 = vst.msk [vmem:[%s3270_s8 + $0x174] sm:$0xf] %vm285_vm0, %v2854_v0  ;;  %v1639_v16 = vadd.f32 %v1637_v4, %v1631_v58  ;;  %v1660_v17 = vadd.f32 %v1659_v8, %v1657_v6  ;;  %v1681_v18 = vstv %s4229_s25  ;;  %v1685_v9 = vstv %s4234_s29  ;;  %s4274_s15 = sld [smem:[#allocation6 + $0x96]] }
 0x109   : > { %v2855_v19 = vpack.c.bf16 %v1638_v12, %v1638_v12  ;;  %v1665_v11 = vadd.f32 %v1663_v13, %v1653_v2  ;;  %v1666_v20 = vadd.f32 %v1664_v15, %v1654_v14  ;;  %v1682_v21 = vmul.f32 %v1681_v18, %v3227_v5  ;;  %s4277_s19 = sld [smem:[#allocation6 + $0x9a]] }
 0x10a   : > { %v2856_v22 = vpack.c.bf16 %v1639_v16, %v1639_v16  ;;  %v1686_v23 = vmul.f32 %v1685_v9, %v3225_v3  ;;  %v1688_v24 = vstv %s4243_s30  ;;  %v1691_v26 = vstv %s4253_s4  ;;  %s4282_s7 = sld [smem:[#allocation6 + $0x9b]] }
 0x10b   : > { %2627 = vst.msk [vmem:[%s3270_s8 + $0x178] sm:$0xf] %vm285_vm0, %v2855_v19  ;;  %v1667_v27 = vadd.f32 %v1665_v11, %v1660_v17  ;;  %v1668_v28 = vadd.f32 %v1666_v20, %v1660_v17  ;;  %v1692_v30 = vmul.f32 %v4239_v55, %v1691_v26  ;;  %v1683_v31 = vmul.f32 %v1681_v18, %v3231_v7  ;;  %s4288_s9 = sld [smem:[#allocation7 + $0x33]] }
 0x10c   : > { %2628 = vst.msk [vmem:[%s3270_s8 + $0x17c] sm:$0xf] %vm285_vm0, %v2856_v22  ;;  %v1689_v32 = vadd.f32 %v1688_v24, %v1686_v23  ;;  %v1693_v33 = vmul.f32 %v4248_v59, %v1691_v26  ;;  %v1710_v34 = vstv %s4256_s5  ;;  %v1714_v35 = vstv %s4261_s10  ;;  %s4295_s22 = sld [smem:[#allocation6 + $0x99]] }
 0x10d   : > { %v2857_v36 = vpack.c.bf16 %v1667_v27, %v1667_v27  ;;  %v2858_v37 = vpack.c.bf16 %v1668_v28, %v1668_v28  ;;  %v1694_v38 = vadd.f32 %v1692_v30, %v1682_v21  ;;  %v1711_v39 = vmul.f32 %v1710_v34, %v3227_v5  ;;  %s4298_s21 = sld [smem:[#allocation6 + $0x9d]] }
 0x10e   : > { %v1695_v40 = vadd.f32 %v1693_v33, %v1683_v31  ;;  %v1715_v41 = vmul.f32 %v1714_v35, %v3225_v3  ;;  %v1717_v42 = vstv %s4270_s6  ;;  %v1720_v43 = vstv %s4274_s15  ;;  %s4303_s26 = sld [smem:[#allocation6 + $0x9e]] }
 0x10f   : > { %2635 = vst.msk [vmem:[%s3270_s8 + $0x180] sm:$0xf] %vm285_vm0, %v2857_v36  ;;  %2636 = vst.msk [vmem:[%s3270_s8 + $0x184] sm:$0xf] %vm285_vm0, %v2858_v37  ;;  %v1696_v44 = vadd.f32 %v1694_v38, %v1689_v32  ;;  %v1721_v45 = vmul.f32 %v4239_v55, %v1720_v43  ;;  %v1712_v46 = vmul.f32 %v1710_v34, %v3231_v7  ;;  %s4312_s11 = sld [smem:[#allocation7 + $0x34]]  ;;  %v1739_v49 = vstv %s4277_s19 }
 0x110   : > { %v1722_v47 = vmul.f32 %v4248_v59, %v1720_v43  ;;  %v1697_v48 = vadd.f32 %v1695_v40, %v1689_v32  ;;  %v1718_v25 = vadd.f32 %v1717_v42, %v1715_v41  ;;  %v1743_v29 = vstv %s4282_s7  ;;  %s4316_s20 = sld [smem:[#allocation6 + $0x9c]] }
 0x111   : > { %v2859_v50 = vpack.c.bf16 %v1696_v44, %v1696_v44  ;;  %v1723_v51 = vadd.f32 %v1721_v45, %v1711_v39  ;;  %v1740_v53 = vmul.f32 %v1739_v49, %v3227_v5  ;;  %s4319_s12 = sld [smem:[#allocation6 + $0xa0]]  ;;  %v1744_v56 = vmul.f32 %v1743_v29, %v3225_v3 }
 0x112   : > { %v1724_v52 = vadd.f32 %v1722_v47, %v1712_v46  ;;  %v2860_v54 = vpack.c.bf16 %v1697_v48, %v1697_v48  ;;  %v1746_v57 = vstv %s4288_s9  ;;  %v1749_v58 = vstv %s4295_s22  ;;  %s4324_s18 = sld [smem:[#allocation6 + $0xa1]] }
 0x113   : > { %2643 = vst.msk [vmem:[%s3270_s8 + $0x188] sm:$0xf] %vm285_vm0, %v2859_v50  ;;  %v1725_v60 = vadd.f32 %v1723_v51, %v1718_v25  ;;  %v1750_v62 = vmul.f32 %v4239_v55, %v1749_v58  ;;  %v1741_v63 = vmul.f32 %v1739_v49, %v3231_v7  ;;  %s4330_s23 = sld [smem:[#allocation7 + $0x35]]  ;;  %v1747_v0 = vadd.f32 %v1746_v57, %v1744_v56 }
 0x114   : > { %v1726_v61 = vadd.f32 %v1724_v52, %v1718_v25  ;;  %2644 = vst.msk [vmem:[%s3270_s8 + $0x18c] sm:$0xf] %vm285_vm0, %v2860_v54  ;;  %v1751_v1 = vmul.f32 %v4248_v59, %v1749_v58  ;;  %v1768_v2 = vstv %s4298_s21  ;;  %v1772_v4 = vstv %s4303_s26  ;;  %s4337_s24 = sld [smem:[#allocation6 + $0x9f]] }
 0x115   : > { %v2861_v6 = vpack.c.bf16 %v1725_v60, %v1725_v60  ;;  %v1752_v10 = vadd.f32 %v1750_v62, %v1740_v53  ;;  %v1769_v12 = vmul.f32 %v1768_v2, %v3227_v5  ;;  %s4340_s25 = sld [smem:[#allocation6 + $0xa3]]  ;;  %v1773_v14 = vmul.f32 %v1772_v4, %v3225_v3 }
 0x116   : > { %v2862_v8 = vpack.c.bf16 %v1726_v61, %v1726_v61  ;;  %v1753_v13 = vadd.f32 %v1751_v1, %v1741_v63  ;;  %v1775_v15 = vstv %s4312_s11  ;;  %v1778_v16 = vstv %s4316_s20  ;;  %s4345_s29 = sld [smem:[#allocation6 + $0xa4]] }
 0x117   : > { %2651 = vst.msk [vmem:[%s3270_s8 + $0x190] sm:$0xf] %vm285_vm0, %v2861_v6  ;;  %v1754_v17 = vadd.f32 %v1752_v10, %v1747_v0  ;;  %v1779_v18 = vmul.f32 %v4239_v55, %v1778_v16  ;;  %v1770_v9 = vmul.f32 %v1768_v2, %v3231_v7  ;;  %v1780_v19 = vmul.f32 %v4248_v59, %v1778_v16  ;;  %s4354_s30 = sld [smem:[#allocation7 + $0x36]] }
 0x118   : > { %2652 = vst.msk [vmem:[%s3270_s8 + $0x194] sm:$0xf] %vm285_vm0, %v2862_v8  ;;  %v1755_v11 = vadd.f32 %v1753_v13, %v1747_v0  ;;  %v1776_v20 = vadd.f32 %v1775_v15, %v1773_v14  ;;  %v1797_v21 = vstv %s4319_s12  ;;  %v1801_v22 = vstv %s4324_s18  ;;  %s4358_s4 = sld [smem:[#allocation6 + $0xa2]] }
 0x119   : > { %v2863_v23 = vpack.c.bf16 %v1754_v17, %v1754_v17  ;;  %v1781_v24 = vadd.f32 %v1779_v18, %v1769_v12  ;;  %v1782_v26 = vadd.f32 %v1780_v19, %v1770_v9  ;;  %v1798_v27 = vmul.f32 %v1797_v21, %v3227_v5  ;;  %s4361_s5 = sld [smem:[#allocation6 + $0xa6]] }
 0x11a   : > { %v2864_v28 = vpack.c.bf16 %v1755_v11, %v1755_v11  ;;  %v1802_v30 = vmul.f32 %v1801_v22, %v3225_v3  ;;  %v1804_v31 = vstv %s4330_s23  ;;  %v1807_v32 = vstv %s4337_s24  ;;  %s4366_s10 = sld [smem:[#allocation6 + $0xa7]] }
 0x11b   : > { %2659 = vst.msk [vmem:[%s3270_s8 + $0x198] sm:$0xf] %vm285_vm0, %v2863_v23  ;;  %v1783_v33 = vadd.f32 %v1781_v24, %v1776_v20  ;;  %v1784_v34 = vadd.f32 %v1782_v26, %v1776_v20  ;;  %v1808_v35 = vmul.f32 %v4239_v55, %v1807_v32  ;;  %v1799_v36 = vmul.f32 %v1797_v21, %v3231_v7  ;;  %s4372_s6 = sld [smem:[#allocation7 + $0x37]] }
 0x11c   : > { %2660 = vst.msk [vmem:[%s3270_s8 + $0x19c] sm:$0xf] %vm285_vm0, %v2864_v28  ;;  %v1805_v37 = vadd.f32 %v1804_v31, %v1802_v30  ;;  %v1809_v38 = vmul.f32 %v4248_v59, %v1807_v32  ;;  %v1826_v39 = vstv %s4340_s25  ;;  %v1830_v40 = vstv %s4345_s29  ;;  %s4379_s15 = sld [smem:[#allocation6 + $0xa5]] }
 0x11d   : > { %v2865_v41 = vpack.c.bf16 %v1783_v33, %v1783_v33  ;;  %v2866_v42 = vpack.c.bf16 %v1784_v34, %v1784_v34  ;;  %v1810_v43 = vadd.f32 %v1808_v35, %v1798_v27  ;;  %v1827_v44 = vmul.f32 %v1826_v39, %v3227_v5  ;;  %s4382_s19 = sld [smem:[#allocation6 + $0xa9]] }
 0x11e   : > { %v1811_v45 = vadd.f32 %v1809_v38, %v1799_v36  ;;  %v1831_v46 = vmul.f32 %v1830_v40, %v3225_v3  ;;  %v1833_v47 = vstv %s4354_s30  ;;  %v1836_v48 = vstv %s4358_s4  ;;  %s4387_s7 = sld [smem:[#allocation6 + $0xaa]] }
 0x11f   : > { %2667 = vst.msk [vmem:[%s3270_s8 + $0x1a0] sm:$0xf] %vm285_vm0, %v2865_v41  ;;  %2668 = vst.msk [vmem:[%s3270_s8 + $0x1a4] sm:$0xf] %vm285_vm0, %v2866_v42  ;;  %v1812_v25 = vadd.f32 %v1810_v43, %v1805_v37  ;;  %v1837_v49 = vmul.f32 %v4239_v55, %v1836_v48  ;;  %v1828_v29 = vmul.f32 %v1826_v39, %v3231_v7  ;;  %s4396_s9 = sld [smem:[#allocation7 + $0x38]]  ;;  %v1855_v53 = vstv %s4361_s5 }
 0x120   : > { %v1838_v50 = vmul.f32 %v4248_v59, %v1836_v48  ;;  %v1813_v51 = vadd.f32 %v1811_v45, %v1805_v37  ;;  %v1834_v52 = vadd.f32 %v1833_v47, %v1831_v46  ;;  %v1859_v54 = vstv %s4366_s10  ;;  %s4400_s22 = sld [smem:[#allocation6 + $0xa8]] }
 0x121   : > { %v2867_v56 = vpack.c.bf16 %v1812_v25, %v1812_v25  ;;  %v1839_v57 = vadd.f32 %v1837_v49, %v1827_v44  ;;  %v1856_v60 = vmul.f32 %v1855_v53, %v3227_v5  ;;  %s4403_s21 = sld [smem:[#allocation6 + $0xac]]  ;;  %v1860_v62 = vmul.f32 %v1859_v54, %v3225_v3 }
 0x122   : > { %v1840_v58 = vadd.f32 %v1838_v50, %v1828_v29  ;;  %v2868_v61 = vpack.c.bf16 %v1813_v51, %v1813_v51  ;;  %v1862_v63 = vstv %s4372_s6  ;;  %v1865_v0 = vstv %s4379_s15  ;;  %s4408_s26 = sld [smem:[#allocation6 + $0xad]] }
 0x123   : > { %2675 = vst.msk [vmem:[%s3270_s8 + $0x1a8] sm:$0xf] %vm285_vm0, %v2867_v56  ;;  %v1841_v1 = vadd.f32 %v1839_v57, %v1834_v52  ;;  %v1866_v4 = vmul.f32 %v4239_v55, %v1865_v0  ;;  %v1857_v6 = vmul.f32 %v1855_v53, %v3231_v7  ;;  %s4414_s11 = sld [smem:[#allocation7 + $0x39]]  ;;  %v1863_v8 = vadd.f32 %v1862_v63, %v1860_v62 }
 0x124   : > { %v1842_v2 = vadd.f32 %v1840_v58, %v1834_v52  ;;  %2676 = vst.msk [vmem:[%s3270_s8 + $0x1ac] sm:$0xf] %vm285_vm0, %v2868_v61  ;;  %v1867_v10 = vmul.f32 %v4248_v59, %v1865_v0  ;;  %v1884_v12 = vstv %s4382_s19  ;;  %v1888_v13 = vstv %s4387_s7  ;;  %s4421_s20 = sld [smem:[#allocation6 + $0xab]] }
 0x125   : > { %v2869_v14 = vpack.c.bf16 %v1841_v1, %v1841_v1  ;;  %v1868_v16 = vadd.f32 %v1866_v4, %v1856_v60  ;;  %v1885_v17 = vmul.f32 %v1884_v12, %v3227_v5  ;;  %s4424_s12 = sld [smem:[#allocation6 + $0xaf]]  ;;  %v1889_v9 = vmul.f32 %v1888_v13, %v3225_v3 }
 0x126   : > { %v2870_v15 = vpack.c.bf16 %v1842_v2, %v1842_v2  ;;  %v1869_v18 = vadd.f32 %v1867_v10, %v1857_v6  ;;  %v1891_v19 = vstv %s4396_s9  ;;  %v1894_v11 = vstv %s4400_s22  ;;  %s4429_s18 = sld [smem:[#allocation6 + $0xb0]] }
 0x127   : > { %2683 = vst.msk [vmem:[%s3270_s8 + $0x1b0] sm:$0xf] %vm285_vm0, %v2869_v14  ;;  %v1870_v20 = vadd.f32 %v1868_v16, %v1863_v8  ;;  %v1895_v21 = vmul.f32 %v4239_v55, %v1894_v11  ;;  %v1886_v22 = vmul.f32 %v1884_v12, %v3231_v7  ;;  %v1896_v23 = vmul.f32 %v4248_v59, %v1894_v11  ;;  %s4438_s23 = sld [smem:[#allocation7 + $0x3a]] }
 0x128   : > { %2684 = vst.msk [vmem:[%s3270_s8 + $0x1b4] sm:$0xf] %vm285_vm0, %v2870_v15  ;;  %v1871_v24 = vadd.f32 %v1869_v18, %v1863_v8  ;;  %v1892_v26 = vadd.f32 %v1891_v19, %v1889_v9  ;;  %v1913_v27 = vstv %s4403_s21  ;;  %v1917_v28 = vstv %s4408_s26  ;;  %s4442_s24 = sld [smem:[#allocation6 + $0xae]] }
 0x129   : > { %v2871_v30 = vpack.c.bf16 %v1870_v20, %v1870_v20  ;;  %v1897_v31 = vadd.f32 %v1895_v21, %v1885_v17  ;;  %v1898_v32 = vadd.f32 %v1896_v23, %v1886_v22  ;;  %v1914_v33 = vmul.f32 %v1913_v27, %v3227_v5  ;;  %s4445_s25 = sld [smem:[#allocation6 + $0xb2]] }
 0x12a   : > { %v2872_v34 = vpack.c.bf16 %v1871_v24, %v1871_v24  ;;  %v1918_v35 = vmul.f32 %v1917_v28, %v3225_v3  ;;  %v1920_v36 = vstv %s4414_s11  ;;  %v1923_v37 = vstv %s4421_s20  ;;  %s4450_s29 = sld [smem:[#allocation6 + $0xb3]] }
 0x12b   : > { %2691 = vst.msk [vmem:[%s3270_s8 + $0x1b8] sm:$0xf] %vm285_vm0, %v2871_v30  ;;  %v1899_v38 = vadd.f32 %v1897_v31, %v1892_v26  ;;  %v1900_v39 = vadd.f32 %v1898_v32, %v1892_v26  ;;  %v1924_v40 = vmul.f32 %v4239_v55, %v1923_v37  ;;  %v1915_v41 = vmul.f32 %v1913_v27, %v3231_v7  ;;  %s4456_s30 = sld [smem:[#allocation7 + $0x3b]] }
 0x12c   : > { %2692 = vst.msk [vmem:[%s3270_s8 + $0x1bc] sm:$0xf] %vm285_vm0, %v2872_v34  ;;  %v1921_v42 = vadd.f32 %v1920_v36, %v1918_v35  ;;  %v1925_v43 = vmul.f32 %v4248_v59, %v1923_v37  ;;  %v1942_v44 = vstv %s4424_s12  ;;  %v1946_v45 = vstv %s4429_s18  ;;  %s4463_s4 = sld [smem:[#allocation6 + $0xb1]] }
 0x12d   : > { %v2873_v46 = vpack.c.bf16 %v1899_v38, %v1899_v38  ;;  %v2874_v47 = vpack.c.bf16 %v1900_v39, %v1900_v39  ;;  %v1926_v48 = vadd.f32 %v1924_v40, %v1914_v33  ;;  %v1943_v25 = vmul.f32 %v1942_v44, %v3227_v5  ;;  %s4466_s5 = sld [smem:[#allocation6 + $0xb5]] }
 0x12e   : > { %v1927_v49 = vadd.f32 %v1925_v43, %v1915_v41  ;;  %v1947_v29 = vmul.f32 %v1946_v45, %v3225_v3  ;;  %v1949_v50 = vstv %s4438_s23  ;;  %v1952_v51 = vstv %s4442_s24  ;;  %s4471_s10 = sld [smem:[#allocation6 + $0xb6]] }
 0x12f   : > { %2699 = vst.msk [vmem:[%s3270_s8 + $0x1c0] sm:$0xf] %vm285_vm0, %v2873_v46  ;;  %2700 = vst.msk [vmem:[%s3270_s8 + $0x1c4] sm:$0xf] %vm285_vm0, %v2874_v47  ;;  %v1928_v52 = vadd.f32 %v1926_v48, %v1921_v42  ;;  %v1953_v53 = vmul.f32 %v4239_v55, %v1952_v51  ;;  %v1944_v54 = vmul.f32 %v1942_v44, %v3231_v7  ;;  %s4480_s6 = sld [smem:[#allocation7 + $0x3c]]  ;;  %v1971_v60 = vstv %s4445_s25 }
 0x130   : > { %v1954_v56 = vmul.f32 %v4248_v59, %v1952_v51  ;;  %v1929_v57 = vadd.f32 %v1927_v49, %v1921_v42  ;;  %v1950_v58 = vadd.f32 %v1949_v50, %v1947_v29  ;;  %v1975_v61 = vstv %s4450_s29  ;;  %s4484_s15 = sld [smem:[#allocation6 + $0xb4]] }
 0x131   : > { %v2875_v62 = vpack.c.bf16 %v1928_v52, %v1928_v52  ;;  %v1955_v63 = vadd.f32 %v1953_v53, %v1943_v25  ;;  %v1972_v1 = vmul.f32 %v1971_v60, %v3227_v5  ;;  %s4487_s19 = sld [smem:[#allocation6 + $0xb8]]  ;;  %v1976_v4 = vmul.f32 %v1975_v61, %v3225_v3 }
 0x132   : > { %v1956_v0 = vadd.f32 %v1954_v56, %v1944_v54  ;;  %v2876_v2 = vpack.c.bf16 %v1929_v57, %v1929_v57  ;;  %v1978_v6 = vstv %s4456_s30  ;;  %v1981_v8 = vstv %s4463_s4  ;;  %s4492_s7 = sld [smem:[#allocation6 + $0xb9]] }
 0x133   : > { %2707 = vst.msk [vmem:[%s3270_s8 + $0x1c8] sm:$0xf] %vm285_vm0, %v2875_v62  ;;  %v1957_v10 = vadd.f32 %v1955_v63, %v1950_v58  ;;  %v1982_v13 = vmul.f32 %v4239_v55, %v1981_v8  ;;  %v1973_v14 = vmul.f32 %v1971_v60, %v3231_v7  ;;  %s4498_s9 = sld [smem:[#allocation7 + $0x3d]]  ;;  %v1979_v15 = vadd.f32 %v1978_v6, %v1976_v4 }
 0x134   : > { %v1958_v12 = vadd.f32 %v1956_v0, %v1950_v58  ;;  %2708 = vst.msk [vmem:[%s3270_s8 + $0x1cc] sm:$0xf] %vm285_vm0, %v2876_v2  ;;  %v1983_v16 = vmul.f32 %v4248_v59, %v1981_v8  ;;  %v2000_v17 = vstv %s4466_s5  ;;  %v2004_v18 = vstv %s4471_s10  ;;  %s4505_s22 = sld [smem:[#allocation6 + $0xb7]] }
 0x135   : > { %v2877_v9 = vpack.c.bf16 %v1957_v10, %v1957_v10  ;;  %v1984_v11 = vadd.f32 %v1982_v13, %v1972_v1  ;;  %v2001_v20 = vmul.f32 %v2000_v17, %v3227_v5  ;;  %s4508_s21 = sld [smem:[#allocation6 + $0xbb]]  ;;  %v2005_v22 = vmul.f32 %v2004_v18, %v3225_v3 }
 0x136   : > { %v2878_v19 = vpack.c.bf16 %v1958_v12, %v1958_v12  ;;  %v1985_v21 = vadd.f32 %v1983_v16, %v1973_v14  ;;  %v2007_v23 = vstv %s4480_s6  ;;  %v2010_v24 = vstv %s4484_s15  ;;  %s4513_s26 = sld [smem:[#allocation6 + $0xbc]] }
 0x137   : > { %2715 = vst.msk [vmem:[%s3270_s8 + $0x1d0] sm:$0xf] %vm285_vm0, %v2877_v9  ;;  %v1986_v26 = vadd.f32 %v1984_v11, %v1979_v15  ;;  %v2011_v27 = vmul.f32 %v4239_v55, %v2010_v24  ;;  %v2002_v28 = vmul.f32 %v2000_v17, %v3231_v7  ;;  %v2012_v30 = vmul.f32 %v4248_v59, %v2010_v24  ;;  %s4522_s11 = sld [smem:[#allocation7 + $0x3e]] }
 0x138   : > { %2716 = vst.msk [vmem:[%s3270_s8 + $0x1d4] sm:$0xf] %vm285_vm0, %v2878_v19  ;;  %v1987_v31 = vadd.f32 %v1985_v21, %v1979_v15  ;;  %v2008_v32 = vadd.f32 %v2007_v23, %v2005_v22  ;;  %v2029_v33 = vstv %s4487_s19  ;;  %v2033_v34 = vstv %s4492_s7  ;;  %s4526_s20 = sld [smem:[#allocation6 + $0xba]] }
 0x139   : > { %v2879_v35 = vpack.c.bf16 %v1986_v26, %v1986_v26  ;;  %v2013_v36 = vadd.f32 %v2011_v27, %v2001_v20  ;;  %v2014_v37 = vadd.f32 %v2012_v30, %v2002_v28  ;;  %v2030_v38 = vmul.f32 %v2029_v33, %v3227_v5  ;;  %s4529_s12 = sld [smem:[#allocation6 + $0xbe]] }
 0x13a   : > { %v2880_v39 = vpack.c.bf16 %v1987_v31, %v1987_v31  ;;  %v2034_v40 = vmul.f32 %v2033_v34, %v3225_v3  ;;  %v2036_v41 = vstv %s4498_s9  ;;  %v2039_v42 = vstv %s4505_s22  ;;  %s4534_s18 = sld [smem:[#allocation6 + $0xbf]] }
 0x13b   : > { %2723 = vst.msk [vmem:[%s3270_s8 + $0x1d8] sm:$0xf] %vm285_vm0, %v2879_v35  ;;  %v2015_v43 = vadd.f32 %v2013_v36, %v2008_v32  ;;  %v2016_v44 = vadd.f32 %v2014_v37, %v2008_v32  ;;  %v2040_v45 = vmul.f32 %v4239_v55, %v2039_v42  ;;  %v2031_v46 = vmul.f32 %v2029_v33, %v3231_v7  ;;  %s4540_s23 = sld [smem:[#allocation7 + $0x3f]] }
 0x13c   : > { %2724 = vst.msk [vmem:[%s3270_s8 + $0x1dc] sm:$0xf] %vm285_vm0, %v2880_v39  ;;  %v2037_v47 = vadd.f32 %v2036_v41, %v2034_v40  ;;  %v2041_v48 = vmul.f32 %v4248_v59, %v2039_v42  ;;  %v2058_v25 = vstv %s4508_s21  ;;  %v2062_v49 = vstv %s4513_s26  ;;  %s4547_s24 = sld [smem:[#allocation6 + $0xbd]] }
 0x13d   : > { %v2881_v29 = vpack.c.bf16 %v2015_v43, %v2015_v43  ;;  %v2882_v50 = vpack.c.bf16 %v2016_v44, %v2016_v44  ;;  %v2042_v51 = vadd.f32 %v2040_v45, %v2030_v38  ;;  %v2059_v52 = vmul.f32 %v2058_v25, %v3227_v5 }
 0x13e   : > { %v2043_v53 = vadd.f32 %v2041_v48, %v2031_v46  ;;  %v2063_v54 = vmul.f32 %v2062_v49, %v3225_v3  ;;  %v2065_v56 = vstv %s4522_s11  ;;  %v2068_v57 = vstv %s4526_s20 }
 0x13f   : > { %2731 = vst.msk [vmem:[%s3270_s8 + $0x1e0] sm:$0xf] %vm285_vm0, %v2881_v29  ;;  %2732 = vst.msk [vmem:[%s3270_s8 + $0x1e4] sm:$0xf] %vm285_vm0, %v2882_v50  ;;  %v2044_v58 = vadd.f32 %v2042_v51, %v2037_v47  ;;  %v2069_v60 = vmul.f32 %v4239_v55, %v2068_v57  ;;  %v2060_v61 = vmul.f32 %v2058_v25, %v3231_v7  ;;  %v2087_v1 = vstv %s4529_s12 }
 0x140   : > { %v2070_v62 = vmul.f32 %v4248_v59, %v2068_v57  ;;  %v2045_v63 = vadd.f32 %v2043_v53, %v2037_v47  ;;  %v2066_v0 = vadd.f32 %v2065_v56, %v2063_v54  ;;  %v2091_v2 = vstv %s4534_s18 }
 0x141   : > { %v2883_v4 = vpack.c.bf16 %v2044_v58, %v2044_v58  ;;  %v2071_v6 = vadd.f32 %v2069_v60, %v2059_v52  ;;  %v2088_v10 = vmul.f32 %v2087_v1, %v3227_v5  ;;  %v2092_v13 = vmul.f32 %v2091_v2, %v3225_v3 }
 0x142   : > { %v2072_v8 = vadd.f32 %v2070_v62, %v2060_v61  ;;  %v2884_v12 = vpack.c.bf16 %v2045_v63, %v2045_v63  ;;  %v2094_v14 = vstv %s4540_s23  ;;  %v2097_v15 = vstv %s4547_s24 }
 0x143   : > { %2739 = vst.msk [vmem:[%s3270_s8 + $0x1e8] sm:$0xf] %vm285_vm0, %v2883_v4  ;;  %v2073_v16 = vadd.f32 %v2071_v6, %v2066_v0  ;;  %v2098_v18 = vmul.f32 %v4239_v55, %v2097_v15  ;;  %v2089_v9 = vmul.f32 %v2087_v1, %v3231_v7  ;;  %v2095_v5 = vadd.f32 %v2094_v14, %v2092_v13 }
 0x144   : > { %v2074_v17 = vadd.f32 %v2072_v8, %v2066_v0  ;;  %2740 = vst.msk [vmem:[%s3270_s8 + $0x1ec] sm:$0xf] %vm285_vm0, %v2884_v12  ;;  %v2099_v19 = vmul.f32 %v4248_v59, %v2097_v15 }
 0x145   : > { %v2885_v11 = vpack.c.bf16 %v2073_v16, %v2073_v16  ;;  %v2100_v20 = vadd.f32 %v2098_v18, %v2088_v10 }
 0x146   : > { %v2886_v3 = vpack.c.bf16 %v2074_v17, %v2074_v17  ;;  %v2101_v21 = vadd.f32 %v2099_v19, %v2089_v9 }
 0x147   : > { %2747 = vst.msk [vmem:[%s3270_s8 + $0x1f0] sm:$0xf] %vm285_vm0, %v2885_v11  ;;  %v2102_v22 = vadd.f32 %v2100_v20, %v2095_v5 }
 0x148   : > { %2748 = vst.msk [vmem:[%s3270_s8 + $0x1f4] sm:$0xf] %vm285_vm0, %v2886_v3  ;;  %v2103_v23 = vadd.f32 %v2101_v21, %v2095_v5 }
 0x149   : > { %v2887_v24 = vpack.c.bf16 %v2102_v22, %v2102_v22 }
 0x14a   : > { %v2888_v55 = vpack.c.bf16 %v2103_v23, %v2103_v23 }
 0x14b   : > { %2755 = vst.msk [vmem:[%s3270_s8 + $0x1f8] sm:$0xf] %vm285_vm0, %v2887_v24 }
 0x14c   : > { %2756 = vst.msk [vmem:[%s3270_s8 + $0x1fc] sm:$0xf] %vm285_vm0, %v2888_v55 }
 0x14d PF: > { %s18_s17 = sadd.s32 1, %s3083_s17   ;;  %s4608_s12 = smov %s3067_s13 }
 0x14e   : > { %p15_p3 = scmp.ge.s32.totalorder %s18_s17, 4   ;;  %s4609_s13 = smov %s3071_s14 }
 0x14f   : > { %s4610_s14 = smov %s3198_s27  ;;  %s4611_s15 = smov %s3079_s16 }
 0x150   : > { %s4612_s16 = smov %s4614_s28  ;;  %17 = sbr.rel (!%p15_p3) target bundleno = 6 (0x6), region = 145 }
 0x155   :  { %2145 = vsyncpa [#allocation3], 1 }
 0x156   :  { %2147 = vsyncpa [#allocation3 + $0x1], 1 }
 0x157   :  { %2148 = vsyncpa [#allocation4], 1 }
 0x158   :  { %2150 = vsyncpa [#allocation4 + $0x1], 1 }
 0x159   :  { %2151 = vsyncpa [#allocation5], 1 }
 0x15a   :  { %2153 = vsyncpa [#allocation5 + $0x1], 1 }

</bundles_post_ra>
